<compile_context>
chip_gen: v7x
topology: tpu7x:2x2x1
jax: 0.10.0
libtpu: 0.0.40
codegen_flags: <defaults>
</compile_context>

<pallas_src>
import functools

import jax
import jax.numpy as jnp
from jax.experimental import pallas as pl
from jax.experimental.pallas import tpu as pltpu


def _elu(x):
    # PyTorch nn.ELU, alpha = 1.0
    return jnp.where(x > 0, x, jnp.exp(jnp.minimum(x, 0.0)) - 1.0)


def _sigmoid(x):
    return 1.0 / (1.0 + jnp.exp(-x))


def _tree_lstm_kernel(arity, latent_dim, hid_dim, fuse_w2,
                      h_ref, c_ref, w1_ref, b1_ref, w2_ref, b2_ref, out_ref):
    """Full TreeLSTMCell forward for one batch tile.

    h_ref  : (TB, arity*D)   matmul dtype (f32 or bf16)
    c_ref  : (arity, TB, D)  f32
    w1_ref : (AD, M*HID)     all first layers fused along output axis
    b1_ref : (1, M*HID)      f32
    w2_ref : (M*HID, M*D) block-diagonal fused  OR  (M, HID, D) stacked
    b2_ref : (1, M*D)        f32
    out_ref: (TB, 2*D)       packed [h_j | c_j]
    """
    D = latent_dim
    HID = hid_dim
    M = 3 + arity

    # ---- fused first-layer GEMM: one wide MXU matmul, f32 accumulation ----
    hid = jnp.dot(h_ref[...], w1_ref[...], preferred_element_type=jnp.float32)
    hid = _elu(hid + b1_ref[...])                 # single hoisted bias broadcast

    # ---- fused second-layer GEMM ----
    hid_mm = hid.astype(w2_ref.dtype)
    if fuse_w2:
        pre = jnp.dot(hid_mm, w2_ref[...], preferred_element_type=jnp.float32)
    else:
        # Large-D fallback: per-gate dots on static lane slices of the fused hidden.
        parts = [jnp.dot(hid_mm[:, m * HID:(m + 1) * HID], w2_ref[m],
                         preferred_element_type=jnp.float32)
                 for m in range(M)]
        pre = jnp.concatenate(parts, axis=-1)
    pre = pre + b2_ref[...]                       # (TB, M*D)

    # ---- gates: [i, o, u, f_0 .. f_{arity-1}] along the lane axis ----
    i_j = _sigmoid(pre[:, 0:D])
    o_j = _sigmoid(pre[:, D:2 * D])
    u_j = jnp.tanh(pre[:, 2 * D:3 * D])

    f_sum = jnp.zeros_like(i_j)
    for k in range(arity):
        f_k = jnp.tanh(pre[:, (3 + k) * D:(4 + k) * D])
        f_sum = f_sum + f_k * c_ref[k].astype(jnp.float32)

    c_j = i_j * u_j + f_sum
    h_j = o_j * jnp.tanh(c_j)

    # single lane-dense packed store; the wrapper splits it back into (h, c).
    out_ref[...] = jnp.concatenate([h_j, c_j], axis=-1).astype(out_ref.dtype)


def tree_lstm_cell(list_h, list_c, params, *, arity, latent_dim,
                   batch_tile=256, matmul_dtype=jnp.float32, fuse_w2=None):
    """JAX wrapper. list_h / list_c: lists (len=arity) of (B, D) arrays."""
    assert len(list_h) == arity and len(list_c) == arity
    B, D = list_h[0].shape
    assert D == latent_dim
    AD = arity * D
    HID = 2 * AD
    M = 3 + arity

    w1, b1, w2, b2 = params
    assert w1.shape == (M, AD, HID) and w2.shape == (M, HID, D)

    # ---- weight preprocessing (once per call, outside the kernel) ----
    w1_cat = jnp.transpose(w1, (1, 0, 2)).reshape(AD, M * HID).astype(matmul_dtype)
    b1_cat = b1.reshape(1, M * HID).astype(jnp.float32)
    b2_cat = b2.reshape(1, M * D).astype(jnp.float32)

    itm = jnp.dtype(matmul_dtype).itemsize
    if fuse_w2 is None:
        # Block-diagonal W2 costs M x the memory of the stacked W2; only fuse when small.
        fuse_w2 = (M * HID) * (M * D) * itm <= (8 << 20)
    if fuse_w2:
        w2_pass = jnp.zeros((M * HID, M * D), matmul_dtype)
        for m in range(M):
            w2_pass = w2_pass.at[m * HID:(m + 1) * HID, m * D:(m + 1) * D].set(
                w2[m].astype(matmul_dtype))
    else:
        w2_pass = w2.astype(matmul_dtype)

    # ---- activation preprocessing ----
    h_mat = jnp.concatenate(list_h, axis=-1).astype(matmul_dtype)    # (B, AD)
    c_stack = jnp.stack(list_c, axis=0).astype(jnp.float32)          # (arity, B, D)

    # Pad batch so MXU rows are occupied; >1 block lets v7x shard across its 2 TCs.
    assert batch_tile % 8 == 0
    padded_B = ((B + batch_tile - 1) // batch_tile) * batch_tile
    if padded_B != B:
        h_mat = jnp.pad(h_mat, ((0, padded_B - B), (0, 0)))
        c_stack = jnp.pad(c_stack, ((0, 0), (0, padded_B - B), (0, 0)))
    grid = (padded_B // batch_tile,)

    # ---- VMEM budget: (double-buffered) weights + activation tiles + margin.
    # Note: weight index_maps are constant; bf16 weights keep this well under
    # the 64 MiB v7x VMEM even at production D.
    weight_bytes = (w1_cat.size + w2_pass.size) * itm + (b1_cat.size + b2_cat.size) * 4
    act_bytes = (batch_tile * AD * itm + arity * batch_tile * D * 4
                 + batch_tile * 2 * D * 4)
    vmem_limit = int(min(110 << 20,
                         max(32 << 20, 2 * weight_bytes + 2 * act_bytes + (4 << 20))))

    kernel = functools.partial(_tree_lstm_kernel, arity, D, HID, fuse_w2)

    w2_block = (M * HID, M * D) if fuse_w2 else (M, HID, D)
    w2_index = (lambda i: (0, 0)) if fuse_w2 else (lambda i: (0, 0, 0))

    packed = pl.pallas_call(
        kernel,
        out_shape=jax.ShapeDtypeStruct((padded_B, 2 * D), jnp.float32),
        grid_spec=pltpu.PrefetchScalarGridSpec(
            num_scalar_prefetch=0,
            grid=grid,
            in_specs=[
                pl.BlockSpec((batch_tile, AD), lambda i: (i, 0)),           # h_mat
                pl.BlockSpec((arity, batch_tile, D), lambda i: (0, i, 0)),  # c_stack
                pl.BlockSpec((AD, M * HID), lambda i: (0, 0)),              # W1 fused
                pl.BlockSpec((1, M * HID), lambda i: (0, 0)),               # b1
                pl.BlockSpec(w2_block, w2_index),                           # W2
                pl.BlockSpec((1, M * D), lambda i: (0, 0)),                 # b2
            ],
            out_specs=pl.BlockSpec((batch_tile, 2 * D), lambda i: (i, 0)),
        ),
        compiler_params=pltpu.CompilerParams(
            dimension_semantics=("parallel",),
            vmem_limit_bytes=vmem_limit),
    )(h_mat, c_stack, w1_cat, b1_cat, w2_pass, b2_cat)

    h_j = packed[:B, :D]
    c_j = packed[:B, D:]
    return h_j, c_j


def init_params(key, arity, latent_dim):
    """Deterministic init mimicking nn.Linear (uniform +/- 1/sqrt(fan_in))."""
    AD = arity * latent_dim
    HID = 2 * AD
    M = 3 + arity
    k1, k2, k3, k4 = jax.random.split(key, 4)
    lim1 = 1.0 / jnp.sqrt(AD)
    lim2 = 1.0 / jnp.sqrt(HID)
    w1 = jax.random.uniform(k1, (M, AD, HID), jnp.float32, -lim1, lim1)
    b1 = jax.random.uniform(k2, (M, HID), jnp.float32, -lim1, lim1)
    w2 = jax.random.uniform(k3, (M, HID, latent_dim), jnp.float32, -lim2, lim2)
    b2 = jax.random.uniform(k4, (M, latent_dim), jnp.float32, -lim2, lim2)
    return w1, b1, w2, b2


def _reference(list_h, list_c, params, arity):
    """Pure-JAX reference (same math as the PyTorch TreeLSTMCell)."""
    w1, b1, w2, b2 = params
    h = jnp.concatenate(list_h, axis=-1)

    def mlp(idx, act):
        hid = jax.nn.elu(h @ w1[idx] + b1[idx])
        return act(hid @ w2[idx] + b2[idx])

    i_j = mlp(0, jax.nn.sigmoid)
    o_j = mlp(1, jax.nn.sigmoid)
    u_j = mlp(2, jnp.tanh)
    f_sum = 0.0
    for k in range(arity):
        f_sum = f_sum + mlp(3 + k, jnp.tanh) * list_c[k]
    c_j = i_j * u_j + f_sum
    h_j = o_j * jnp.tanh(c_j)
    return h_j, c_j


if __name__ == "__main__":
    arity = 2
    latent_dim = 32
    batch = 8

    key = jax.random.PRNGKey(0)
    kp, *kx = jax.random.split(key, 1 + 2 * arity)
    params = init_params(kp, arity, latent_dim)

    list_h = [jax.random.normal(kx[i], (batch, latent_dim), jnp.float32)
              for i in range(arity)]
    list_c = [jax.random.normal(kx[arity + i], (batch, latent_dim), jnp.float32)
              for i in range(arity)]

    h_ref, c_ref = _reference(list_h, list_c, params, arity)

    # Default path: f32 matmuls, fused block-diagonal second GEMM.
    h_j, c_j = tree_lstm_cell(list_h, list_c, params,
                              arity=arity, latent_dim=latent_dim)
    jax.block_until_ready((h_j, c_j))
    assert jnp.allclose(h_j, h_ref, atol=1e-4, rtol=1e-4)
    assert jnp.allclose(c_j, c_ref, atol=1e-4, rtol=1e-4)

    # Large-D fallback path: unfused second GEMM (per-gate dots).
    h_j2, c_j2 = tree_lstm_cell(list_h, list_c, params,
                                arity=arity, latent_dim=latent_dim,
                                fuse_w2=False)
    jax.block_until_ready((h_j2, c_j2))
    assert jnp.allclose(h_j2, h_ref, atol=1e-4, rtol=1e-4)
    assert jnp.allclose(c_j2, c_ref, atol=1e-4, rtol=1e-4)

    # bf16 matmul inputs (v6e/v7x fast path), f32 accumulation — loose tolerance.
    h_j3, c_j3 = tree_lstm_cell(list_h, list_c, params,
                                arity=arity, latent_dim=latent_dim,
                                matmul_dtype=jnp.bfloat16)
    jax.block_until_ready((h_j3, c_j3))
    assert jnp.allclose(h_j3, h_ref, atol=1e-1, rtol=1e-1)
    assert jnp.allclose(c_j3, c_ref, atol=1e-1, rtol=1e-1)

    print("KERNEL_OK")
</pallas_src>

<mosaic_0001>
module attributes {stable_mosaic.version = 11 : i64} {
  func.func @_tree_lstm_kernel(%arg0: i32, %arg1: memref<256x64xf32, #tpu.memory_space<vmem>>, %arg2: memref<2x256x32xf32, #tpu.memory_space<vmem>>, %arg3: memref<64x640xf32, #tpu.memory_space<vmem>>, %arg4: memref<1x640xf32, #tpu.memory_space<vmem>>, %arg5: memref<640x160xf32, #tpu.memory_space<vmem>>, %arg6: memref<1x160xf32, #tpu.memory_space<vmem>>, %arg7: memref<256x64xf32, #tpu.memory_space<vmem>>) attributes {dimension_semantics = [#tpu.dimension_semantics<parallel>], iteration_bounds = array<i64: 1>, scalar_prefetch = 0 : i64, scratch_operands = 0 : i64, tpu.core_type = #tpu.core_type<tc>, window_params = [{transform_indices = @transform_0, window_bounds = array<i64: 256, 64>}, {transform_indices = @transform_1, window_bounds = array<i64: 2, 256, 32>}, {pipeline_mode = #tpu.pipeline_mode<synchronous>, transform_indices = @transform_2, window_bounds = array<i64: 64, 640>}, {pipeline_mode = #tpu.pipeline_mode<synchronous>, transform_indices = @transform_3, window_bounds = array<i64: 1, 640>}, {pipeline_mode = #tpu.pipeline_mode<synchronous>, transform_indices = @transform_4, window_bounds = array<i64: 640, 160>}, {pipeline_mode = #tpu.pipeline_mode<synchronous>, transform_indices = @transform_5, window_bounds = array<i64: 1, 160>}, {transform_indices = @transform_6, window_bounds = array<i64: 256, 64>}]} {
    %c0 = arith.constant 0 : index
    %c0_0 = arith.constant 0 : index
    %0 = vector.load %arg1[%c0, %c0_0] : memref<256x64xf32, #tpu.memory_space<vmem>>, vector<256x64xf32>
    %c0_1 = arith.constant 0 : index
    %c0_2 = arith.constant 0 : index
    %1 = vector.load %arg3[%c0_1, %c0_2] : memref<64x640xf32, #tpu.memory_space<vmem>>, vector<64x640xf32>
    %cst = arith.constant dense<0.000000e+00> : vector<256x640xf32>
    %2 = tpu.matmul %0, %1, %cst {dimension_numbers = #tpu.dot_dimension_numbers<[1], [0], [0], [1], [0, 0, 1, 1], [], []>} : vector<256x64xf32>, vector<64x640xf32>, vector<256x640xf32> -> vector<256x640xf32>
    %c0_3 = arith.constant 0 : index
    %c0_4 = arith.constant 0 : index
    %3 = vector.load %arg4[%c0_3, %c0_4] : memref<1x640xf32, #tpu.memory_space<vmem>>, vector<1x640xf32>
    %4 = vector.broadcast %3 : vector<1x640xf32> to vector<256x640xf32>
    %5 = arith.addf %2, %4 : vector<256x640xf32>
    %cst_5 = arith.constant 0.000000e+00 : f32
    %6 = vector.broadcast %cst_5 : f32 to vector<256x640xf32>
    %7 = arith.cmpf ogt, %5, %6 : vector<256x640xf32>
    %cst_6 = arith.constant 0.000000e+00 : f32
    %8 = vector.broadcast %cst_6 : f32 to vector<256x640xf32>
    %9 = arith.minimumf %5, %8 : vector<256x640xf32>
    %10 = math.exp %9 : vector<256x640xf32>
    %cst_7 = arith.constant 1.000000e+00 : f32
    %11 = vector.broadcast %cst_7 : f32 to vector<256x640xf32>
    %12 = arith.subf %10, %11 : vector<256x640xf32>
    %13 = arith.select %7, %5, %12 : vector<256x640xi1>, vector<256x640xf32>
    %c0_8 = arith.constant 0 : index
    %c0_9 = arith.constant 0 : index
    %14 = vector.load %arg5[%c0_8, %c0_9] : memref<640x160xf32, #tpu.memory_space<vmem>>, vector<640x160xf32>
    %cst_10 = arith.constant dense<0.000000e+00> : vector<256x160xf32>
    %15 = tpu.matmul %13, %14, %cst_10 {dimension_numbers = #tpu.dot_dimension_numbers<[1], [0], [0], [1], [0, 0, 1, 1], [], []>} : vector<256x640xf32>, vector<640x160xf32>, vector<256x160xf32> -> vector<256x160xf32>
    %c0_11 = arith.constant 0 : index
    %c0_12 = arith.constant 0 : index
    %16 = vector.load %arg6[%c0_11, %c0_12] : memref<1x160xf32, #tpu.memory_space<vmem>>, vector<1x160xf32>
    %17 = vector.broadcast %16 : vector<1x160xf32> to vector<256x160xf32>
    %18 = arith.addf %15, %17 : vector<256x160xf32>
    %19 = vector.extract_strided_slice %18 {offsets = [0, 0], sizes = [256, 32], strides = [1, 1]} : vector<256x160xf32> to vector<256x32xf32>
    %cst_13 = arith.constant 0.000000e+00 : f32
    %20 = vector.broadcast %cst_13 : f32 to vector<256x32xf32>
    %21 = arith.subf %20, %19 : vector<256x32xf32>
    %22 = math.exp %21 : vector<256x32xf32>
    %cst_14 = arith.constant 1.000000e+00 : f32
    %23 = vector.broadcast %cst_14 : f32 to vector<256x32xf32>
    %24 = arith.addf %23, %22 : vector<256x32xf32>
    %cst_15 = arith.constant 1.000000e+00 : f32
    %25 = vector.broadcast %cst_15 : f32 to vector<256x32xf32>
    %26 = arith.divf %25, %24 : vector<256x32xf32>
    %27 = vector.extract_strided_slice %18 {offsets = [0, 32], sizes = [256, 32], strides = [1, 1]} : vector<256x160xf32> to vector<256x32xf32>
    %cst_16 = arith.constant 0.000000e+00 : f32
    %28 = vector.broadcast %cst_16 : f32 to vector<256x32xf32>
    %29 = arith.subf %28, %27 : vector<256x32xf32>
    %30 = math.exp %29 : vector<256x32xf32>
    %cst_17 = arith.constant 1.000000e+00 : f32
    %31 = vector.broadcast %cst_17 : f32 to vector<256x32xf32>
    %32 = arith.addf %31, %30 : vector<256x32xf32>
    %cst_18 = arith.constant 1.000000e+00 : f32
    %33 = vector.broadcast %cst_18 : f32 to vector<256x32xf32>
    %34 = arith.divf %33, %32 : vector<256x32xf32>
    %35 = vector.extract_strided_slice %18 {offsets = [0, 64], sizes = [256, 32], strides = [1, 1]} : vector<256x160xf32> to vector<256x32xf32>
    %36 = math.tanh %35 : vector<256x32xf32>
    %cst_19 = arith.constant 0.000000e+00 : f32
    %37 = vector.broadcast %cst_19 : f32 to vector<256x32xf32>
    %38 = vector.extract_strided_slice %18 {offsets = [0, 96], sizes = [256, 32], strides = [1, 1]} : vector<256x160xf32> to vector<256x32xf32>
    %39 = math.tanh %38 : vector<256x32xf32>
    %c0_20 = arith.constant 0 : index
    %c0_21 = arith.constant 0 : index
    %c0_22 = arith.constant 0 : index
    %40 = vector.load %arg2[%c0_20, %c0_21, %c0_22] : memref<2x256x32xf32, #tpu.memory_space<vmem>>, vector<1x256x32xf32>
    %41 = vector.shape_cast %40 : vector<1x256x32xf32> to vector<256x32xf32>
    %42 = arith.mulf %39, %41 : vector<256x32xf32>
    %43 = arith.addf %37, %42 : vector<256x32xf32>
    %44 = vector.extract_strided_slice %18 {offsets = [0, 128], sizes = [256, 32], strides = [1, 1]} : vector<256x160xf32> to vector<256x32xf32>
    %45 = math.tanh %44 : vector<256x32xf32>
    %c1 = arith.constant 1 : index
    %c0_23 = arith.constant 0 : index
    %c0_24 = arith.constant 0 : index
    %46 = vector.load %arg2[%c1, %c0_23, %c0_24] : memref<2x256x32xf32, #tpu.memory_space<vmem>>, vector<1x256x32xf32>
    %47 = vector.shape_cast %46 : vector<1x256x32xf32> to vector<256x32xf32>
    %48 = arith.mulf %45, %47 : vector<256x32xf32>
    %49 = arith.addf %43, %48 : vector<256x32xf32>
    %50 = arith.mulf %26, %36 : vector<256x32xf32>
    %51 = arith.addf %50, %49 : vector<256x32xf32>
    %52 = math.tanh %51 : vector<256x32xf32>
    %53 = arith.mulf %34, %52 : vector<256x32xf32>
    %54 = tpu.concatenate %53, %51 in 1 : vector<256x32xf32>, vector<256x32xf32> -> vector<256x64xf32>
    %c0_25 = arith.constant 0 : index
    %c0_26 = arith.constant 0 : index
    %55 = vector.load %arg7[%c0_25, %c0_26] : memref<256x64xf32, #tpu.memory_space<vmem>>, vector<256x64xf32>
    tpu.vector_store %arg7[%c0_25, %c0_26], %54 {strides = array<i32>} : memref<256x64xf32, #tpu.memory_space<vmem>>, vector<256x64xf32>,
    return
  }
  func.func @transform_0(%arg0: i32) -> (i32, i32) {
    %c0_i32 = arith.constant 0 : i32
    %c0_i32_0 = arith.constant 0 : i32
    return %arg0, %c0_i32 : i32, i32
  }
  func.func @transform_1(%arg0: i32) -> (i32, i32, i32) {
    %c0_i32 = arith.constant 0 : i32
    %c0_i32_0 = arith.constant 0 : i32
    %c0_i32_1 = arith.constant 0 : i32
    return %c0_i32, %arg0, %c0_i32_0 : i32, i32, i32
  }
  func.func @transform_2(%arg0: i32) -> (i32, i32) {
    %c0_i32 = arith.constant 0 : i32
    %c0_i32_0 = arith.constant 0 : i32
    %c0_i32_1 = arith.constant 0 : i32
    return %c0_i32, %c0_i32_0 : i32, i32
  }
  func.func @transform_3(%arg0: i32) -> (i32, i32) {
    %c0_i32 = arith.constant 0 : i32
    %c0_i32_0 = arith.constant 0 : i32
    %c0_i32_1 = arith.constant 0 : i32
    return %c0_i32, %c0_i32_0 : i32, i32
  }
  func.func @transform_4(%arg0: i32) -> (i32, i32) {
    %c0_i32 = arith.constant 0 : i32
    %c0_i32_0 = arith.constant 0 : i32
    %c0_i32_1 = arith.constant 0 : i32
    return %c0_i32, %c0_i32_0 : i32, i32
  }
  func.func @transform_5(%arg0: i32) -> (i32, i32) {
    %c0_i32 = arith.constant 0 : i32
    %c0_i32_0 = arith.constant 0 : i32
    %c0_i32_1 = arith.constant 0 : i32
    return %c0_i32, %c0_i32_0 : i32, i32
  }
  func.func @transform_6(%arg0: i32) -> (i32, i32) {
    %c0_i32 = arith.constant 0 : i32
    %c0_i32_0 = arith.constant 0 : i32
    return %arg0, %c0_i32 : i32, i32
  }
}

</mosaic_0001>

<bundles_post_ra>
// kernel: tpu_custom_call.1
= control target key start
LH: loop header
LB: loop body
LE: loop exit
PB: predicated region body
PF: predicated region fallthrough
CT: control target
= control target key end

     0   :  { %v9721_v3 = vmov 0.0   ;;  %vm122_vm0 = vcmask 523264   ;;  %s5849_s7 = smov 96   ;;  %s5850_s17 = smov 64   ;;  %s9712_s2 = inlined_call_operand.vmem [shape: f32[64,640], index: 2, kind: input, shape index: {}]   ;;  %s9713_s0 = inlined_call_operand.vmem [shape: f32[256,64], index: 0, kind: input, shape index: {}]   ;;  %s9714_s4 = inlined_call_operand.vmem [shape: f32[640,160], index: 4, kind: input, shape index: {}]   ;;  %s9715_s3 = inlined_call_operand.vmem [shape: f32[1,640], index: 3, kind: input, shape index: {}]   ;;  %s9716_s1 = inlined_call_operand.vmem [shape: f32[2,256,32], index: 1, kind: input, shape index: {}]   ;;  %s9717_s5 = inlined_call_operand.vmem [shape: f32[1,160], index: 5, kind: input, shape index: {}]   ;;  %s9718_s6 = inlined_call_operand.vmem [shape: f32[256,64], index: 6, kind: output, shape index: {}]  }
   0x1   :  { %v56_v0 = vld [vmem:[%s9712_s2 + $0x8] sm:$0xff]  ;;  %v61_v1 = vld [vmem:[%s9712_s2 + $0x30] sm:$0xff]  ;;  %v55_v2 = vld [vmem:[%s9712_s2] sm:$0xff]  ;;  %283 = vmatprep.mubr.f32.mxu0 %v9721_v3  ;;  %588 = vmatprep.mubr.f32.mxu1 %v9721_v3 }
   0x2   :  { %v4795_v4 = vpack.c.bf16 %v61_v1, %v56_v0  ;;  %v60_v5 = vld [vmem:[%s9712_s2 + $0x28] sm:$0xff]  ;;  %v66_v6 = vld [vmem:[%s9712_s2 + $0x58] sm:$0xff]  ;;  %v71_v7 = vld [vmem:[%s9712_s2 + $0x80] sm:$0xff] }
   0x3   :  { %v4797_v8 = vpack.c.bf16 %v60_v5, %v55_v2  ;;  %v4799_v9 = vpack.c.bf16 %v71_v7, %v66_v6  ;;  %v65_v10 = vld [vmem:[%s9712_s2 + $0x50] sm:$0xff]  ;;  %v70_v11 = vld [vmem:[%s9712_s2 + $0x78] sm:$0xff]  ;;  %v76_v12 = vld [vmem:[%s9712_s2 + $0xa8] sm:$0xff] }
   0x4   :  { %4796 = vmatprep.subr.bf16.mxu0 %v4795_v4  ;;  %v81_v13 = vld [vmem:[%s9712_s2 + $0xd0] sm:$0xff]  ;;  %v4801_v14 = vpack.c.bf16 %v70_v11, %v65_v10  ;;  %v75_v15 = vld [vmem:[%s9712_s2 + $0xa0] sm:$0xff]  ;;  %v80_v16 = vld [vmem:[%s9712_s2 + $0xc8] sm:$0xff] }
   0x5   :  { %4798 = vmatpush1.bf16.msra.mxu0 %v4797_v8  ;;  %v4803_v17 = vpack.c.bf16 %v81_v13, %v76_v12  ;;  %v86_v18 = vld [vmem:[%s9712_s2 + $0xf8] sm:$0xff]  ;;  %v91_v19 = vld [vmem:[%s9712_s2 + $0x120] sm:$0xff]  ;;  %v57_v22 = vld [vmem:[%s9712_s2 + $0x10] sm:$0xff]  ;;  %v4805_v25 = vpack.c.bf16 %v80_v16, %v75_v15 }
   0x6   :  { %4800 = vmatprep.subr.bf16.mxu0 %v4799_v9  ;;  %v58_v20 = vld [vmem:[%s9712_s2 + $0x18] sm:$0xff]  ;;  %v63_v21 = vld [vmem:[%s9712_s2 + $0x40] sm:$0xff]  ;;  %v4807_v27 = vpack.c.bf16 %v91_v19, %v86_v18  ;;  %v85_v28 = vld [vmem:[%s9712_s2 + $0xf0] sm:$0xff] }
   0x7   :  { %v62_v23 = vld [vmem:[%s9712_s2 + $0x38] sm:$0xff]  ;;  %v4811_v24 = vpack.c.bf16 %v63_v21, %v58_v20  ;;  %v68_v30 = vld [vmem:[%s9712_s2 + $0x68] sm:$0xff]  ;;  %v73_v31 = vld [vmem:[%s9712_s2 + $0x90] sm:$0xff] }
   0x8   :  { %v4813_v26 = vpack.c.bf16 %v62_v23, %v57_v22  ;;  %v90_v29 = vld [vmem:[%s9712_s2 + $0x118] sm:$0xff]  ;;  %v67_v32 = vld [vmem:[%s9712_s2 + $0x60] sm:$0xff]  ;;  %v72_v33 = vld [vmem:[%s9712_s2 + $0x88] sm:$0xff]  ;;  %v4815_v34 = vpack.c.bf16 %v73_v31, %v68_v30 }
   0x9   :  { %4802 = vmatpush1.bf16.msra.mxu0 %v4801_v14  ;;  %5003 = vmatprep.subr.bf16.mxu1 %v4811_v24  ;;  %v4809_v35 = vpack.c.bf16 %v90_v29, %v85_v28  ;;  %v4817_v36 = vpack.c.bf16 %v72_v33, %v67_v32  ;;  %v78_v37 = vld [vmem:[%s9712_s2 + $0xb8] sm:$0xff]  ;;  %v83_v38 = vld [vmem:[%s9712_s2 + $0xe0] sm:$0xff]  ;;  %v77_v39 = vld [vmem:[%s9712_s2 + $0xb0] sm:$0xff] }
   0xa   :  { %4804 = vmatprep.subr.bf16.mxu0 %v4803_v17  ;;  %5007 = vmatpush1.bf16.msra.mxu1 %v4813_v26  ;;  %v82_v40 = vld [vmem:[%s9712_s2 + $0xd8] sm:$0xff]  ;;  %v4819_v41 = vpack.c.bf16 %v83_v38, %v78_v37  ;;  %v5976_v42 = vld [vmem:[%s9713_s0] sm:$0xff]  ;;  %v88_v44 = vld [vmem:[%s9712_s2 + $0x108] sm:$0xff] }
   0xb   :  { %5004 = vmatprep.subr.bf16.mxu1 %v4815_v34  ;;  %v4821_v43 = vpack.c.bf16 %v82_v40, %v77_v39  ;;  %v93_v45 = vld [vmem:[%s9712_s2 + $0x130] sm:$0xff]  ;;  %v87_v46 = vld [vmem:[%s9712_s2 + $0x100] sm:$0xff]  ;;  %v92_v47 = vld [vmem:[%s9712_s2 + $0x128] sm:$0xff] }
   0xc   :  { %v4823_v48 = vpack.c.bf16 %v93_v45, %v88_v44  ;;  %v5996_v49 = vld [vmem:[%s9713_s0 + $0x8] sm:$0xff]  ;;  %v4825_v50 = vpack.c.bf16 %v92_v47, %v87_v46  ;;  %v6004_v51 = vld [vmem:[%s9713_s0 + $0x10] sm:$0xff]  ;;  %v6009_v52 = vld [vmem:[%s9713_s0 + $0x40] sm:$0xff] }
   0xd   :  { %4806 = vmatpush1.bf16.msra.mxu0 %v4805_v25  ;;  %v6020_v53 = vld [vmem:[%s9713_s0 + $0x18] sm:$0xff]  ;;  %v6025_v54 = vld [vmem:[%s9713_s0 + $0x48] sm:$0xff]  ;;  %v6036_v55 = vld [vmem:[%s9713_s0 + $0x20] sm:$0xff] }
   0xe   :  { %4808 = vmatprep.subr.bf16.mxu0 %v4807_v27  ;;  %5008 = vmatpush1.bf16.msra.mxu1 %v4817_v36  ;;  %v6041_v56 = vld [vmem:[%s9713_s0 + $0x50] sm:$0xff]  ;;  %v6052_v57 = vld [vmem:[%s9713_s0 + $0x28] sm:$0xff]  ;;  %v6057_v58 = vld [vmem:[%s9713_s0 + $0x58] sm:$0xff] }
   0xf   :  { %5005 = vmatprep.subr.bf16.mxu1 %v4819_v41  ;;  %v6068_v59 = vld [vmem:[%s9713_s0 + $0x30] sm:$0xff]  ;;  %v6073_v60 = vld [vmem:[%s9713_s0 + $0x60] sm:$0xff]  ;;  %v64_v62 = vld [vmem:[%s9712_s2 + $0x48] sm:$0xff] }
  0x10   :  { %v59_v61 = vld [vmem:[%s9712_s2 + $0x20] sm:$0xff]  ;;  %v6092_v0 = vld [vmem:[%s9713_s0 + $0x38] sm:$0xff]  ;;  %v6097_v1 = vld [vmem:[%s9713_s0 + $0x68] sm:$0xff] }
  0x11   :  { %4810 = vmatpush1.bf16.msra.mxu0 %v4809_v35  ;;  %v6086_v63 = vpack.c.bf16 %v64_v62, %v59_v61  ;;  %v6109_v2 = vld [vmem:[%s9713_s0 + $0x70] sm:$0xff]  ;;  %v6120_v4 = vld [vmem:[%s9713_s0 + $0x78] sm:$0xff]  ;;  %v6131_v5 = vld [vmem:[%s9713_s0 + $0x80] sm:$0xff] }
  0x12   :  { %4812 = vmatprep.subr.bf16.mxu0 %v4811_v24  ;;  %5009 = vmatpush1.bf16.msra.mxu1 %v4821_v43  ;;  %v6142_v6 = vld [vmem:[%s9713_s0 + $0x88] sm:$0xff]  ;;  %v6153_v7 = vld [vmem:[%s9713_s0 + $0x90] sm:$0xff]  ;;  %v6164_v8 = vld [vmem:[%s9713_s0 + $0x98] sm:$0xff] }
  0x13   :  { %5006 = vmatprep.subr.bf16.mxu1 %v4823_v48  ;;  %v6175_v9 = vld [vmem:[%s9713_s0 + $0xa0] sm:$0xff]  ;;  %v6186_v10 = vld [vmem:[%s9713_s0 + $0xa8] sm:$0xff]  ;;  %v6197_v11 = vld [vmem:[%s9713_s0 + $0xb0] sm:$0xff] }
  0x14   :  { %4403 = vmatmul.mubr.msk.f32.vlgmr.msra.gmra.mrb[0].mxu0 %vm122_vm0, %v5976_v42  ;;  %v6208_v12 = vld [vmem:[%s9713_s0 + $0xb8] sm:$0xff]  ;;  %v6219_v13 = vld [vmem:[%s9713_s0 + $0xc0] sm:$0xff]  ;;  %v6230_v14 = vld [vmem:[%s9713_s0 + $0xc8] sm:$0xff] }
  0x15   :  { %4814 = vmatpush1.bf16.msra.mxu0 %v4813_v26  ;;  %289 = vmatprep.mubr.f32.mxu0 %v9721_v3  ;;  %v6241_v15 = vld [vmem:[%s9713_s0 + $0xd0] sm:$0xff]  ;;  %v6252_v16 = vld [vmem:[%s9713_s0 + $0xd8] sm:$0xff]  ;;  %v6263_v17 = vld [vmem:[%s9713_s0 + $0xe0] sm:$0xff] }
  0x16   :  { %4816 = vmatprep.subr.bf16.mxu0 %v4815_v34  ;;  %5010 = vmatpush1.bf16.msra.mxu1 %v4825_v50  ;;  %v6274_v18 = vld [vmem:[%s9713_s0 + $0xe8] sm:$0xff]  ;;  %v6285_v19 = vld [vmem:[%s9713_s0 + $0xf0] sm:$0xff]  ;;  %v6296_v20 = vld [vmem:[%s9713_s0 + $0xf8] sm:$0xff] }
  0x17   :  { %v69_v21 = vld [vmem:[%s9712_s2 + $0x70] sm:$0xff]  ;;  %v74_v22 = vld [vmem:[%s9712_s2 + $0x98] sm:$0xff]  ;;  %v79_v24 = vld [vmem:[%s9712_s2 + $0xc0] sm:$0xff] }
  0x18   :  { %4404 = vmatmul.mubr.msk.f32.gmra.mrb[2].mxu0 %vm122_vm0, %v5996_v49  ;;  %v4831_v23 = vpack.c.bf16 %v74_v22, %v69_v21  ;;  %v84_v25 = vld [vmem:[%s9712_s2 + $0xe8] sm:$0xff]  ;;  %v89_v27 = vld [vmem:[%s9712_s2 + $0x110] sm:$0xff]  ;;  %v94_v28 = vld [vmem:[%s9712_s2 + $0x138] sm:$0xff]  ;;  %s5851_s2 = smov 32  }
  0x19   :  { %295 = vmatprep.mubr.f32.mxu0 %v9721_v3  ;;  %4818 = vmatpush1.bf16.msra.mxu0 %v4817_v36  ;;  %v4835_v26 = vpack.c.bf16 %v84_v25, %v79_v24  ;;  %v4839_v29 = vpack.c.bf16 %v94_v28, %v89_v27  ;;  %v1919_v30 = vld [vmem:[%s9714_s4 + $0x8] sm:$0xff]  ;;  %v1921_v31 = vld [vmem:[%s9714_s4 + $0x18] sm:$0xff]  ;;  %v1982_v36 = vld [vmem:[%s9714_s4 + $0x200] sm:$0xff] }
  0x1a   :  { %4820 = vmatprep.subr.bf16.mxu0 %v4819_v41  ;;  %4443 = vmatmul.mubr.msk.f32.vlgmr.msra.gmra.mrb[0].mxu1 %vm122_vm0, %v6009_v52  ;;  %v4843_v32 = vpack.c.bf16 %v1921_v31, %v1919_v30  ;;  %v1983_v33 = vld [vmem:[%s9714_s4 + $0x208] sm:$0xff]  ;;  %v1985_v34 = vld [vmem:[%s9714_s4 + $0x218] sm:$0xff]  ;;  %v1984_v37 = vld [vmem:[%s9714_s4 + $0x210] sm:$0xff] }
  0x1b   :  { %594 = vmatprep.mubr.f32.mxu1 %v9721_v3  ;;  %v4907_v35 = vpack.c.bf16 %v1985_v34, %v1983_v33  ;;  %v4909_v38 = vpack.c.bf16 %v1984_v37, %v1982_v36  ;;  %v1987_v39 = vld [vmem:[%s9714_s4 + $0x228] sm:$0xff]  ;;  %v1989_v40 = vld [vmem:[%s9714_s4 + $0x238] sm:$0xff]  ;;  %v1986_v41 = vld [vmem:[%s9714_s4 + $0x220] sm:$0xff] }
  0x1c   :  { %4405 = vmatmul.mubr.msk.f32.gmra.mrb[4].mxu0 %vm122_vm0, %v6004_v51  ;;  %v1988_v44 = vld [vmem:[%s9714_s4 + $0x230] sm:$0xff]  ;;  %v1918_v46 = vld [vmem:[%s9714_s4] sm:$0xff]  ;;  %v1991_v61 = vld [vmem:[%s9714_s4 + $0x248] sm:$0xff] }
  0x1d   :  { %301 = vmatprep.mubr.f32.mxu0 %v9721_v3  ;;  %4822 = vmatpush1.bf16.msra.mxu0 %v4821_v43  ;;  %v4911_v43 = vpack.c.bf16 %v1989_v40, %v1987_v39  ;;  %v4913_v45 = vpack.c.bf16 %v1988_v44, %v1986_v41  ;;  %v1920_v47 = vld [vmem:[%s9714_s4 + $0x10] sm:$0xff]  ;;  %v1993_v62 = vld [vmem:[%s9714_s4 + $0x258] sm:$0xff]  ;;  %v1922_v22 = vld [vmem:[%s9714_s4 + $0x20] sm:$0xff] }
  0x1e   :  { %4824 = vmatprep.subr.bf16.mxu0 %v4823_v48  ;;  %4444 = vmatmul.mubr.msk.f32.gmra.mrb[2].mxu1 %vm122_vm0, %v6025_v54  ;;  %v1923_v48 = vld [vmem:[%s9714_s4 + $0x28] sm:$0xff]  ;;  %v4845_v21 = vpack.c.bf16 %v1920_v47, %v1918_v46  ;;  %v1924_v24 = vld [vmem:[%s9714_s4 + $0x30] sm:$0xff]  ;;  %v1990_v25 = vld [vmem:[%s9714_s4 + $0x240] sm:$0xff] }
  0x1f   :  { %600 = vmatprep.mubr.f32.mxu1 %v9721_v3  ;;  %4908 = vmatprep.subr.bf16.mxu1 %v4907_v35  ;;  %v1929_v27 = vld [vmem:[%s9714_s4 + $0x58] sm:$0xff]  ;;  %v1926_v30 = vld [vmem:[%s9714_s4 + $0x40] sm:$0xff]  ;;  %v1931_v33 = vld [vmem:[%s9714_s4 + $0x68] sm:$0xff] }
  0x20   :  { %4406 = vmatmul.mubr.msk.f32.gmra.mrb[6].mxu0 %vm122_vm0, %v6020_v53  ;;  %4910 = vmatpush1.bf16.msra.mxu1 %v4909_v38  ;;  %v1997_v34 = vld [vmem:[%s9714_s4 + $0x278] sm:$0xff]  ;;  %v1994_v35 = vld [vmem:[%s9714_s4 + $0x260] sm:$0xff]  ;;  %v1996_v37 = vld [vmem:[%s9714_s4 + $0x270] sm:$0xff] }
  0x21   :  { %307 = vmatprep.mubr.f32.mxu0 %v9721_v3  ;;  %4826 = vmatpush1.bf16.msra.mxu0 %v4825_v50  ;;  %v1925_v50 = vld [vmem:[%s9714_s4 + $0x38] sm:$0xff]  ;;  %v4921_v39 = vpack.c.bf16 %v1996_v37, %v1994_v35  ;;  %v1930_v41 = vld [vmem:[%s9714_s4 + $0x60] sm:$0xff]  ;;  %v1999_v44 = vld [vmem:[%s9714_s4 + $0x288] sm:$0xff] }
  0x22   :  { %4445 = vmatmul.mubr.msk.f32.gmra.mrb[4].mxu1 %vm122_vm0, %v6041_v56  ;;  %4828 = vmatprep.subr.bf16.mxu0 %v6086_v63  ;;  %v1946_v37 = vld [vmem:[%s9714_s4 + $0xe0] sm:$0xff] }
  0x23   :  { %606 = vmatprep.mubr.f32.mxu1 %v9721_v3  ;;  %4912 = vmatprep.subr.bf16.mxu1 %v4911_v43  ;;  %v1935_v43 = vld [vmem:[%s9714_s4 + $0x88] sm:$0xff] }
  0x24   :  { %4407 = vmatmul.mubr.msk.f32.gmra.mrb[8].mxu0 %vm122_vm0, %v6036_v55  ;;  %4914 = vmatpush1.bf16.msra.mxu1 %v4913_v45  ;;  %v2001_v45 = vld [vmem:[%s9714_s4 + $0x298] sm:$0xff] }
  0x25   :  { %313 = vmatprep.mubr.f32.mxu0 %v9721_v3  ;;  %v4923_v46 = vpack.c.bf16 %v2001_v45, %v1999_v44  ;;  %v1952_v45 = vld [vmem:[%s9714_s4 + $0x110] sm:$0xff] }
  0x26   :  { %4446 = vmatmul.mubr.msk.f32.gmra.mrb[6].mxu1 %vm122_vm0, %v6057_v58 }
  0x27   :  { %612 = vmatprep.mubr.f32.mxu1 %v9721_v3 }
  0x28   :  { %4408 = vmatmul.mubr.msk.f32.gmra.mrb[10].mxu0 %vm122_vm0, %v6052_v57 }
  0x29   :  { %319 = vmatprep.mubr.f32.mxu0 %v9721_v3 }
  0x2a   :  { %4447 = vmatmul.mubr.msk.f32.gmra.mrb[8].mxu1 %vm122_vm0, %v6073_v60 }
  0x2b   :  { %618 = vmatprep.mubr.f32.mxu1 %v9721_v3 }
  0x2c   :  { %4409 = vmatmul.mubr.msk.f32.gmra.mrb[12].mxu0 %vm122_vm0, %v6068_v59 }
  0x2d   :  { %325 = vmatprep.mubr.f32.mxu0 %v9721_v3 }
  0x2e   :  { %4448 = vmatmul.mubr.msk.f32.gmra.mrb[10].mxu1 %vm122_vm0, %v6097_v1 }
  0x2f   :  { %624 = vmatprep.mubr.f32.mxu1 %v9721_v3 }
  0x30   :  { %4410 = vmatmul.mubr.msk.f32.gmra.mrb[14].mxu0 %vm122_vm0, %v6092_v0 }
  0x31   :  { %331 = vmatprep.mubr.f32.mxu0 %v9721_v3 }
  0x32   :  { %4449 = vmatmul.mubr.msk.f32.gmra.mrb[12].mxu1 %vm122_vm0, %v6109_v2 }
  0x33   :  { %630 = vmatprep.mubr.f32.mxu1 %v9721_v3 }
  0x34   :  { %4411 = vmatmul.mubr.msk.f32.gmra.mrb[16].mxu0 %vm122_vm0, %v6009_v52 }
  0x35   :  { %337 = vmatprep.mubr.f32.mxu0 %v9721_v3 }
  0x36   :  { %4450 = vmatmul.mubr.msk.f32.gmra.mrb[14].mxu1 %vm122_vm0, %v6120_v4 }
  0x37   :  { %636 = vmatprep.mubr.f32.mxu1 %v9721_v3 }
  0x38   :  { %4412 = vmatmul.mubr.msk.f32.gmra.mrb[18].mxu0 %vm122_vm0, %v6025_v54 }
  0x39   :  { %343 = vmatprep.mubr.f32.mxu0 %v9721_v3 }
  0x3a   :  { %4451 = vmatmul.mubr.msk.f32.gmra.mrb[16].mxu1 %vm122_vm0, %v6131_v5 }
  0x3b   :  { %642 = vmatprep.mubr.f32.mxu1 %v9721_v3 }
  0x3c   :  { %4413 = vmatmul.mubr.msk.f32.gmra.mrb[20].mxu0 %vm122_vm0, %v6041_v56 }
  0x3d   :  { %349 = vmatprep.mubr.f32.mxu0 %v9721_v3 }
  0x3e   :  { %4452 = vmatmul.mubr.msk.f32.gmra.mrb[18].mxu1 %vm122_vm0, %v6142_v6 }
  0x3f   :  { %648 = vmatprep.mubr.f32.mxu1 %v9721_v3 }
  0x40   :  { %4414 = vmatmul.mubr.msk.f32.gmra.mrb[22].mxu0 %vm122_vm0, %v6057_v58 }
  0x41   :  { %355 = vmatprep.mubr.f32.mxu0 %v9721_v3 }
  0x42   :  { %4453 = vmatmul.mubr.msk.f32.gmra.mrb[20].mxu1 %vm122_vm0, %v6153_v7 }
  0x43   :  { %654 = vmatprep.mubr.f32.mxu1 %v9721_v3 }
  0x44   :  { %4415 = vmatmul.mubr.msk.f32.gmra.mrb[24].mxu0 %vm122_vm0, %v6073_v60 }
  0x45   :  { %361 = vmatprep.mubr.f32.mxu0 %v9721_v3 }
  0x46   :  { %4454 = vmatmul.mubr.msk.f32.gmra.mrb[22].mxu1 %vm122_vm0, %v6164_v8 }
  0x47   :  { %660 = vmatprep.mubr.f32.mxu1 %v9721_v3 }
  0x48   :  { %4416 = vmatmul.mubr.msk.f32.gmra.mrb[26].mxu0 %vm122_vm0, %v6097_v1 }
  0x49   :  { %367 = vmatprep.mubr.f32.mxu0 %v9721_v3 }
  0x4a   :  { %4455 = vmatmul.mubr.msk.f32.gmra.mrb[24].mxu1 %vm122_vm0, %v6175_v9 }
  0x4b   :  { %666 = vmatprep.mubr.f32.mxu1 %v9721_v3 }
  0x4c   :  { %4417 = vmatmul.mubr.msk.f32.gmra.mrb[28].mxu0 %vm122_vm0, %v6109_v2 }
  0x4d   :  { %373 = vmatprep.mubr.f32.mxu0 %v9721_v3 }
  0x4e   :  { %4456 = vmatmul.mubr.msk.f32.gmra.mrb[26].mxu1 %vm122_vm0, %v6186_v10 }
  0x4f   :  { %672 = vmatprep.mubr.f32.mxu1 %v9721_v3 }
  0x50   :  { %4418 = vmatmul.mubr.msk.f32.gmra.mrb[30].mxu0 %vm122_vm0, %v6120_v4 }
  0x51   :  { %379 = vmatprep.mubr.f32.mxu0 %v9721_v3 }
  0x52   :  { %4457 = vmatmul.mubr.msk.f32.gmra.mrb[28].mxu1 %vm122_vm0, %v6197_v11 }
  0x53   :  { %678 = vmatprep.mubr.f32.mxu1 %v9721_v3 }
  0x54   :  { %4419 = vmatmul.mubr.msk.f32.gmra.mrb[32].mxu0 %vm122_vm0, %v6131_v5 }
  0x55   :  { %385 = vmatprep.mubr.f32.mxu0 %v9721_v3 }
  0x56   :  { %4458 = vmatmul.mubr.msk.f32.gmra.mrb[30].mxu1 %vm122_vm0, %v6208_v12 }
  0x57   :  { %684 = vmatprep.mubr.f32.mxu1 %v9721_v3 }
  0x58   :  { %4420 = vmatmul.mubr.msk.f32.gmra.mrb[34].mxu0 %vm122_vm0, %v6142_v6 }
  0x59   :  { %391 = vmatprep.mubr.f32.mxu0 %v9721_v3 }
  0x5a   :  { %4459 = vmatmul.mubr.msk.f32.gmra.mrb[32].mxu1 %vm122_vm0, %v6219_v13 }
  0x5b   :  { %690 = vmatprep.mubr.f32.mxu1 %v9721_v3 }
  0x5c   :  { %4421 = vmatmul.mubr.msk.f32.gmra.mrb[36].mxu0 %vm122_vm0, %v6153_v7 }
  0x5d   :  { %397 = vmatprep.mubr.f32.mxu0 %v9721_v3 }
  0x5e   :  { %4460 = vmatmul.mubr.msk.f32.gmra.mrb[34].mxu1 %vm122_vm0, %v6230_v14 }
  0x5f   :  { %696 = vmatprep.mubr.f32.mxu1 %v9721_v3 }
  0x60   :  { %4422 = vmatmul.mubr.msk.f32.gmra.mrb[38].mxu0 %vm122_vm0, %v6164_v8 }
  0x61   :  { %403 = vmatprep.mubr.f32.mxu0 %v9721_v3 }
  0x62   :  { %4461 = vmatmul.mubr.msk.f32.gmra.mrb[36].mxu1 %vm122_vm0, %v6241_v15 }
  0x63   :  { %702 = vmatprep.mubr.f32.mxu1 %v9721_v3 }
  0x64   :  { %4423 = vmatmul.mubr.msk.f32.gmra.mrb[40].mxu0 %vm122_vm0, %v6175_v9 }
  0x65   :  { %409 = vmatprep.mubr.f32.mxu0 %v9721_v3 }
  0x66   :  { %4462 = vmatmul.mubr.msk.f32.gmra.mrb[38].mxu1 %vm122_vm0, %v6252_v16 }
  0x67   :  { %708 = vmatprep.mubr.f32.mxu1 %v9721_v3 }
  0x68   :  { %4424 = vmatmul.mubr.msk.f32.gmra.mrb[42].mxu0 %vm122_vm0, %v6186_v10 }
  0x69   :  { %415 = vmatprep.mubr.f32.mxu0 %v9721_v3 }
  0x6a   :  { %4463 = vmatmul.mubr.msk.f32.gmra.mrb[40].mxu1 %vm122_vm0, %v6263_v17 }
  0x6b   :  { %714 = vmatprep.mubr.f32.mxu1 %v9721_v3 }
  0x6c   :  { %4425 = vmatmul.mubr.msk.f32.gmra.mrb[44].mxu0 %vm122_vm0, %v6197_v11 }
  0x6d   :  { %421 = vmatprep.mubr.f32.mxu0 %v9721_v3 }
  0x6e   :  { %4464 = vmatmul.mubr.msk.f32.gmra.mrb[42].mxu1 %vm122_vm0, %v6274_v18 }
  0x6f   :  { %720 = vmatprep.mubr.f32.mxu1 %v9721_v3 }
  0x70   :  { %4426 = vmatmul.mubr.msk.f32.gmra.mrb[46].mxu0 %vm122_vm0, %v6208_v12 }
  0x71   :  { %427 = vmatprep.mubr.f32.mxu0 %v9721_v3 }
  0x72   :  { %4465 = vmatmul.mubr.msk.f32.gmra.mrb[44].mxu1 %vm122_vm0, %v6285_v19 }
  0x73   :  { %726 = vmatprep.mubr.f32.mxu1 %v9721_v3 }
  0x74   :  { %4427 = vmatmul.mubr.msk.f32.gmra.mrb[48].mxu0 %vm122_vm0, %v6219_v13 }
  0x75   :  { %433 = vmatprep.mubr.f32.mxu0 %v9721_v3 }
  0x76   :  { %4466 = vmatmul.mubr.msk.f32.gmra.mrb[46].mxu1 %vm122_vm0, %v6296_v20 }
  0x78   :  { %4428 = vmatmul.mubr.msk.f32.gmra.mrb[50].mxu0 %vm122_vm0, %v6230_v14 }
  0x79   :  { %439 = vmatprep.mubr.f32.mxu0 %v9721_v3 }
  0x7c   :  { %4429 = vmatmul.mubr.msk.f32.gmra.mrb[52].mxu0 %vm122_vm0, %v6241_v15 }
  0x7d   :  { %445 = vmatprep.mubr.f32.mxu0 %v9721_v3 }
  0x80   :  { %4430 = vmatmul.mubr.msk.f32.gmra.mrb[54].mxu0 %vm122_vm0, %v6252_v16 }
  0x81   :  { %451 = vmatprep.mubr.f32.mxu0 %v9721_v3 }
  0x84   :  { %4431 = vmatmul.mubr.msk.f32.gmra.mrb[56].mxu0 %vm122_vm0, %v6263_v17 }
  0x85   :  { %457 = vmatprep.mubr.f32.mxu0 %v9721_v3 }
  0x88   :  { %4432 = vmatmul.mubr.msk.f32.gmra.mrb[58].mxu0 %vm122_vm0, %v6274_v18 }
  0x89   :  { %463 = vmatprep.mubr.f32.mxu0 %v9721_v3 }
  0x8c   :  { %4433 = vmatmul.mubr.msk.f32.gmra.mrb[60].mxu0 %vm122_vm0, %v6285_v19 }
  0x8d   :  { %469 = vmatprep.mubr.f32.mxu0 %v9721_v3 }
  0x90   :  { %4434 = vmatmul.mubr.msk.f32.gmra.mrb[62].mxu0 %vm122_vm0, %v6296_v20 }
  0x91   :  { %540 = vmatprep.mubr.f32.mxu0 %v9721_v3 }
  0x94   :  { %4435 = vmatmul.mubr.msk.f32.vlgmr.msra.gmra.mrb[64].mxu0 %vm122_vm0, %v5976_v42 }
  0x95   :  { %546 = vmatprep.mubr.f32.mxu0 %v9721_v3  ;;  %4830 = vmatpush3.bf16.msra.mxu0 %v6086_v63  ;;  %v4915_v63 = vpack.c.bf16 %v1993_v62, %v1991_v61  ;;  %v1936_v61 = vld [vmem:[%s9714_s4 + $0x90] sm:$0xff]  ;;  %v1939_v62 = vld [vmem:[%s9714_s4 + $0xa8] sm:$0xff] }
  0x96   :  { %4832 = vmatprep.subr.bf16.mxu0 %v4831_v23 }
  0x97   :  { %4916 = vmatprep.subr.bf16.mxu1 %v4915_v63  ;;  %v1941_v63 = vld [vmem:[%s9714_s4 + $0xb8] sm:$0xff] }
  0x98   :  { %4436 = vmatmul.mubr.msk.f32.gmra.mrb[66].mxu0 %vm122_vm0, %v5996_v49 }
  0x99   :  { %552 = vmatprep.mubr.f32.mxu0 %v9721_v3  ;;  %4834 = vmatpush3.bf16.msra.mxu0 %v4831_v23  ;;  %v4847_v23 = vpack.c.bf16 %v1925_v50, %v1923_v48  ;;  %v1934_v48 = vld [vmem:[%s9714_s4 + $0x80] sm:$0xff] }
  0x9a   :  { %4836 = vmatprep.subr.bf16.mxu0 %v4835_v26 }
  0x9c   :  { %4437 = vmatmul.mubr.msk.f32.gmra.mrb[68].mxu0 %vm122_vm0, %v6004_v51 }
  0x9d   :  { %558 = vmatprep.mubr.f32.mxu0 %v9721_v3  ;;  %4838 = vmatpush3.bf16.msra.mxu0 %v4835_v26  ;;  %v1992_v26 = vld [vmem:[%s9714_s4 + $0x250] sm:$0xff] }
  0x9e   :  { %4840 = vmatprep.subr.bf16.mxu0 %v4839_v29  ;;  %v4917_v28 = vpack.c.bf16 %v1992_v26, %v1990_v25  ;;  %v1940_v25 = vld [vmem:[%s9714_s4 + $0xb0] sm:$0xff]  ;;  %v1943_v26 = vld [vmem:[%s9714_s4 + $0xc8] sm:$0xff] }
  0xa0   :  { %4438 = vmatmul.mubr.msk.f32.gmra.mrb[70].mxu0 %vm122_vm0, %v6020_v53  ;;  %4918 = vmatpush1.bf16.msra.mxu1 %v4917_v28 }
  0xa1   :  { %564 = vmatprep.mubr.f32.mxu0 %v9721_v3  ;;  %4842 = vmatpush3.bf16.msra.mxu0 %v4839_v29  ;;  %v4849_v29 = vpack.c.bf16 %v1924_v24, %v1922_v22  ;;  %v4861_v22 = vpack.c.bf16 %v1936_v61, %v1934_v48  ;;  %v4863_v24 = vpack.c.bf16 %v1941_v63, %v1939_v62  ;;  %v2010_v48 = vld [vmem:[%s9714_s4 + $0x2e0] sm:$0xff]  ;;  %v2012_v61 = vld [vmem:[%s9714_s4 + $0x2f0] sm:$0xff] }
  0xa2   :  { %4844 = vmatprep.subr.bf16.mxu0 %v4843_v32  ;;  %v1928_v32 = vld [vmem:[%s9714_s4 + $0x50] sm:$0xff]  ;;  %v1954_v63 = vld [vmem:[%s9714_s4 + $0x120] sm:$0xff] }
  0xa3   :  { %v4853_v38 = vpack.c.bf16 %v1928_v32, %v1926_v30 }
  0xa4   :  { %4439 = vmatmul.mubr.msk.f32.gmra.mrb[72].mxu0 %vm122_vm0, %v6036_v55 }
  0xa5   :  { %570 = vmatprep.mubr.f32.mxu0 %v9721_v3 }
  0xa8   :  { %4440 = vmatmul.mubr.msk.f32.gmra.mrb[74].mxu0 %vm122_vm0, %v6052_v57 }
  0xa9   :  { %576 = vmatprep.mubr.f32.mxu0 %v9721_v3 }
  0xac   :  { %4441 = vmatmul.mubr.msk.f32.gmra.mrb[76].mxu0 %vm122_vm0, %v6068_v59 }
  0xad   :  { %582 = vmatprep.mubr.f32.mxu0 %v9721_v3 }
  0xb0   :  { %4442 = vmatmul.mubr.msk.f32.gmra.mrb[78].mxu0 %vm122_vm0, %v6092_v0 }
  0xb1   :  { %4747 = vmatprep.mubr.msk.f32.mxu0 %vm122_vm0, %v5976_v42  ;;  %v1927_v42 = vld [vmem:[%s9714_s4 + $0x48] sm:$0xff] }
  0xb2   :  { %v4851_v31 = vpack.c.bf16 %v1929_v27, %v1927_v42  ;;  %v2005_v42 = vld [vmem:[%s9714_s4 + $0x2b8] sm:$0xff]  ;;  %v2002_v27 = vld [vmem:[%s9714_s4 + $0x2a0] sm:$0xff] }
  0xb4   :  { %4748 = vmatmul.mubr.msk.f32.vlgmr.msra.gmra.mrb[80].mxu0 %vm122_vm0, %v5996_v49  ;;  %v1933_v49 = vld [vmem:[%s9714_s4 + $0x78] sm:$0xff] }
  0xb5   :  { %4846 = vmatpush1.bf16.msra.mxu0 %v4845_v21  ;;  %4750 = vmatprep.mubr.msk.f32.mxu0 %vm122_vm0, %v6004_v51  ;;  %v1995_v51 = vld [vmem:[%s9714_s4 + $0x268] sm:$0xff]  ;;  %v4855_v40 = vpack.c.bf16 %v1933_v49, %v1931_v33  ;;  %v1942_v33 = vld [vmem:[%s9714_s4 + $0xc0] sm:$0xff] }
  0xb6   :  { %4848 = vmatprep.subr.bf16.mxu0 %v4847_v23  ;;  %v4919_v36 = vpack.c.bf16 %v1997_v34, %v1995_v51  ;;  %v1938_v23 = vld [vmem:[%s9714_s4 + $0xa0] sm:$0xff]  ;;  %v1947_v49 = vld [vmem:[%s9714_s4 + $0xe8] sm:$0xff]  ;;  %v2009_v34 = vld [vmem:[%s9714_s4 + $0x2d8] sm:$0xff] }
  0xb7   :  { %v4865_v30 = vpack.c.bf16 %v1940_v25, %v1938_v23  ;;  %v2007_v51 = vld [vmem:[%s9714_s4 + $0x2c8] sm:$0xff]  ;;  %v2017_v23 = vld [vmem:[%s9714_s4 + $0x318] sm:$0xff] }
  0xb8   :  { %4751 = vmatmul.mubr.msk.f32.gmra.mrb[82].mxu0 %vm122_vm0, %v6020_v53  ;;  %v1932_v53 = vld [vmem:[%s9714_s4 + $0x70] sm:$0xff]  ;;  %4920 = vmatprep.subr.bf16.mxu1 %v4919_v36  ;;  %v4931_v35 = vpack.c.bf16 %v2009_v34, %v2007_v51 }
  0xb9   :  { %4850 = vmatpush1.bf16.msra.mxu0 %v4849_v29  ;;  %4753 = vmatprep.mubr.msk.f32.mxu0 %vm122_vm0, %v6036_v55  ;;  %v1937_v55 = vld [vmem:[%s9714_s4 + $0x98] sm:$0xff]  ;;  %v4857_v47 = vpack.c.bf16 %v1932_v53, %v1930_v41  ;;  %v2004_v29 = vld [vmem:[%s9714_s4 + $0x2b0] sm:$0xff] }
  0xba   :  { %4852 = vmatprep.subr.bf16.mxu0 %v4851_v31  ;;  %4922 = vmatpush1.bf16.msra.mxu1 %v4921_v39  ;;  %v4859_v50 = vpack.c.bf16 %v1937_v55, %v1935_v43  ;;  %v4929_v31 = vpack.c.bf16 %v2004_v29, %v2002_v27  ;;  %v1948_v39 = vld [vmem:[%s9714_s4 + $0xf0] sm:$0xff]  ;;  %v1953_v41 = vld [vmem:[%s9714_s4 + $0x118] sm:$0xff]  ;;  %v1950_v55 = vld [vmem:[%s9714_s4 + $0x100] sm:$0xff]  ;;  %v97_v29 = vlaneseq }
  0xbb   :  { %4924 = vmatprep.subr.bf16.mxu1 %v4923_v46  ;;  %v4873_v43 = vpack.c.bf16 %v1948_v39, %v1946_v37  ;;  %v1955_v46 = vld [vmem:[%s9714_s4 + $0x128] sm:$0xff]  ;;  %v1965_v27 = vld [vmem:[%s9714_s4 + $0x178] sm:$0xff]  ;;  %v1966_v39 = vld [vmem:[%s9714_s4 + $0x180] sm:$0xff] }
  0xbc   :  { %4754 = vmatmul.mubr.msk.f32.gmra.mrb[84].mxu0 %vm122_vm0, %v6052_v57  ;;  %v1998_v57 = vld [vmem:[%s9714_s4 + $0x280] sm:$0xff]  ;;  %v6674_v51 = vshrl.u32 %v97_v29, 7 }
  0xbd   :  { %4854 = vmatpush1.bf16.msra.mxu0 %v4853_v38  ;;  %4756 = vmatprep.mubr.msk.f32.mxu0 %vm122_vm0, %v6068_v59  ;;  %v2000_v59 = vld [vmem:[%s9714_s4 + $0x290] sm:$0xff] }
  0xbe   :  { %4856 = vmatprep.subr.bf16.mxu0 %v4855_v40  ;;  %v4925_v21 = vpack.c.bf16 %v2000_v59, %v1998_v57  ;;  %v1951_v40 = vld [vmem:[%s9714_s4 + $0x108] sm:$0xff]  ;;  %v4877_v57 = vpack.c.bf16 %v1952_v45, %v1950_v55  ;;  %v4937_v59 = vpack.c.bf16 %v2012_v61, %v2010_v48  ;;  %9771 = vst [vmem:[#allocation2_spill] sm:$0xff] %v6674_v51  ;;  %v9719_v55 = vsub.s32 1, %v6674_v51  ;;  %v1970_v45 = vld [vmem:[%s9714_s4 + $0x1a0] sm:$0xff] }
  0xbf   :  { %v4875_v44 = vpack.c.bf16 %v1953_v41, %v1951_v40  ;;  %v2025_v40 = vld [vmem:[%s9714_s4 + $0x358] sm:$0xff]  ;;  %v9720_v41 = vsub.s32 0, %v6674_v51 }
  0xc0   :  { %4757 = vmatmul.mubr.msk.f32.gmra.mrb[86].mxu0 %vm122_vm0, %v6092_v0  ;;  %v1945_v0 = vld [vmem:[%s9714_s4 + $0xd8] sm:$0xff]  ;;  %4926 = vmatpush1.bf16.msra.mxu1 %v4925_v21  ;;  %v1959_v21 = vld [vmem:[%s9714_s4 + $0x148] sm:$0xff] }
  0xc1   :  { %4858 = vmatpush1.bf16.msra.mxu0 %v4857_v47  ;;  %4759 = vmatprep.mubr.msk.f32.mxu0 %vm122_vm0, %v6009_v52  ;;  %v2003_v52 = vld [vmem:[%s9714_s4 + $0x2a8] sm:$0xff]  ;;  %v4867_v32 = vpack.c.bf16 %v1945_v0, %v1943_v26  ;;  %v2013_v47 = vld [vmem:[%s9714_s4 + $0x2f8] sm:$0xff]  ;;  %v1958_v26 = vld [vmem:[%s9714_s4 + $0x140] sm:$0xff] }
  0xc2   :  { %4860 = vmatprep.subr.bf16.mxu0 %v4859_v50  ;;  %v4927_v28 = vpack.c.bf16 %v2005_v42, %v2003_v52  ;;  %v1960_v52 = vld [vmem:[%s9714_s4 + $0x150] sm:$0xff]  ;;  %v1963_v42 = vld [vmem:[%s9714_s4 + $0x168] sm:$0xff] }
  0xc4   :  { %4760 = vmatmul.mubr.msk.f32.gmra.mrb[88].mxu0 %vm122_vm0, %v6025_v54  ;;  %v1944_v54 = vld [vmem:[%s9714_s4 + $0xd0] sm:$0xff]  ;;  %4928 = vmatprep.subr.bf16.mxu1 %v4927_v28 }
  0xc5   :  { %4862 = vmatpush1.bf16.msra.mxu0 %v4861_v22  ;;  %4762 = vmatprep.mubr.msk.f32.mxu0 %vm122_vm0, %v6041_v56  ;;  %v1949_v56 = vld [vmem:[%s9714_s4 + $0xf8] sm:$0xff]  ;;  %v4869_v36 = vpack.c.bf16 %v1944_v54, %v1942_v33  ;;  %v2015_v22 = vld [vmem:[%s9714_s4 + $0x308] sm:$0xff]  ;;  %v1964_v33 = vld [vmem:[%s9714_s4 + $0x170] sm:$0xff] }
  0xc6   :  { %4864 = vmatprep.subr.bf16.mxu0 %v4863_v24  ;;  %4930 = vmatpush1.bf16.msra.mxu1 %v4929_v31  ;;  %v4871_v38 = vpack.c.bf16 %v1949_v56, %v1947_v49  ;;  %v4939_v24 = vpack.c.bf16 %v2017_v23, %v2015_v22  ;;  %v1962_v31 = vld [vmem:[%s9714_s4 + $0x160] sm:$0xff]  ;;  %v1969_v54 = vld [vmem:[%s9714_s4 + $0x198] sm:$0xff] }
  0xc7   :  { %4932 = vmatprep.subr.bf16.mxu1 %v4931_v35  ;;  %v2021_v49 = vld [vmem:[%s9714_s4 + $0x338] sm:$0xff]  ;;  %v2018_v56 = vld [vmem:[%s9714_s4 + $0x320] sm:$0xff]  ;;  %v2020_v35 = vld [vmem:[%s9714_s4 + $0x330] sm:$0xff] }
  0xc8   :  { %4763 = vmatmul.mubr.msk.f32.gmra.mrb[90].mxu0 %vm122_vm0, %v6057_v58  ;;  %v2006_v58 = vld [vmem:[%s9714_s4 + $0x2c0] sm:$0xff]  ;;  %v4945_v37 = vpack.c.bf16 %v2020_v35, %v2018_v56 }
  0xc9   :  { %4866 = vmatpush1.bf16.msra.mxu0 %v4865_v30  ;;  %4765 = vmatprep.mubr.msk.f32.mxu0 %vm122_vm0, %v6073_v60  ;;  %v2008_v60 = vld [vmem:[%s9714_s4 + $0x2d0] sm:$0xff]  ;;  %v4885_v30 = vpack.c.bf16 %v1960_v52, %v1958_v26  ;;  %v2026_v22 = vld [vmem:[%s9714_s4 + $0x360] sm:$0xff] }
  0xca   :  { %4868 = vmatprep.subr.bf16.mxu0 %v4867_v32  ;;  %v4933_v53 = vpack.c.bf16 %v2008_v60, %v2006_v58  ;;  %v4887_v32 = vpack.c.bf16 %v1965_v27, %v1963_v42  ;;  %v1971_v58 = vld [vmem:[%s9714_s4 + $0x1a8] sm:$0xff]  ;;  %v2028_v26 = vld [vmem:[%s9714_s4 + $0x370] sm:$0xff] }
  0xcb   :  { %v2023_v60 = vld [vmem:[%s9714_s4 + $0x348] sm:$0xff]  ;;  %v1980_v27 = vld [vmem:[%s9714_s4 + $0x1f0] sm:$0xff] }
  0xcc   :  { %4766 = vmatmul.mubr.msk.f32.gmra.mrb[92].mxu0 %vm122_vm0, %v6097_v1  ;;  %v1957_v1 = vld [vmem:[%s9714_s4 + $0x138] sm:$0xff]  ;;  %4934 = vmatpush1.bf16.msra.mxu1 %v4933_v53  ;;  %v4947_v53 = vpack.c.bf16 %v2025_v40, %v2023_v60  ;;  %v2034_v60 = vld [vmem:[%s9714_s4 + $0x3a0] sm:$0xff]  ;;  %v2036_v40 = vld [vmem:[%s9714_s4 + $0x3b0] sm:$0xff] }
  0xcd   :  { %4870 = vmatpush1.bf16.msra.mxu0 %v4869_v36  ;;  %4768 = vmatprep.mubr.msk.f32.mxu0 %vm122_vm0, %v6109_v2  ;;  %v2011_v2 = vld [vmem:[%s9714_s4 + $0x2e8] sm:$0xff]  ;;  %v4879_v62 = vpack.c.bf16 %v1957_v1, %v1955_v46  ;;  %v4889_v36 = vpack.c.bf16 %v1964_v33, %v1962_v31  ;;  %v2022_v1 = vld [vmem:[%s9714_s4 + $0x340] sm:$0xff] }
  0xce   :  { %4872 = vmatprep.subr.bf16.mxu0 %v4871_v38  ;;  %v4935_v50 = vpack.c.bf16 %v2013_v47, %v2011_v2  ;;  %v1975_v2 = vld [vmem:[%s9714_s4 + $0x1c8] sm:$0xff]  ;;  %v1977_v47 = vld [vmem:[%s9714_s4 + $0x1d8] sm:$0xff] }
  0xd0   :  { %4769 = vmatmul.mubr.msk.f32.gmra.mrb[94].mxu0 %vm122_vm0, %v6120_v4  ;;  %v1956_v4 = vld [vmem:[%s9714_s4 + $0x130] sm:$0xff]  ;;  %4936 = vmatprep.subr.bf16.mxu1 %v4935_v50 }
  0xd1   :  { %4874 = vmatpush1.bf16.msra.mxu0 %v4873_v43  ;;  %4771 = vmatprep.mubr.msk.f32.mxu0 %vm122_vm0, %v6131_v5  ;;  %v1961_v5 = vld [vmem:[%s9714_s4 + $0x158] sm:$0xff]  ;;  %v4881_v25 = vpack.c.bf16 %v1956_v4, %v1954_v63  ;;  %v6705_v43 = vld [vmem:[%s9715_s3] sm:$0x1f]  ;;  %v1979_v63 = vld [vmem:[%s9714_s4 + $0x1e8] sm:$0xff] }
  0xd2   :  { %4876 = vmatprep.subr.bf16.mxu0 %v4875_v44  ;;  %4938 = vmatpush1.bf16.msra.mxu1 %v4937_v59  ;;  %v4883_v0 = vpack.c.bf16 %v1961_v5, %v1959_v21  ;;  %v6731_v50 = vrot.slane %v6705_v43, %v9720_v41  ;;  %v6738_v61 = vrot.slane %v6705_v43, %v9719_v55  ;;  %v1974_v59 = vld [vmem:[%s9714_s4 + $0x1c0] sm:$0xff]  ;;  %v1981_v4 = vld [vmem:[%s9714_s4 + $0x1f8] sm:$0xff]  ;;  %v2027_v21 = vld [vmem:[%s9714_s4 + $0x368] sm:$0xff] }
  0xd3   :  { %4940 = vmatprep.subr.bf16.mxu1 %v4939_v24  ;;  %v2029_v5 = vld [vmem:[%s9714_s4 + $0x378] sm:$0xff]  ;;  %v4903_v42 = vpack.c.bf16 %v1981_v4, %v1979_v63 }
  0xd4   :  { %4772 = vmatmul.mubr.msk.f32.gmra.mrb[96].mxu0 %vm122_vm0, %v6142_v6  ;;  %v2014_v6 = vld [vmem:[%s9714_s4 + $0x300] sm:$0xff] }
  0xd5   :  { %4878 = vmatpush1.bf16.msra.mxu0 %v4877_v57  ;;  %4774 = vmatprep.mubr.msk.f32.mxu0 %vm122_vm0, %v6153_v7  ;;  %v2016_v7 = vld [vmem:[%s9714_s4 + $0x310] sm:$0xff] }
  0xd6   :  { %4880 = vmatprep.subr.bf16.mxu0 %v4879_v62  ;;  %v4941_v28 = vpack.c.bf16 %v2016_v7, %v2014_v6  ;;  %v4899_v62 = vpack.c.bf16 %v1977_v47, %v1975_v2  ;;  %v4953_v6 = vpack.c.bf16 %v2028_v26, %v2026_v22  ;;  %v2043_v26 = vld [vmem:[%s9714_s4 + $0x3e8] sm:$0xff] }
  0xd8   :  { %4775 = vmatmul.mubr.msk.f32.gmra.mrb[98].mxu0 %vm122_vm0, %v6164_v8  ;;  %v1967_v8 = vld [vmem:[%s9714_s4 + $0x188] sm:$0xff]  ;;  %4942 = vmatpush1.bf16.msra.mxu1 %v4941_v28 }
  0xd9   :  { %4882 = vmatpush1.bf16.msra.mxu0 %v4881_v25  ;;  %4777 = vmatprep.mubr.msk.f32.mxu0 %vm122_vm0, %v6175_v9  ;;  %v2019_v9 = vld [vmem:[%s9714_s4 + $0x328] sm:$0xff]  ;;  %v4891_v38 = vpack.c.bf16 %v1969_v54, %v1967_v8  ;;  %v4951_v25 = vpack.c.bf16 %v2029_v5, %v2027_v21  ;;  %v2030_v54 = vld [vmem:[%s9714_s4 + $0x380] sm:$0xff] }
  0xda   :  { %4884 = vmatprep.subr.bf16.mxu0 %v4883_v0  ;;  %v4943_v34 = vpack.c.bf16 %v2021_v49, %v2019_v9  ;;  %v2032_v9 = vld [vmem:[%s9714_s4 + $0x390] sm:$0xff] }
  0xdb   :  { %v4957_v35 = vpack.c.bf16 %v2032_v9, %v2030_v54  ;;  %v111_v54 = vsub.s32 3, %v6674_v51 }
  0xdc   :  { %4778 = vmatmul.mubr.msk.f32.gmra.mrb[100].mxu0 %vm122_vm0, %v6186_v10  ;;  %v1968_v10 = vld [vmem:[%s9714_s4 + $0x190] sm:$0xff]  ;;  %4944 = vmatprep.subr.bf16.mxu1 %v4943_v34 }
  0xdd   :  { %4886 = vmatpush1.bf16.msra.mxu0 %v4885_v30  ;;  %4780 = vmatprep.mubr.msk.f32.mxu0 %vm122_vm0, %v6197_v11  ;;  %v1973_v11 = vld [vmem:[%s9714_s4 + $0x1b8] sm:$0xff]  ;;  %v4893_v44 = vpack.c.bf16 %v1968_v10, %v1966_v39 }
  0xde   :  { %4888 = vmatprep.subr.bf16.mxu0 %v4887_v32  ;;  %4946 = vmatpush1.bf16.msra.mxu1 %v4945_v37  ;;  %v4895_v46 = vpack.c.bf16 %v1973_v11, %v1971_v58  ;;  %v2033_v30 = vld [vmem:[%s9714_s4 + $0x398] sm:$0xff] }
  0xdf   :  { %4948 = vmatprep.subr.bf16.mxu1 %v4947_v53 }
  0xe0   :  { %4781 = vmatmul.mubr.msk.f32.gmra.mrb[102].mxu0 %vm122_vm0, %v6208_v12  ;;  %v1972_v12 = vld [vmem:[%s9714_s4 + $0x1b0] sm:$0xff] }
  0xe1   :  { %4890 = vmatpush1.bf16.msra.mxu0 %v4889_v36  ;;  %4783 = vmatprep.mubr.msk.f32.mxu0 %vm122_vm0, %v6219_v13  ;;  %v2024_v13 = vld [vmem:[%s9714_s4 + $0x350] sm:$0xff]  ;;  %v4897_v57 = vpack.c.bf16 %v1972_v12, %v1970_v45  ;;  %v4961_v45 = vpack.c.bf16 %v2036_v40, %v2034_v60 }
  0xe2   :  { %4892 = vmatprep.subr.bf16.mxu0 %v4891_v38  ;;  %v4949_v48 = vpack.c.bf16 %v2024_v13, %v2022_v1  ;;  %v2035_v38 = vld [vmem:[%s9714_s4 + $0x3a8] sm:$0xff]  ;;  %v2041_v13 = vld [vmem:[%s9714_s4 + $0x3d8] sm:$0xff] }
  0xe3   :  { %v2039_v1 = vld [vmem:[%s9714_s4 + $0x3c8] sm:$0xff] }
  0xe4   :  { %4784 = vmatmul.mubr.msk.f32.gmra.mrb[104].mxu0 %vm122_vm0, %v6230_v14  ;;  %v1976_v14 = vld [vmem:[%s9714_s4 + $0x1d0] sm:$0xff]  ;;  %4950 = vmatpush1.bf16.msra.mxu1 %v4949_v48 }
  0xe5   :  { %4894 = vmatpush1.bf16.msra.mxu0 %v4893_v44  ;;  %4786 = vmatprep.mubr.msk.f32.mxu0 %vm122_vm0, %v6241_v15  ;;  %v4901_v52 = vpack.c.bf16 %v1976_v14, %v1974_v59  ;;  %v2038_v59 = vld [vmem:[%s9714_s4 + $0x3c0] sm:$0xff] }
  0xe6   :  { %4896 = vmatprep.subr.bf16.mxu0 %v4895_v46  ;;  %4952 = vmatprep.subr.bf16.mxu1 %v4951_v25  ;;  %v107_v25 = vsub.s32 2, %v6674_v51 }
  0xe7   :  { %v285_v15 = vpop.f32.mrb[0].mxu0 }
  0xe8   :  { %v6764_v23 = vadd.f32 %v285_v15, %v6731_v50  ;;  %v287_v24 = vpop.f32.mrb[1].mxu0  ;;  %4787 = vmatmul.mubr.msk.f32.gmra.mrb[106].mxu0 %vm122_vm0, %v6252_v16  ;;  %v1978_v16 = vld [vmem:[%s9714_s4 + $0x1e0] sm:$0xff]  ;;  %4954 = vmatpush1.bf16.msra.mxu1 %v4953_v6 }
  0xe9   :  { %v6772_v0 = vadd.f32 %v287_v24, %v6738_v61  ;;  %4898 = vmatpush1.bf16.msra.mxu0 %v4897_v57  ;;  %4789 = vmatprep.mubr.msk.f32.mxu0 %vm122_vm0, %v6263_v17  ;;  %v2031_v17 = vld [vmem:[%s9714_s4 + $0x388] sm:$0xff]  ;;  %v4905_v34 = vpack.c.bf16 %v1980_v27, %v1978_v16  ;;  %v4963_v57 = vpack.c.bf16 %v2041_v13, %v2039_v1 }
  0xea   :  { %v1118_v7 = vmin.f32 %v6764_v23, 0.0  ;;  %4900 = vmatprep.subr.bf16.mxu0 %v4899_v62  ;;  %v4955_v8 = vpack.c.bf16 %v2033_v30, %v2031_v17  ;;  %v2040_v62 = vld [vmem:[%s9714_s4 + $0x3d0] sm:$0xff]  ;;  %vm958_vm2 = vcmp.gt.f32.partialorder %v6764_v23, 0.0 }
  0xeb   :  { %v1119_v28 = vmin.f32 %v6772_v0, 0.0  ;;  %v291_v29 = vpop.f32.mrb[2].mxu0  ;;  %v4965_v4 = vpack.c.bf16 %v2040_v62, %v2038_v59  ;;  %vm959_vm1 = vcmp.gt.f32.partialorder %v6772_v0, 0.0 }
  0xec   :  { %v1278_v31 = vmul.f32 1.442695, %v1118_v7  ;;  %v6791_v32 = vadd.f32 %v291_v29, %v6731_v50  ;;  %v293_v33 = vpop.f32.mrb[3].mxu0  ;;  %4790 = vmatmul.mubr.msk.f32.gmra.mrb[108].mxu0 %vm122_vm0, %v6274_v18  ;;  %4956 = vmatprep.subr.bf16.mxu1 %v4955_v8 }
  0xed   :  { %v1280_v49 = vmul.f32 1.442695, %v1119_v28  ;;  %v6802_v56 = vadd.f32 %v293_v33, %v6738_v61  ;;  %4902 = vmatpush1.bf16.msra.mxu0 %v4901_v52  ;;  %4792 = vmatprep.mubr.msk.f32.mxu0 %vm122_vm0, %v6285_v19  ;;  %v2037_v19 = vld [vmem:[%s9714_s4 + $0x3b8] sm:$0xff]  ;;  %v590_v15 = vpop.f32.mrb[0].mxu1 }
  0xee   :  { %5207 = vpow2.f32 %v1278_v31  ;;  %v1123_v18 = vmin.f32 %v6791_v32, 0.0  ;;  %4904 = vmatprep.subr.bf16.mxu0 %v4903_v42  ;;  %4958 = vmatpush1.bf16.msra.mxu1 %v4957_v35  ;;  %v4959_v11 = vpack.c.bf16 %v2037_v19, %v2035_v38  ;;  %v6849_v5 = vpop.f32.mrb[1].mxu1  ;;  %v2045_v52 = vld [vmem:[%s9714_s4 + $0x3f8] sm:$0xff]  ;;  %v6874_v35 = vrot.slane %v6705_v43, %v107_v25  ;;  %v2044_v25 = vld [vmem:[%s9714_s4 + $0x3f0] sm:$0xff] }
  0xef   :  { %5209 = vpow2.f32 %v1280_v49  ;;  %v1124_v36 = vmin.f32 %v6802_v56, 0.0  ;;  %v297_v37 = vpop.f32.mrb[4].mxu0  ;;  %v4967_v27 = vpack.c.bf16 %v2045_v52, %v2043_v26  ;;  %vm964_vm3 = vcmp.gt.f32.partialorder %v6802_v56, 0.0 }
  0xf0   :  { %v1288_v39 = vmul.f32 1.442695, %v1123_v18  ;;  %v6815_v10 = vadd.f32 %v297_v37, %v6731_v50  ;;  %v299_v58 = vpop.f32.mrb[5].mxu0  ;;  %4793 = vmatmul.mubr.msk.f32.gmra.mrb[110].mxu0 %vm122_vm0, %v6296_v20  ;;  %4960 = vmatprep.subr.bf16.mxu1 %v4959_v11  ;;  %v6896_v1 = vadd.f32 %v590_v15, %v6874_v35  ;;  %vm963_vm4 = vcmp.gt.f32.partialorder %v6791_v32, 0.0 }
  0xf1   :  { %v1290_v53 = vmul.f32 1.442695, %v1124_v36  ;;  %v6826_v44 = vadd.f32 %v299_v58, %v6738_v61  ;;  %4906 = vmatpush1.bf16.msra.mxu0 %v4905_v34  ;;  %v6865_v31 = vpop.f32.mrb[2].mxu1 }
  0xf2   :  { %5211 = vpow2.f32 %v1288_v39  ;;  %v1128_v46 = vmin.f32 %v6815_v10, 0.0  ;;  %4962 = vmatpush1.bf16.msra.mxu1 %v4961_v45  ;;  %v6869_v9 = vpop.f32.mrb[3].mxu1  ;;  %vm968_vm5 = vcmp.gt.f32.partialorder %v6815_v10, 0.0 }
  0xf3   :  { %5213 = vpow2.f32 %v1290_v53  ;;  %v1129_v20 = vmin.f32 %v6826_v44, 0.0  ;;  %v303_v12 = vpop.f32.mrb[6].mxu0  ;;  %4964 = vmatprep.subr.bf16.mxu1 %v4963_v57  ;;  %vm969_vm6 = vcmp.gt.f32.partialorder %v6826_v44, 0.0 }
  0xf4   :  { %v1298_v2 = vmul.f32 1.442695, %v1128_v46  ;;  %v6837_v47 = vadd.f32 %v303_v12, %v6731_v50  ;;  %v305_v48 = vpop.f32.mrb[7].mxu0 }
  0xf5   :  { %v1300_v14 = vmul.f32 1.442695, %v1129_v20  ;;  %v6846_v63 = vadd.f32 %v305_v48, %v6738_v61  ;;  %v6885_v53 = vpop.f32.mrb[4].mxu1  ;;  %v6889_v20 = vrot.slane %v6705_v43, %v111_v54 }
  0xf6   :  { %5215 = vpow2.f32 %v1298_v2  ;;  %v1133_v21 = vmin.f32 %v6837_v47, 0.0  ;;  %4966 = vmatpush1.bf16.msra.mxu1 %v4965_v4  ;;  %vm973_vm7 = vcmp.gt.f32.partialorder %v6837_v47, 0.0 }
  0xf7   :  { %5217 = vpow2.f32 %v1300_v14  ;;  %v1134_v22 = vmin.f32 %v6846_v63, 0.0  ;;  %v309_v24 = vpop.f32.mrb[8].mxu0  ;;  %4968 = vmatprep.subr.bf16.mxu1 %v4967_v27  ;;  %vm974_vm8 = vcmp.gt.f32.partialorder %v6846_v63, 0.0 }
  0xf8   :  { %v5208_v6 = vpop.eup %5207  ;;  %v1308_v7 = vmul.f32 1.442695, %v1133_v21  ;;  %v6860_v42 = vadd.f32 %v309_v24, %v6731_v50  ;;  %v311_v16 = vpop.f32.mrb[9].mxu0 }
  0xf9   :  { %v5210_v28 = vpop.eup %5209  ;;  %v4499_v29 = vadd.f32 -1.0, %v5208_v6  ;;  %v1310_v17 = vmul.f32 1.442695, %v1134_v22  ;;  %v6863_v30 = vadd.f32 %v311_v16, %v6738_v61  ;;  %v1160_v6 = vmin.f32 %v6896_v1, 0.0 }
  0xfa   :  { %5219 = vpow2.f32 %v1308_v7  ;;  %v1138_v33 = vmin.f32 %v6860_v42, 0.0  ;;  %v4500_v8 = vadd.f32 -1.0, %v5210_v28  ;;  %vm978_vm9 = vcmp.gt.f32.partialorder %v6860_v42, 0.0 }
  0xfb   :  { %5221 = vpow2.f32 %v1310_v17  ;;  %v1139_v49 = vmin.f32 %v6863_v30, 0.0  ;;  %v315_v34 = vpop.f32.mrb[10].mxu0  ;;  %v1758_v58 = vsel %vm958_vm2, %v6764_v23, %v4499_v29  ;;  %vm979_vm10 = vcmp.gt.f32.partialorder %v6863_v30, 0.0 }
  0xfc   :  { %v5212_v18 = vpop.eup %5211  ;;  %v1318_v36 = vmul.f32 1.442695, %v1138_v33  ;;  %v6878_v37 = vadd.f32 %v315_v34, %v6731_v50  ;;  %v317_v38 = vpop.f32.mrb[11].mxu0  ;;  %v1759_v19 = vsel %vm959_vm1, %v6772_v0, %v4500_v8 }
  0xfd   :  { %v5214_v39 = vpop.eup %5213  ;;  %v1320_v11 = vmul.f32 1.442695, %v1139_v49  ;;  %v6883_v60 = vadd.f32 %v317_v38, %v6738_v61  ;;  %2154 = vmatprep.mubr.f32.mxu0 %v1759_v19  ;;  %v4504_v40 = vadd.f32 -1.0, %v5212_v18  ;;  %v6891_v0 = vpop.f32.mrb[5].mxu1 }
  0xfe   :  { %5223 = vpow2.f32 %v1318_v36  ;;  %v1143_v45 = vmin.f32 %v6878_v37, 0.0  ;;  %2155 = vmatmul.mubr.f32.vlgmr.msra.gmra.mrb[112].mxu0 %v1758_v58  ;;  %v4505_v46 = vadd.f32 -1.0, %v5214_v39  ;;  %v6907_v21 = vpop.f32.mrb[6].mxu1  ;;  %v6940_v39 = vadd.f32 %v6849_v5, %v6889_v20 }
  0xff   :  { %5225 = vpow2.f32 %v1320_v11  ;;  %v1144_v23 = vmin.f32 %v6883_v60, 0.0  ;;  %v321_v12 = vpop.f32.mrb[12].mxu0  ;;  %v1763_v4 = vsel %vm963_vm4, %v6791_v32, %v4504_v40  ;;  %v6917_v26 = vpop.f32.mrb[7].mxu1  ;;  %vm984_vm11 = vcmp.gt.f32.partialorder %v6883_v60, 0.0 }
 0x100   :  { %v5216_v13 = vpop.eup %5215  ;;  %v1328_v2 = vmul.f32 1.442695, %v1143_v45  ;;  %v6899_v48 = vadd.f32 %v321_v12, %v6731_v50  ;;  %v323_v57 = vpop.f32.mrb[13].mxu0  ;;  %v1764_v43 = vsel %vm964_vm3, %v6802_v56, %v4505_v46  ;;  %v2042_v56 = vld [vmem:[%s9714_s4 + $0x3e0] sm:$0xff]  ;;  %vm983_vm12 = vcmp.gt.f32.partialorder %v6878_v37, 0.0 }
 0x101   :  { %v5218_v59 = vpop.eup %5217  ;;  %v1330_v62 = vmul.f32 1.442695, %v1144_v23  ;;  %v6904_v14 = vadd.f32 %v323_v57, %v6738_v61  ;;  %2160 = vmatprep.mubr.f32.mxu0 %v1764_v43  ;;  %v4509_v15 = vadd.f32 -1.0, %v5216_v13  ;;  %v4969_v34 = vpack.c.bf16 %v2044_v25, %v2042_v56  ;;  %v6930_v18 = vpop.f32.mrb[8].mxu1 }
 0x102   :  { %5227 = vpow2.f32 %v1328_v2  ;;  %v1148_v22 = vmin.f32 %v6899_v48, 0.0  ;;  %2161 = vmatmul.mubr.f32.gmra.mrb[114].mxu0 %v1763_v4  ;;  %v4510_v24 = vadd.f32 -1.0, %v5218_v59  ;;  %v1362_v23 = vmul.f32 1.442695, %v1160_v6 }
 0x103   :  { %5229 = vpow2.f32 %v1330_v62  ;;  %v1149_v32 = vmin.f32 %v6904_v14, 0.0  ;;  %v327_v52 = vpop.f32.mrb[14].mxu0  ;;  %v1768_v17 = vsel %vm968_vm5, %v6815_v10, %v4509_v15  ;;  %4970 = vmatpush1.bf16.msra.mxu1 %v4969_v34  ;;  %vm989_vm13 = vcmp.gt.f32.partialorder %v6904_v14, 0.0 }
 0x104   :  { %v5220_v7 = vpop.eup %5219  ;;  %v1338_v16 = vmul.f32 1.442695, %v1148_v22  ;;  %v6923_v27 = vadd.f32 %v327_v52, %v6731_v50  ;;  %v329_v28 = vpop.f32.mrb[15].mxu0  ;;  %v1769_v29 = vsel %vm969_vm6, %v6826_v44, %v4510_v24  ;;  %vm988_vm14 = vcmp.gt.f32.partialorder %v6899_v48, 0.0 }
 0x105   :  { %v5222_v33 = vpop.eup %5221  ;;  %v1340_v8 = vmul.f32 1.442695, %v1149_v32  ;;  %v6928_v54 = vadd.f32 %v329_v28, %v6738_v61  ;;  %2166 = vmatprep.mubr.f32.mxu0 %v1769_v29  ;;  %v4514_v49 = vadd.f32 -1.0, %v5220_v7  ;;  %v6934_v44 = vpop.f32.mrb[9].mxu1 }
 0x106   :  { %5231 = vpow2.f32 %v1338_v16  ;;  %v1153_v36 = vmin.f32 %v6923_v27, 0.0  ;;  %2167 = vmatmul.mubr.f32.gmra.mrb[116].mxu0 %v1768_v17  ;;  %v4515_v38 = vadd.f32 -1.0, %v5222_v33  ;;  %v6952_v43 = vpop.f32.mrb[10].mxu1  ;;  %vm993_vm1 = vcmp.gt.f32.partialorder %v6923_v27, 0.0 }
 0x107   :  { %5233 = vpow2.f32 %v1340_v8  ;;  %v1154_v10 = vmin.f32 %v6928_v54, 0.0  ;;  %v333_v19 = vpop.f32.mrb[16].mxu0  ;;  %v1773_v5 = vsel %vm973_vm7, %v6837_v47, %v4514_v49  ;;  %v1161_v47 = vmin.f32 %v6940_v39, 0.0 }
 0x108   :  { %v5224_v58 = vpop.eup %5223  ;;  %v1348_v11 = vmul.f32 1.442695, %v1153_v36  ;;  %v6943_v40 = vadd.f32 %v333_v19, %v6731_v50  ;;  %v335_v45 = vpop.f32.mrb[17].mxu0  ;;  %v1774_v46 = vsel %vm974_vm8, %v6846_v63, %v4515_v38  ;;  %vm994_vm15 = vcmp.gt.f32.partialorder %v6928_v54, 0.0 }
 0x109   :  { %v5226_v12 = vpop.eup %5225  ;;  %v1350_v13 = vmul.f32 1.442695, %v1154_v10  ;;  %v6947_v2 = vadd.f32 %v335_v45, %v6738_v61  ;;  %2172 = vmatprep.mubr.f32.mxu0 %v1774_v46  ;;  %v4519_v57 = vadd.f32 -1.0, %v5224_v58  ;;  %v6956_v63 = vpop.f32.mrb[11].mxu1  ;;  %v1364_v19 = vmul.f32 1.442695, %v1161_v47 }
 0x10a   :  { %5235 = vpow2.f32 %v1348_v11  ;;  %v1158_v59 = vmin.f32 %v6943_v40, 0.0  ;;  %2173 = vmatmul.mubr.f32.gmra.mrb[118].mxu0 %v1773_v5  ;;  %v4520_v62 = vadd.f32 -1.0, %v5226_v12  ;;  %v6971_v29 = vpop.f32.mrb[12].mxu1  ;;  %vm998_vm3 = vcmp.gt.f32.partialorder %v6943_v40, 0.0 }
 0x10b   :  { %5237 = vpow2.f32 %v1350_v13  ;;  %v1159_v4 = vmin.f32 %v6947_v2, 0.0  ;;  %v339_v15 = vpop.f32.mrb[18].mxu0  ;;  %v1778_v16 = vsel %vm978_vm9, %v6860_v42, %v4519_v57  ;;  %vm999_vm2 = vcmp.gt.f32.partialorder %v6947_v2, 0.0 }
 0x10c   :  { %v5228_v22 = vpop.eup %5227  ;;  %v1358_v24 = vmul.f32 1.442695, %v1158_v59  ;;  %v6962_v56 = vadd.f32 %v339_v15, %v6731_v50  ;;  %v341_v25 = vpop.f32.mrb[19].mxu0  ;;  %v1779_v32 = vsel %vm979_vm10, %v6863_v30, %v4520_v62  ;;  %5239 = vpow2.f32 %v1362_v23 }
 0x10d   :  { %v5230_v52 = vpop.eup %5229  ;;  %v1360_v6 = vmul.f32 1.442695, %v1159_v4  ;;  %v6966_v7 = vadd.f32 %v341_v25, %v6738_v61  ;;  %2178 = vmatprep.mubr.f32.mxu0 %v1779_v32  ;;  %v4524_v28 = vadd.f32 -1.0, %v5228_v22  ;;  %v6974_v30 = vpop.f32.mrb[13].mxu1 }
 0x10e   :  { %5241 = vpow2.f32 %v1358_v24  ;;  %v1163_v17 = vmin.f32 %v6962_v56, 0.0  ;;  %2179 = vmatmul.mubr.f32.gmra.mrb[120].mxu0 %v1778_v16  ;;  %v4525_v33 = vadd.f32 -1.0, %v5230_v52  ;;  %v6987_v12 = vpop.f32.mrb[14].mxu1  ;;  %vm1003_vm5 = vcmp.gt.f32.partialorder %v6962_v56, 0.0 }
 0x10f   :  { %5243 = vpow2.f32 %v1360_v6  ;;  %v1164_v8 = vmin.f32 %v6966_v7, 0.0  ;;  %v345_v49 = vpop.f32.mrb[20].mxu0  ;;  %v1783_v46 = vsel %vm983_vm12, %v6878_v37, %v4524_v28  ;;  %v6990_v57 = vpop.f32.mrb[15].mxu1  ;;  %vm1004_vm4 = vcmp.gt.f32.partialorder %v6966_v7, 0.0 }
 0x110   :  { %v5232_v34 = vpop.eup %5231  ;;  %v1368_v42 = vmul.f32 1.442695, %v1163_v17  ;;  %v6980_v36 = vadd.f32 %v345_v49, %v6731_v50  ;;  %v347_v38 = vpop.f32.mrb[21].mxu0  ;;  %v1784_v10 = vsel %vm984_vm11, %v6883_v60, %v4525_v33  ;;  %v2049_v33 = vld [vmem:[%s9714_s4 + $0x418] sm:$0xff] }
 0x111   :  { %v5234_v58 = vpop.eup %5233  ;;  %v1370_v11 = vmul.f32 1.442695, %v1164_v8  ;;  %v6984_v45 = vadd.f32 %v347_v38, %v6738_v61  ;;  %2184 = vmatprep.mubr.f32.mxu0 %v1784_v10  ;;  %v4529_v23 = vadd.f32 -1.0, %v5232_v34  ;;  %v7003_v6 = vpop.f32.mrb[16].mxu1 }
 0x112   :  { %5245 = vpow2.f32 %v1368_v42  ;;  %v1168_v13 = vmin.f32 %v6980_v36, 0.0  ;;  %2185 = vmatmul.mubr.f32.gmra.mrb[122].mxu0 %v1783_v46  ;;  %v4530_v5 = vadd.f32 -1.0, %v5234_v58  ;;  %v7014_v8 = vpop.f32.mrb[17].mxu1  ;;  %vm1008_vm7 = vcmp.gt.f32.partialorder %v6980_v36, 0.0 }
 0x113   :  { %5247 = vpow2.f32 %v1370_v11  ;;  %v1169_v60 = vmin.f32 %v6984_v45, 0.0  ;;  %v351_v59 = vpop.f32.mrb[22].mxu0  ;;  %v1788_v32 = vsel %vm988_vm14, %v6899_v48, %v4529_v23  ;;  %vm1009_vm6 = vcmp.gt.f32.partialorder %v6984_v45, 0.0 }
 0x114   :  { %v5236_v62 = vpop.eup %5235  ;;  %v1378_v37 = vmul.f32 1.442695, %v1168_v13  ;;  %v6996_v4 = vadd.f32 %v351_v59, %v6731_v50  ;;  %v353_v15 = vpop.f32.mrb[23].mxu0  ;;  %v1789_v47 = vsel %vm989_vm13, %v6904_v14, %v4530_v5  ;;  %5249 = vpow2.f32 %v1364_v19  ;;  %v2047_v14 = vld [vmem:[%s9714_s4 + $0x408] sm:$0xff] }
 0x115   :  { %v5238_v22 = vpop.eup %5237  ;;  %v1380_v24 = vmul.f32 1.442695, %v1169_v60  ;;  %v7000_v25 = vadd.f32 %v353_v15, %v6738_v61  ;;  %2190 = vmatprep.mubr.f32.mxu0 %v1789_v47  ;;  %v4534_v52 = vadd.f32 -1.0, %v5236_v62  ;;  %v4971_v5 = vpack.c.bf16 %v2049_v33, %v2047_v14  ;;  %v7027_v60 = vpop.f32.mrb[18].mxu1 }
 0x116   :  { %v7005_v16 = vpop.eup %5239  ;;  %5251 = vpow2.f32 %v1378_v37  ;;  %v1173_v28 = vmin.f32 %v6996_v4, 0.0  ;;  %2191 = vmatmul.mubr.f32.gmra.mrb[124].mxu0 %v1788_v32  ;;  %v4535_v17 = vadd.f32 -1.0, %v5238_v22  ;;  %v7030_v37 = vpop.f32.mrb[19].mxu1  ;;  %vm1013_vm9 = vcmp.gt.f32.partialorder %v6996_v4, 0.0 }
 0x117   :  { %5253 = vpow2.f32 %v1380_v24  ;;  %v1174_v48 = vmin.f32 %v7000_v25, 0.0  ;;  %v357_v49 = vpop.f32.mrb[24].mxu0  ;;  %v1793_v58 = vsel %vm993_vm1, %v6923_v27, %v4534_v52  ;;  %4972 = vmatprep.subr.bf16.mxu1 %v4971_v5  ;;  %v7034_v15 = vpop.f32.mrb[20].mxu1  ;;  %vm1014_vm8 = vcmp.gt.f32.partialorder %v7000_v25, 0.0 }
 0x118   :  { %v5242_v34 = vpop.eup %5241  ;;  %v1388_v42 = vmul.f32 1.442695, %v1173_v28  ;;  %v7020_v38 = vadd.f32 %v357_v49, %v6731_v50  ;;  %v359_v10 = vpop.f32.mrb[25].mxu0  ;;  %v1794_v19 = vsel %vm994_vm15, %v6928_v54, %v4535_v17 }
 0x119   :  { %v5244_v11 = vpop.eup %5243  ;;  %v1390_v46 = vmul.f32 1.442695, %v1174_v48  ;;  %v7025_v23 = vadd.f32 %v359_v10, %v6738_v61  ;;  %2196 = vmatprep.mubr.f32.mxu0 %v1794_v19  ;;  %v4539_v13 = vadd.f32 -1.0, %v5242_v34  ;;  %v7048_v10 = vpop.f32.mrb[21].mxu1 }
 0x11a   :  { %5255 = vpow2.f32 %v1388_v42  ;;  %v1178_v59 = vmin.f32 %v7020_v38, 0.0  ;;  %2197 = vmatmul.mubr.f32.gmra.mrb[126].mxu0 %v1793_v58  ;;  %v4540_v62 = vadd.f32 -1.0, %v5244_v11  ;;  %v7052_v58 = vpop.f32.mrb[22].mxu1  ;;  %vm1018_vm11 = vcmp.gt.f32.partialorder %v7020_v38, 0.0 }
 0x11b   :  { %5257 = vpow2.f32 %v1390_v46  ;;  %v1179_v27 = vmin.f32 %v7025_v23, 0.0  ;;  %v363_v54 = vpop.f32.mrb[26].mxu0  ;;  %v1798_v33 = vsel %vm998_vm3, %v6943_v40, %v4539_v13  ;;  %vm1019_vm10 = vcmp.gt.f32.partialorder %v7025_v23, 0.0 }
 0x11c   :  { %v5246_v47 = vpop.eup %5245  ;;  %v1398_v22 = vmul.f32 1.442695, %v1178_v59  ;;  %v7037_v24 = vadd.f32 %v363_v54, %v6731_v50  ;;  %v365_v32 = vpop.f32.mrb[27].mxu0  ;;  %v1799_v52 = vsel %vm999_vm2, %v6947_v2, %v4540_v62 }
 0x11d   :  { %v5248_v28 = vpop.eup %5247  ;;  %v1400_v17 = vmul.f32 1.442695, %v1179_v27  ;;  %v7042_v14 = vadd.f32 %v365_v32, %v6738_v61  ;;  %2202 = vmatprep.mubr.f32.mxu0 %v1799_v52  ;;  %v4544_v48 = vadd.f32 -1.0, %v5246_v47  ;;  %v7064_v52 = vpop.f32.mrb[23].mxu1 }
 0x11e   :  { %v7045_v49 = vpop.eup %5249  ;;  %5259 = vpow2.f32 %v1398_v22  ;;  %v1183_v34 = vmin.f32 %v7037_v24, 0.0  ;;  %2203 = vmatmul.mubr.f32.gmra.mrb[128].mxu0 %v1798_v33  ;;  %v4545_v42 = vadd.f32 -1.0, %v5248_v28  ;;  %vm1023_vm13 = vcmp.gt.f32.partialorder %v7037_v24, 0.0 }
 0x11f   :  { %5261 = vpow2.f32 %v1400_v17  ;;  %v1184_v2 = vmin.f32 %v7042_v14, 0.0  ;;  %v369_v19 = vpop.f32.mrb[28].mxu0  ;;  %v1803_v54 = vsel %vm1003_vm5, %v6962_v56, %v4544_v48  ;;  %v7068_v17 = vpop.f32.mrb[24].mxu1  ;;  %vm1024_vm12 = vcmp.gt.f32.partialorder %v7042_v14, 0.0 }
 0x120   :  { %v5252_v11 = vpop.eup %5251  ;;  %v1408_v40 = vmul.f32 1.442695, %v1183_v34  ;;  %v7055_v46 = vadd.f32 %v369_v19, %v6731_v50  ;;  %v371_v13 = vpop.f32.mrb[29].mxu0  ;;  %v1804_v5 = vsel %vm1004_vm4, %v6966_v7, %v4545_v42 }
 0x121   :  { %v5254_v59 = vpop.eup %5253  ;;  %v1410_v62 = vmul.f32 1.442695, %v1184_v2  ;;  %v7060_v27 = vadd.f32 %v371_v13, %v6738_v61  ;;  %2208 = vmatprep.mubr.f32.mxu0 %v1804_v5  ;;  %v4549_v47 = vadd.f32 -1.0, %v5252_v11 }
 0x122   :  { %5263 = vpow2.f32 %v1408_v40  ;;  %v1188_v22 = vmin.f32 %v7055_v46, 0.0  ;;  %2209 = vmatmul.mubr.f32.gmra.mrb[130].mxu0 %v1803_v54  ;;  %v4550_v32 = vadd.f32 -1.0, %v5254_v59  ;;  %vm1028_vm15 = vcmp.gt.f32.partialorder %v7055_v46, 0.0 }
 0x123   :  { %5265 = vpow2.f32 %v1410_v62  ;;  %v1189_v7 = vmin.f32 %v7060_v27, 0.0  ;;  %v375_v28 = vpop.f32.mrb[30].mxu0  ;;  %v1808_v40 = vsel %vm1008_vm7, %v6980_v36, %v4549_v47  ;;  %v7080_v62 = vpop.f32.mrb[25].mxu1  ;;  %vm1029_vm14 = vcmp.gt.f32.partialorder %v7060_v27, 0.0 }
 0x124   :  { %v5256_v33 = vpop.eup %5255  ;;  %v1418_v34 = vmul.f32 1.442695, %v1188_v22  ;;  %v7071_v56 = vadd.f32 %v375_v28, %v6731_v50  ;;  %v377_v48 = vpop.f32.mrb[31].mxu0  ;;  %v1809_v42 = vsel %vm1009_vm6, %v6984_v45, %v4550_v32 }
 0x125   :  { %v5258_v2 = vpop.eup %5257  ;;  %v1420_v19 = vmul.f32 1.442695, %v1189_v7  ;;  %v7076_v11 = vadd.f32 %v377_v48, %v6738_v61  ;;  %2214 = vmatprep.mubr.f32.mxu0 %v1809_v42  ;;  %v4554_v13 = vadd.f32 -1.0, %v5256_v33  ;;  %v7084_v22 = vpop.f32.mrb[26].mxu1 }
 0x126   :  { %5267 = vpow2.f32 %v1418_v34  ;;  %v1193_v5 = vmin.f32 %v7071_v56, 0.0  ;;  %2215 = vmatmul.mubr.f32.gmra.mrb[132].mxu0 %v1808_v40  ;;  %v4555_v59 = vadd.f32 -1.0, %v5258_v2  ;;  %vm1033_vm2 = vcmp.gt.f32.partialorder %v7071_v56, 0.0 }
 0x127   :  { %5269 = vpow2.f32 %v1420_v19  ;;  %v1194_v45 = vmin.f32 %v7076_v11, 0.0  ;;  %v381_v54 = vpop.f32.mrb[32].mxu0  ;;  %v1813_v42 = vsel %vm1013_vm9, %v6996_v4, %v4554_v13  ;;  %vm1034_vm1 = vcmp.gt.f32.partialorder %v7076_v11, 0.0 }
 0x128   :  { %v5260_v32 = vpop.eup %5259  ;;  %v1428_v7 = vmul.f32 1.442695, %v1193_v5  ;;  %v7087_v36 = vadd.f32 %v381_v54, %v6731_v50  ;;  %v383_v47 = vpop.f32.mrb[33].mxu0  ;;  %v1814_v28 = vsel %vm1014_vm8, %v7000_v25, %v4555_v59 }
 0x129   :  { %v5262_v33 = vpop.eup %5261  ;;  %v1430_v34 = vmul.f32 1.442695, %v1194_v45  ;;  %v7092_v48 = vadd.f32 %v383_v47, %v6738_v61  ;;  %2220 = vmatprep.mubr.f32.mxu0 %v1814_v28  ;;  %v4559_v2 = vadd.f32 -1.0, %v5260_v32  ;;  %v7096_v5 = vpop.f32.mrb[27].mxu1 }
 0x12a   :  { %5271 = vpow2.f32 %v1428_v7  ;;  %v1198_v19 = vmin.f32 %v7087_v36, 0.0  ;;  %2221 = vmatmul.mubr.f32.gmra.mrb[134].mxu0 %v1813_v42  ;;  %v4560_v40 = vadd.f32 -1.0, %v5262_v33  ;;  %v7100_v45 = vpop.f32.mrb[28].mxu1  ;;  %vm1038_vm4 = vcmp.gt.f32.partialorder %v7087_v36, 0.0 }
 0x12b   :  { %5273 = vpow2.f32 %v1430_v34  ;;  %v1199_v25 = vmin.f32 %v7092_v48, 0.0  ;;  %v387_v59 = vpop.f32.mrb[34].mxu0  ;;  %v1818_v34 = vsel %vm1018_vm11, %v7020_v38, %v4559_v2  ;;  %v7112_v55 = vpop.f32.mrb[29].mxu1  ;;  %vm1039_vm3 = vcmp.gt.f32.partialorder %v7092_v48, 0.0 }
 0x12c   :  { %v5264_v54 = vpop.eup %5263  ;;  %v1438_v47 = vmul.f32 1.442695, %v1198_v19  ;;  %v7103_v4 = vadd.f32 %v387_v59, %v6731_v50  ;;  %v389_v13 = vpop.f32.mrb[35].mxu0  ;;  %v1819_v32 = vsel %vm1019_vm10, %v7025_v23, %v4560_v40  ;;  %9772 = vst [vmem:[#allocation3_spill] sm:$0xff] %v7112_v55 }
 0x12d   :  { %v5266_v7 = vpop.eup %5265  ;;  %v1440_v28 = vmul.f32 1.442695, %v1199_v25  ;;  %v7108_v33 = vadd.f32 %v389_v13, %v6738_v61  ;;  %2226 = vmatprep.mubr.f32.mxu0 %v1819_v32  ;;  %v4564_v42 = vadd.f32 -1.0, %v5264_v54  ;;  %v7116_v25 = vpop.f32.mrb[30].mxu1 }
 0x12e   :  { %5275 = vpow2.f32 %v1438_v47  ;;  %v1203_v19 = vmin.f32 %v7103_v4, 0.0  ;;  %2227 = vmatmul.mubr.f32.gmra.mrb[136].mxu0 %v1818_v34  ;;  %v4565_v59 = vadd.f32 -1.0, %v5266_v7  ;;  %9773 = vst [vmem:[#allocation4_spill] sm:$0xff] %v7116_v25  ;;  %vm1043_vm6 = vcmp.gt.f32.partialorder %v7103_v4, 0.0 }
 0x12f   :  { %5277 = vpow2.f32 %v1440_v28  ;;  %v1204_v23 = vmin.f32 %v7108_v33, 0.0  ;;  %v393_v40 = vpop.f32.mrb[36].mxu0  ;;  %v1823_v34 = vsel %vm1023_vm13, %v7037_v24, %v4564_v42  ;;  %vm1044_vm5 = vcmp.gt.f32.partialorder %v7108_v33, 0.0 }
 0x130   :  { %v5268_v13 = vpop.eup %5267  ;;  %v1448_v32 = vmul.f32 1.442695, %v1203_v19  ;;  %v7119_v38 = vadd.f32 %v393_v40, %v6731_v50  ;;  %v395_v2 = vpop.f32.mrb[37].mxu0  ;;  %v1824_v54 = vsel %vm1024_vm12, %v7042_v14, %v4565_v59 }
 0x131   :  { %v5270_v47 = vpop.eup %5269  ;;  %v1450_v7 = vmul.f32 1.442695, %v1204_v23  ;;  %v7124_v28 = vadd.f32 %v395_v2, %v6738_v61  ;;  %2232 = vmatprep.mubr.f32.mxu0 %v1824_v54  ;;  %v4569_v41 = vadd.f32 -1.0, %v5268_v13 }
 0x132   :  { %5279 = vpow2.f32 %v1448_v32  ;;  %v1208_v19 = vmin.f32 %v7119_v38, 0.0  ;;  %2233 = vmatmul.mubr.f32.gmra.mrb[138].mxu0 %v1823_v34  ;;  %v4570_v40 = vadd.f32 -1.0, %v5270_v47  ;;  %vm1048_vm8 = vcmp.gt.f32.partialorder %v7119_v38, 0.0 }
 0x133   :  { %5281 = vpow2.f32 %v1450_v7  ;;  %v1209_v3 = vmin.f32 %v7124_v28, 0.0  ;;  %v399_v14 = vpop.f32.mrb[38].mxu0  ;;  %v1828_v47 = vsel %vm1028_vm15, %v7055_v46, %v4569_v41  ;;  %vm1049_vm7 = vcmp.gt.f32.partialorder %v7124_v28, 0.0 }
 0x134   :  { %v5272_v59 = vpop.eup %5271  ;;  %v1458_v23 = vmul.f32 1.442695, %v1208_v19  ;;  %v7131_v2 = vadd.f32 %v399_v14, %v6731_v50  ;;  %v401_v54 = vpop.f32.mrb[39].mxu0  ;;  %v1829_v24 = vsel %vm1029_vm14, %v7060_v27, %v4570_v40 }
 0x135   :  { %v5274_v42 = vpop.eup %5273  ;;  %v1460_v13 = vmul.f32 1.442695, %v1209_v3  ;;  %v7136_v32 = vadd.f32 %v401_v54, %v6738_v61  ;;  %2238 = vmatprep.mubr.f32.mxu0 %v1829_v24  ;;  %v4574_v7 = vadd.f32 -1.0, %v5272_v59 }
 0x136   :  { %5283 = vpow2.f32 %v1458_v23  ;;  %v1213_v34 = vmin.f32 %v7131_v2, 0.0  ;;  %2239 = vmatmul.mubr.f32.gmra.mrb[140].mxu0 %v1828_v47  ;;  %v4575_v19 = vadd.f32 -1.0, %v5274_v42  ;;  %vm1053_vm10 = vcmp.gt.f32.partialorder %v7131_v2, 0.0 }
 0x137   :  { %5285 = vpow2.f32 %v1460_v13  ;;  %v1214_v14 = vmin.f32 %v7136_v32, 0.0  ;;  %v405_v27 = vpop.f32.mrb[40].mxu0  ;;  %v1833_v42 = vsel %vm1033_vm2, %v7071_v56, %v4574_v7  ;;  %vm1054_vm9 = vcmp.gt.f32.partialorder %v7136_v32, 0.0 }
 0x138   :  { %v5276_v40 = vpop.eup %5275  ;;  %v1468_v3 = vmul.f32 1.442695, %v1213_v34  ;;  %v7143_v54 = vadd.f32 %v405_v27, %v6731_v50  ;;  %v407_v24 = vpop.f32.mrb[41].mxu0  ;;  %v1834_v41 = vsel %vm1034_vm1, %v7076_v11, %v4575_v19 }
 0x139   :  { %v5278_v46 = vpop.eup %5277  ;;  %v1470_v59 = vmul.f32 1.442695, %v1214_v14  ;;  %v7148_v23 = vadd.f32 %v407_v24, %v6738_v61  ;;  %2244 = vmatprep.mubr.f32.mxu0 %v1834_v41  ;;  %v4579_v13 = vadd.f32 -1.0, %v5276_v40  ;;  %v7152_v27 = vpop.f32.mrb[31].mxu1 }
 0x13a   :  { %5287 = vpow2.f32 %v1468_v3  ;;  %v1218_v47 = vmin.f32 %v7143_v54, 0.0  ;;  %2245 = vmatmul.mubr.f32.gmra.mrb[142].mxu0 %v1833_v42  ;;  %v4580_v34 = vadd.f32 -1.0, %v5278_v46  ;;  %9774 = vst [vmem:[#allocation5_spill] sm:$0xff] %v7152_v27  ;;  %v7156_v14 = vpop.f32.mrb[32].mxu1  ;;  %vm1058_vm12 = vcmp.gt.f32.partialorder %v7143_v54, 0.0 }
 0x13b   :  { %5289 = vpow2.f32 %v1470_v59  ;;  %v1219_v11 = vmin.f32 %v7148_v23, 0.0  ;;  %v411_v19 = vpop.f32.mrb[42].mxu0  ;;  %9775 = vst [vmem:[#allocation6_spill] sm:$0xff] %v7156_v14  ;;  %v7163_v3 = vpop.f32.mrb[33].mxu1  ;;  %v1838_v14 = vsel %vm1038_vm4, %v7087_v36, %v4579_v13  ;;  %vm1059_vm11 = vcmp.gt.f32.partialorder %v7148_v23, 0.0 }
 0x13c   :  { %v5280_v24 = vpop.eup %5279  ;;  %v1478_v41 = vmul.f32 1.442695, %v1218_v47  ;;  %v7159_v56 = vadd.f32 %v411_v19, %v6731_v50  ;;  %v413_v7 = vpop.f32.mrb[43].mxu0  ;;  %v1839_v40 = vsel %vm1039_vm3, %v7092_v48, %v4580_v34  ;;  %9776 = vst [vmem:[#allocation7_spill] sm:$0xff] %v7163_v3 }
 0x13d   :  { %v5282_v46 = vpop.eup %5281  ;;  %v1480_v59 = vmul.f32 1.442695, %v1219_v11  ;;  %v7166_v42 = vadd.f32 %v413_v7, %v6738_v61  ;;  %2250 = vmatprep.mubr.f32.mxu0 %v1839_v40  ;;  %v4584_v27 = vadd.f32 -1.0, %v5280_v24  ;;  %v7169_v47 = vpop.f32.mrb[34].mxu1 }
 0x13e   :  { %9777 = vst [vmem:[#allocation8_spill] sm:$0xff] %v7169_v47  ;;  %5291 = vpow2.f32 %v1478_v41  ;;  %v1223_v19 = vmin.f32 %v7159_v56, 0.0  ;;  %2251 = vmatmul.mubr.f32.gmra.mrb[144].mxu0 %v1838_v14  ;;  %v4585_v48 = vadd.f32 -1.0, %v5282_v46  ;;  %v7172_v34 = vpop.f32.mrb[35].mxu1  ;;  %vm1063_vm14 = vcmp.gt.f32.partialorder %v7159_v56, 0.0 }
 0x13f   :  { %9778 = vst [vmem:[#allocation9_spill] sm:$0xff] %v7172_v34  ;;  %5293 = vpow2.f32 %v1480_v59  ;;  %v1224_v3 = vmin.f32 %v7166_v42, 0.0  ;;  %v417_v11 = vpop.f32.mrb[44].mxu0  ;;  %v7176_v7 = vpop.f32.mrb[36].mxu1  ;;  %v1843_v47 = vsel %vm1043_vm6, %v7103_v4, %v4584_v27  ;;  %vm1064_vm13 = vcmp.gt.f32.partialorder %v7166_v42, 0.0 }
 0x140   :  { %9779 = vst [vmem:[#allocation10_spill] sm:$0xff] %v7176_v7  ;;  %v5284_v40 = vpop.eup %5283  ;;  %v1488_v36 = vmul.f32 1.442695, %v1223_v19  ;;  %v7179_v13 = vadd.f32 %v417_v11, %v6731_v50  ;;  %v419_v24 = vpop.f32.mrb[45].mxu0  ;;  %v1844_v41 = vsel %vm1044_vm5, %v7108_v33, %v4585_v48 }
 0x141   :  { %v5286_v14 = vpop.eup %5285  ;;  %v1490_v46 = vmul.f32 1.442695, %v1224_v3  ;;  %v7184_v59 = vadd.f32 %v419_v24, %v6738_v61  ;;  %2256 = vmatprep.mubr.f32.mxu0 %v1844_v41  ;;  %v4589_v34 = vadd.f32 -1.0, %v5284_v40  ;;  %v7188_v7 = vpop.f32.mrb[37].mxu1 }
 0x142   :  { %5295 = vpow2.f32 %v1488_v36  ;;  %v1228_v19 = vmin.f32 %v7179_v13, 0.0  ;;  %2257 = vmatmul.mubr.f32.gmra.mrb[146].mxu0 %v1843_v47  ;;  %v4590_v11 = vadd.f32 -1.0, %v5286_v14  ;;  %9780 = vst [vmem:[#allocation11_spill] sm:$0xff] %v7188_v7  ;;  %vm1068_vm1 = vcmp.gt.f32.partialorder %v7179_v13, 0.0 }
 0x143   :  { %5297 = vpow2.f32 %v1490_v46  ;;  %v1229_v33 = vmin.f32 %v7184_v59, 0.0  ;;  %v423_v48 = vpop.f32.mrb[46].mxu0  ;;  %v1848_v14 = vsel %vm1048_vm8, %v7119_v38, %v4589_v34  ;;  %vm1069_vm15 = vcmp.gt.f32.partialorder %v7184_v59, 0.0 }
 0x144   :  { %v5288_v3 = vpop.eup %5287  ;;  %v1498_v24 = vmul.f32 1.442695, %v1228_v19  ;;  %v7193_v41 = vadd.f32 %v423_v48, %v6731_v50  ;;  %v425_v4 = vpop.f32.mrb[47].mxu0  ;;  %v1849_v27 = vsel %vm1049_vm7, %v7124_v28, %v4590_v11 }
 0x145   :  { %v5290_v47 = vpop.eup %5289  ;;  %v1500_v40 = vmul.f32 1.442695, %v1229_v33  ;;  %v7198_v36 = vadd.f32 %v425_v4, %v6738_v61  ;;  %2262 = vmatprep.mubr.f32.mxu0 %v1849_v27  ;;  %v4594_v46 = vadd.f32 -1.0, %v5288_v3  ;;  %v7204_v11 = vpop.f32.mrb[38].mxu1 }
 0x146   :  { %5299 = vpow2.f32 %v1498_v24  ;;  %v1233_v19 = vmin.f32 %v7193_v41, 0.0  ;;  %2263 = vmatmul.mubr.f32.gmra.mrb[148].mxu0 %v1848_v14  ;;  %v4595_v48 = vadd.f32 -1.0, %v5290_v47  ;;  %9781 = vst [vmem:[#allocation12_spill] sm:$0xff] %v7204_v11  ;;  %v7215_v11 = vpop.f32.mrb[39].mxu1  ;;  %vm1073_vm3 = vcmp.gt.f32.partialorder %v7193_v41, 0.0 }
 0x147   :  { %5301 = vpow2.f32 %v1500_v40  ;;  %v1234_v7 = vmin.f32 %v7198_v36, 0.0  ;;  %v429_v28 = vpop.f32.mrb[48].mxu0  ;;  %v1853_v40 = vsel %vm1053_vm10, %v7131_v2, %v4594_v46  ;;  %9782 = vst [vmem:[#allocation13_spill] sm:$0xff] %v7215_v11  ;;  %vm1074_vm2 = vcmp.gt.f32.partialorder %v7198_v36, 0.0 }
 0x148   :  { %v5292_v33 = vpop.eup %5291  ;;  %v1508_v4 = vmul.f32 1.442695, %v1233_v19  ;;  %v7207_v27 = vadd.f32 %v429_v28, %v6731_v50  ;;  %v431_v38 = vpop.f32.mrb[49].mxu0  ;;  %v1854_v34 = vsel %vm1054_vm9, %v7136_v32, %v4595_v48 }
 0x149   :  { %v5294_v3 = vpop.eup %5293  ;;  %v1510_v24 = vmul.f32 1.442695, %v1234_v7  ;;  %v7212_v47 = vadd.f32 %v431_v38, %v6738_v61  ;;  %2268 = vmatprep.mubr.f32.mxu0 %v1854_v34  ;;  %v4599_v14 = vadd.f32 -1.0, %v5292_v33 }
 0x14a   :  { %5303 = vpow2.f32 %v1508_v4  ;;  %v1238_v19 = vmin.f32 %v7207_v27, 0.0  ;;  %2269 = vmatmul.mubr.f32.gmra.mrb[150].mxu0 %v1853_v40  ;;  %v4600_v28 = vadd.f32 -1.0, %v5294_v3  ;;  %vm1078_vm5 = vcmp.gt.f32.partialorder %v7207_v27, 0.0 }
 0x14b   :  { %5305 = vpow2.f32 %v1510_v24  ;;  %v1239_v32 = vmin.f32 %v7212_v47, 0.0  ;;  %v435_v48 = vpop.f32.mrb[50].mxu0  ;;  %v1858_v24 = vsel %vm1058_vm12, %v7143_v54, %v4599_v14  ;;  %vm1079_vm4 = vcmp.gt.f32.partialorder %v7212_v47, 0.0 }
 0x14c   :  { %v5296_v7 = vpop.eup %5295  ;;  %v1518_v38 = vmul.f32 1.442695, %v1238_v19  ;;  %v7221_v34 = vadd.f32 %v435_v48, %v6731_v50  ;;  %v437_v2 = vpop.f32.mrb[51].mxu0  ;;  %v1859_v46 = vsel %vm1059_vm11, %v7148_v23, %v4600_v28 }
 0x14d   :  { %v5298_v33 = vpop.eup %5297  ;;  %v1520_v4 = vmul.f32 1.442695, %v1239_v32  ;;  %v7226_v3 = vadd.f32 %v437_v2, %v6738_v61  ;;  %2274 = vmatprep.mubr.f32.mxu0 %v1859_v46  ;;  %v4604_v40 = vadd.f32 -1.0, %v5296_v7  ;;  %v7232_v28 = vpop.f32.mrb[40].mxu1 }
 0x14e   :  { %5307 = vpow2.f32 %v1518_v38  ;;  %v1243_v19 = vmin.f32 %v7221_v34, 0.0  ;;  %2275 = vmatmul.mubr.f32.gmra.mrb[152].mxu0 %v1858_v24  ;;  %v4605_v48 = vadd.f32 -1.0, %v5298_v33  ;;  %9783 = vst [vmem:[#allocation14_spill] sm:$0xff] %v7232_v28  ;;  %v7243_v28 = vpop.f32.mrb[41].mxu1  ;;  %vm1083_vm7 = vcmp.gt.f32.partialorder %v7221_v34, 0.0 }
 0x14f   :  { %5309 = vpow2.f32 %v1520_v4  ;;  %v1244_v11 = vmin.f32 %v7226_v3, 0.0  ;;  %v441_v23 = vpop.f32.mrb[52].mxu0  ;;  %v1863_v4 = vsel %vm1063_vm14, %v7159_v56, %v4604_v40  ;;  %9784 = vst [vmem:[#allocation15_spill] sm:$0xff] %v7243_v28  ;;  %v7258_v28 = vpop.f32.mrb[42].mxu1  ;;  %vm1084_vm6 = vcmp.gt.f32.partialorder %v7226_v3, 0.0 }
 0x150   :  { %v5300_v32 = vpop.eup %5299  ;;  %v1528_v2 = vmul.f32 1.442695, %v1243_v19  ;;  %v7235_v46 = vadd.f32 %v441_v23, %v6731_v50  ;;  %v443_v54 = vpop.f32.mrb[53].mxu0  ;;  %v1864_v14 = vsel %vm1064_vm13, %v7166_v42, %v4605_v48  ;;  %9785 = vst [vmem:[#allocation16_spill] sm:$0xff] %v7258_v28 }
 0x151   :  { %v5302_v7 = vpop.eup %5301  ;;  %v1530_v38 = vmul.f32 1.442695, %v1244_v11  ;;  %v7240_v33 = vadd.f32 %v443_v54, %v6738_v61  ;;  %2280 = vmatprep.mubr.f32.mxu0 %v1864_v14  ;;  %v4609_v24 = vadd.f32 -1.0, %v5300_v32 }
 0x152   :  { %5311 = vpow2.f32 %v1528_v2  ;;  %v1248_v19 = vmin.f32 %v7235_v46, 0.0  ;;  %2281 = vmatmul.mubr.f32.gmra.mrb[154].mxu0 %v1863_v4  ;;  %v4610_v23 = vadd.f32 -1.0, %v5302_v7  ;;  %vm1088_vm9 = vcmp.gt.f32.partialorder %v7235_v46, 0.0 }
 0x153   :  { %5313 = vpow2.f32 %v1530_v38  ;;  %v1249_v42 = vmin.f32 %v7240_v33, 0.0  ;;  %v447_v48 = vpop.f32.mrb[54].mxu0  ;;  %v1868_v38 = vsel %vm1068_vm1, %v7179_v13, %v4609_v24  ;;  %vm1089_vm8 = vcmp.gt.f32.partialorder %v7240_v33, 0.0 }
 0x154   :  { %v5304_v11 = vpop.eup %5303  ;;  %v1538_v54 = vmul.f32 1.442695, %v1248_v19  ;;  %v7249_v14 = vadd.f32 %v447_v48, %v6731_v50  ;;  %v449_v56 = vpop.f32.mrb[55].mxu0  ;;  %v1869_v40 = vsel %vm1069_vm15, %v7184_v59, %v4610_v23 }
 0x155   :  { %v5306_v32 = vpop.eup %5305  ;;  %v1540_v2 = vmul.f32 1.442695, %v1249_v42  ;;  %v7254_v7 = vadd.f32 %v449_v56, %v6738_v61  ;;  %2286 = vmatprep.mubr.f32.mxu0 %v1869_v40  ;;  %v4614_v4 = vadd.f32 -1.0, %v5304_v11  ;;  %v7267_v11 = vpop.f32.mrb[43].mxu1 }
 0x156   :  { %5315 = vpow2.f32 %v1538_v54  ;;  %v1253_v19 = vmin.f32 %v7249_v14, 0.0  ;;  %2287 = vmatmul.mubr.f32.gmra.mrb[156].mxu0 %v1868_v38  ;;  %v4615_v48 = vadd.f32 -1.0, %v5306_v32  ;;  %9786 = vst [vmem:[#allocation17_spill] sm:$0xff] %v7267_v11  ;;  %vm1093_vm11 = vcmp.gt.f32.partialorder %v7249_v14, 0.0 }
 0x157   :  { %5317 = vpow2.f32 %v1540_v2  ;;  %v1254_v59 = vmin.f32 %v7254_v7, 0.0  ;;  %v453_v23 = vpop.f32.mrb[56].mxu0  ;;  %v1873_v38 = vsel %vm1073_vm3, %v7193_v41, %v4614_v4  ;;  %vm1094_vm10 = vcmp.gt.f32.partialorder %v7254_v7, 0.0 }
 0x158   :  { %v5308_v42 = vpop.eup %5307  ;;  %v1548_v56 = vmul.f32 1.442695, %v1253_v19  ;;  %v7263_v40 = vadd.f32 %v453_v23, %v6731_v50  ;;  %v455_v13 = vpop.f32.mrb[57].mxu0  ;;  %v1874_v24 = vsel %vm1074_vm2, %v7198_v36, %v4615_v48 }
 0x159   :  { %v5310_v54 = vpop.eup %5309  ;;  %v1550_v32 = vmul.f32 1.442695, %v1254_v59  ;;  %v7270_v2 = vadd.f32 %v455_v13, %v6738_v61  ;;  %2292 = vmatprep.mubr.f32.mxu0 %v1874_v24  ;;  %v4619_v28 = vadd.f32 -1.0, %v5308_v42 }
 0x15a   :  { %5319 = vpow2.f32 %v1548_v56  ;;  %v1258_v19 = vmin.f32 %v7263_v40, 0.0  ;;  %2293 = vmatmul.mubr.f32.gmra.mrb[158].mxu0 %v1873_v38  ;;  %v4620_v23 = vadd.f32 -1.0, %v5310_v54  ;;  %vm1098_vm13 = vcmp.gt.f32.partialorder %v7263_v40, 0.0 }
 0x15b   :  { %5321 = vpow2.f32 %v1550_v32  ;;  %v1259_v36 = vmin.f32 %v7270_v2, 0.0  ;;  %v459_v48 = vpop.f32.mrb[58].mxu0  ;;  %v1878_v54 = vsel %vm1078_vm5, %v7207_v27, %v4619_v28  ;;  %vm1099_vm12 = vcmp.gt.f32.partialorder %v7270_v2, 0.0 }
 0x15c   :  { %v5312_v11 = vpop.eup %5311  ;;  %v1558_v59 = vmul.f32 1.442695, %v1258_v19  ;;  %v7277_v13 = vadd.f32 %v459_v48, %v6731_v50  ;;  %v461_v24 = vpop.f32.mrb[59].mxu0  ;;  %v1879_v41 = vsel %vm1079_vm4, %v7212_v47, %v4620_v23 }
 0x15d   :  { %v5314_v4 = vpop.eup %5313  ;;  %v1560_v42 = vmul.f32 1.442695, %v1259_v36  ;;  %v7282_v56 = vadd.f32 %v461_v24, %v6738_v61  ;;  %2298 = vmatprep.mubr.f32.mxu0 %v1879_v41  ;;  %v4624_v32 = vadd.f32 -1.0, %v5312_v11  ;;  %v7286_v48 = vpop.f32.mrb[44].mxu1 }
 0x15e   :  { %5323 = vpow2.f32 %v1558_v59  ;;  %v1263_v38 = vmin.f32 %v7277_v13, 0.0  ;;  %2299 = vmatmul.mubr.f32.gmra.mrb[160].mxu0 %v1878_v54  ;;  %v4625_v19 = vadd.f32 -1.0, %v5314_v4  ;;  %9787 = vst [vmem:[#allocation18_spill] sm:$0xff] %v7286_v48  ;;  %v7299_v48 = vpop.f32.mrb[45].mxu1  ;;  %vm1103_vm15 = vcmp.gt.f32.partialorder %v7277_v13, 0.0 }
 0x15f   :  { %5325 = vpow2.f32 %v1560_v42  ;;  %v1264_v47 = vmin.f32 %v7282_v56, 0.0  ;;  %v465_v23 = vpop.f32.mrb[60].mxu0  ;;  %v1883_v42 = vsel %vm1083_vm7, %v7221_v34, %v4624_v32  ;;  %9788 = vst [vmem:[#allocation19_spill] sm:$0xff] %v7299_v48  ;;  %v7313_v48 = vpop.f32.mrb[46].mxu1  ;;  %vm1104_vm14 = vcmp.gt.f32.partialorder %v7282_v56, 0.0 }
 0x160   :  { %v5316_v36 = vpop.eup %5315  ;;  %v1568_v24 = vmul.f32 1.442695, %v1263_v38  ;;  %v7291_v41 = vadd.f32 %v465_v23, %v6731_v50  ;;  %v467_v27 = vpop.f32.mrb[61].mxu0  ;;  %v1884_v28 = vsel %vm1084_vm6, %v7226_v3, %v4625_v19  ;;  %9789 = vst [vmem:[#allocation20_spill] sm:$0xff] %v7313_v48 }
 0x161   :  { %v5318_v11 = vpop.eup %5317  ;;  %v1570_v59 = vmul.f32 1.442695, %v1264_v47  ;;  %v7296_v4 = vadd.f32 %v467_v27, %v6738_v61  ;;  %2304 = vmatprep.mubr.f32.mxu0 %v1884_v28  ;;  %v4629_v54 = vadd.f32 -1.0, %v5316_v36 }
 0x162   :  { %5327 = vpow2.f32 %v1568_v24  ;;  %v1268_v38 = vmin.f32 %v7291_v41, 0.0  ;;  %2305 = vmatmul.mubr.f32.gmra.mrb[162].mxu0 %v1883_v42  ;;  %v4630_v23 = vadd.f32 -1.0, %v5318_v11  ;;  %vm1108_vm2 = vcmp.gt.f32.partialorder %v7291_v41, 0.0 }
 0x163   :  { %5329 = vpow2.f32 %v1570_v59  ;;  %v1269_v3 = vmin.f32 %v7296_v4, 0.0  ;;  %v471_v19 = vpop.f32.mrb[62].mxu0  ;;  %v1888_v59 = vsel %vm1088_vm9, %v7235_v46, %v4629_v54  ;;  %vm1109_vm1 = vcmp.gt.f32.partialorder %v7296_v4, 0.0 }
 0x164   :  { %v5320_v47 = vpop.eup %5319  ;;  %v1578_v27 = vmul.f32 1.442695, %v1268_v38  ;;  %v7305_v28 = vadd.f32 %v471_v19, %v6731_v50  ;;  %v473_v34 = vpop.f32.mrb[63].mxu0  ;;  %v1889_v32 = vsel %vm1089_vm8, %v7240_v33, %v4630_v23 }
 0x165   :  { %v5322_v36 = vpop.eup %5321  ;;  %v1580_v24 = vmul.f32 1.442695, %v1269_v3  ;;  %v7310_v11 = vadd.f32 %v473_v34, %v6738_v61  ;;  %2310 = vmatprep.mubr.f32.mxu0 %v1889_v32  ;;  %v4634_v42 = vadd.f32 -1.0, %v5320_v47  ;;  %v7316_v19 = vpop.f32.mrb[47].mxu1 }
 0x166   :  { %5331 = vpow2.f32 %v1578_v27  ;;  %v1273_v50 = vmin.f32 %v7305_v28, 0.0  ;;  %2311 = vmatmul.mubr.f32.gmra.mrb[164].mxu0 %v1888_v59  ;;  %v4635_v38 = vadd.f32 -1.0, %v5322_v36  ;;  %9790 = vst [vmem:[#allocation21_spill] sm:$0xff] %v7316_v19  ;;  %vm1113_vm4 = vcmp.gt.f32.partialorder %v7305_v28, 0.0 }
 0x167   :  { %5333 = vpow2.f32 %v1580_v24  ;;  %v1274_v33 = vmin.f32 %v7310_v11, 0.0  ;;  %v542_v23 = vpop.f32.mrb[64].mxu0  ;;  %v1893_v36 = vsel %vm1093_vm11, %v7249_v14, %v4634_v42  ;;  %vm1114_vm3 = vcmp.gt.f32.partialorder %v7310_v11, 0.0 }
 0x168   :  { %v5324_v61 = vpop.eup %5323  ;;  %v1588_v3 = vmul.f32 1.442695, %v1273_v50  ;;  %v7321_v46 = vadd.f32 %v542_v23, %v6874_v35  ;;  %v544_v54 = vpop.f32.mrb[65].mxu0  ;;  %v1894_v47 = vsel %vm1094_vm10, %v7254_v7, %v4635_v38 }
 0x169   :  { %v5326_v27 = vpop.eup %5325  ;;  %v1590_v34 = vmul.f32 1.442695, %v1274_v33  ;;  %v7326_v32 = vadd.f32 %v544_v54, %v6889_v20  ;;  %2316 = vmatprep.mubr.f32.mxu0 %v1894_v47  ;;  %v4639_v24 = vadd.f32 -1.0, %v5324_v61 }
 0x16a   :  { %5335 = vpow2.f32 %v1588_v3  ;;  %v1120_v59 = vmin.f32 %v7321_v46, 0.0  ;;  %2317 = vmatmul.mubr.f32.gmra.mrb[166].mxu0 %v1893_v36  ;;  %v4640_v50 = vadd.f32 -1.0, %v5326_v27  ;;  %vm960_vm6 = vcmp.gt.f32.partialorder %v7321_v46, 0.0 }
 0x16b   :  { %5337 = vpow2.f32 %v1590_v34  ;;  %v1121_v23 = vmin.f32 %v7326_v32, 0.0  ;;  %v548_v7 = vpop.f32.mrb[66].mxu0  ;;  %v1898_v27 = vsel %vm1098_vm13, %v7263_v40, %v4639_v24  ;;  %vm961_vm5 = vcmp.gt.f32.partialorder %v7326_v32, 0.0 }
 0x16c   :  { %v5328_v38 = vpop.eup %5327  ;;  %v1282_v33 = vmul.f32 1.442695, %v1120_v59  ;;  %v7333_v54 = vadd.f32 %v548_v7, %v6874_v35  ;;  %v550_v47 = vpop.f32.mrb[67].mxu0  ;;  %v1899_v14 = vsel %vm1099_vm12, %v7270_v2, %v4640_v50 }
 0x16d   :  { %v5330_v42 = vpop.eup %5329  ;;  %v1284_v61 = vmul.f32 1.442695, %v1121_v23  ;;  %v7338_v3 = vadd.f32 %v550_v47, %v6889_v20  ;;  %2322 = vmatprep.mubr.f32.mxu0 %v1899_v14  ;;  %v4644_v34 = vadd.f32 -1.0, %v5328_v38 }
 0x16e   :  { %5339 = vpow2.f32 %v1282_v33  ;;  %v1125_v36 = vmin.f32 %v7333_v54, 0.0  ;;  %2323 = vmatmul.mubr.f32.gmra.mrb[168].mxu0 %v1898_v27  ;;  %v4645_v59 = vadd.f32 -1.0, %v5330_v42  ;;  %vm965_vm8 = vcmp.gt.f32.partialorder %v7333_v54, 0.0 }
 0x16f   :  { %5341 = vpow2.f32 %v1284_v61  ;;  %v1126_v7 = vmin.f32 %v7338_v3, 0.0  ;;  %v554_v2 = vpop.f32.mrb[68].mxu0  ;;  %v1903_v42 = vsel %vm1103_vm15, %v7277_v13, %v4644_v34  ;;  %vm966_vm7 = vcmp.gt.f32.partialorder %v7338_v3, 0.0 }
 0x170   :  { %v5332_v50 = vpop.eup %5331  ;;  %v1292_v23 = vmul.f32 1.442695, %v1125_v36  ;;  %v7345_v47 = vadd.f32 %v554_v2, %v6874_v35  ;;  %v556_v14 = vpop.f32.mrb[69].mxu0  ;;  %v1904_v40 = vsel %vm1104_vm14, %v7282_v56, %v4645_v59 }
 0x171   :  { %v5334_v24 = vpop.eup %5333  ;;  %v1294_v38 = vmul.f32 1.442695, %v1126_v7  ;;  %v7350_v33 = vadd.f32 %v556_v14, %v6889_v20  ;;  %2328 = vmatprep.mubr.f32.mxu0 %v1904_v40  ;;  %v4649_v61 = vadd.f32 -1.0, %v5332_v50 }
 0x172   :  { %5343 = vpow2.f32 %v1292_v23  ;;  %v1130_v27 = vmin.f32 %v7345_v47, 0.0  ;;  %2329 = vmatmul.mubr.f32.gmra.mrb[170].mxu0 %v1903_v42  ;;  %v4650_v36 = vadd.f32 -1.0, %v5334_v24  ;;  %vm970_vm10 = vcmp.gt.f32.partialorder %v7345_v47, 0.0 }
 0x173   :  { %5345 = vpow2.f32 %v1294_v38  ;;  %v1131_v2 = vmin.f32 %v7350_v33, 0.0  ;;  %v560_v56 = vpop.f32.mrb[70].mxu0  ;;  %v1908_v24 = vsel %vm1108_vm2, %v7291_v41, %v4649_v61  ;;  %v2046_v41 = vld [vmem:[%s9714_s4 + $0x400] sm:$0xff]  ;;  %v2048_v61 = vld [vmem:[%s9714_s4 + $0x410] sm:$0xff]  ;;  %vm971_vm9 = vcmp.gt.f32.partialorder %v7350_v33, 0.0 }
 0x174   :  { %v5336_v59 = vpop.eup %5335  ;;  %v1302_v7 = vmul.f32 1.442695, %v1130_v27  ;;  %v7357_v14 = vadd.f32 %v560_v56, %v6874_v35  ;;  %v562_v40 = vpop.f32.mrb[71].mxu0  ;;  %v1909_v13 = vsel %vm1109_vm1, %v7296_v4, %v4650_v36  ;;  %v7368_v56 = vadd.f32 %v6865_v31, %v6874_v35 }
 0x175   :  { %v5338_v34 = vpop.eup %5337  ;;  %v1304_v50 = vmul.f32 1.442695, %v1131_v2  ;;  %v7362_v23 = vadd.f32 %v562_v40, %v6889_v20  ;;  %2334 = vmatprep.mubr.f32.mxu0 %v1909_v13  ;;  %v4654_v38 = vadd.f32 -1.0, %v5336_v59  ;;  %v7374_v2 = vadd.f32 %v6869_v9, %v6889_v20  ;;  %v2051_v9 = vld [vmem:[%s9714_s4 + $0x428] sm:$0xff] }
 0x176   :  { %5347 = vpow2.f32 %v1302_v7  ;;  %v1135_v42 = vmin.f32 %v7357_v14, 0.0  ;;  %2335 = vmatmul.mubr.f32.gmra.mrb[172].mxu0 %v1908_v24  ;;  %v4655_v27 = vadd.f32 -1.0, %v5338_v34  ;;  %v2053_v34 = vld [vmem:[%s9714_s4 + $0x438] sm:$0xff]  ;;  %v4973_v19 = vpack.c.bf16 %v2048_v61, %v2046_v41  ;;  %v2052_v41 = vld [vmem:[%s9714_s4 + $0x430] sm:$0xff] }
 0x177   :  { %5349 = vpow2.f32 %v1304_v50  ;;  %v1136_v4 = vmin.f32 %v7362_v23, 0.0  ;;  %v566_v36 = vpop.f32.mrb[72].mxu0  ;;  %vm976_vm11 = vcmp.gt.f32.partialorder %v7362_v23, 0.0  ;;  %vm975_vm12 = vcmp.gt.f32.partialorder %v7357_v14, 0.0 }
 0x178   :  { %v5340_v31 = vpop.eup %5339  ;;  %v1312_v59 = vmul.f32 1.442695, %v1135_v42  ;;  %v7383_v7 = vadd.f32 %v566_v36, %v6874_v35  ;;  %v568_v40 = vpop.f32.mrb[73].mxu0  ;;  %v1914_v13 = vsel %vm1114_vm3, %v7310_v11, %v4655_v27  ;;  %v1913_v36 = vsel %vm1113_vm4, %v7305_v28, %v4654_v38 }
 0x179   :  { %v5342_v50 = vpop.eup %5341  ;;  %v4501_v24 = vadd.f32 -1.0, %v5340_v31  ;;  %v1314_v48 = vmul.f32 1.442695, %v1136_v4  ;;  %v7394_v42 = vadd.f32 %v568_v40, %v6889_v20  ;;  %2340 = vmatprep.mubr.f32.mxu0 %v1914_v13  ;;  %v4975_v31 = vpack.c.bf16 %v2053_v34, %v2051_v9 }
 0x17a   :  { %5351 = vpow2.f32 %v1312_v59  ;;  %v1140_v11 = vmin.f32 %v7383_v7, 0.0  ;;  %2341 = vmatmul.mubr.f32.gmra.mrb[174].mxu0 %v1913_v36  ;;  %v4502_v27 = vadd.f32 -1.0, %v5342_v50  ;;  %vm980_vm14 = vcmp.gt.f32.partialorder %v7383_v7, 0.0 }
 0x17b   :  { %5353 = vpow2.f32 %v1314_v48  ;;  %v1141_v25 = vmin.f32 %v7394_v42, 0.0  ;;  %v572_v55 = vpop.f32.mrb[74].mxu0  ;;  %v2050_v48 = vld [vmem:[%s9714_s4 + $0x420] sm:$0xff]  ;;  %v1760_v59 = vsel %vm960_vm6, %v7321_v46, %v4501_v24  ;;  %vm981_vm13 = vcmp.gt.f32.partialorder %v7394_v42, 0.0 }
 0x17c   :  { %v5344_v4 = vpop.eup %5343  ;;  %v1322_v40 = vmul.f32 1.442695, %v1140_v11  ;;  %v7402_v13 = vadd.f32 %v572_v55, %v6874_v35  ;;  %v574_v28 = vpop.f32.mrb[75].mxu0  ;;  %v1761_v38 = vsel %vm961_vm5, %v7326_v32, %v4502_v27  ;;  %v1165_v32 = vmin.f32 %v7368_v56, 0.0 }
 0x17d   :  { %v5346_v61 = vpop.eup %5345  ;;  %v1324_v9 = vmul.f32 1.442695, %v1141_v25  ;;  %v7413_v34 = vadd.f32 %v574_v28, %v6889_v20  ;;  %2411 = vmatprep.mubr.f32.mxu1 %v1761_v38  ;;  %v4506_v55 = vadd.f32 -1.0, %v5344_v4  ;;  %v4977_v25 = vpack.c.bf16 %v2052_v41, %v2050_v48 }
 0x17e   :  { %5355 = vpow2.f32 %v1322_v40  ;;  %v1145_v50 = vmin.f32 %v7402_v13, 0.0  ;;  %2412 = vmatmul.mubr.f32.vlgmr.msra.gmra.mrb[48].mxu1 %v1760_v59  ;;  %v4507_v36 = vadd.f32 -1.0, %v5346_v61  ;;  %v1166_v41 = vmin.f32 %v7374_v2, 0.0 }
 0x17f   :  { %5357 = vpow2.f32 %v1324_v9  ;;  %v1146_v11 = vmin.f32 %v7413_v34, 0.0  ;;  %v578_v27 = vpop.f32.mrb[76].mxu0  ;;  %4974 = vmatpush1.bf16.msra.mxu1 %v4973_v19  ;;  %v1765_v19 = vsel %vm965_vm8, %v7333_v54, %v4506_v55  ;;  %vm986_vm15 = vcmp.gt.f32.partialorder %v7413_v34, 0.0 }
 0x180   :  { %v5348_v46 = vpop.eup %5347  ;;  %v1332_v24 = vmul.f32 1.442695, %v1145_v50  ;;  %v7420_v28 = vadd.f32 %v578_v27, %v6874_v35  ;;  %v580_v4 = vpop.f32.mrb[77].mxu0  ;;  %v1766_v40 = vsel %vm966_vm7, %v7338_v3, %v4507_v36  ;;  %4976 = vmatprep.subr.bf16.mxu1 %v4975_v31  ;;  %v7432_v3 = vadd.f32 %v6891_v0, %v6889_v20 }
 0x181   :  { %v5350_v38 = vpop.eup %5349  ;;  %v1334_v61 = vmul.f32 1.442695, %v1146_v11  ;;  %v7425_v59 = vadd.f32 %v580_v4, %v6889_v20  ;;  %2417 = vmatprep.mubr.f32.mxu1 %v1766_v40  ;;  %v4511_v48 = vadd.f32 -1.0, %v5348_v46  ;;  %vm985_vm1 = vcmp.gt.f32.partialorder %v7402_v13, 0.0 }
 0x182   :  { %5359 = vpow2.f32 %v1332_v24  ;;  %v1150_v9 = vmin.f32 %v7420_v28, 0.0  ;;  %2418 = vmatmul.mubr.f32.gmra.mrb[50].mxu1 %v1765_v19  ;;  %v4512_v50 = vadd.f32 -1.0, %v5350_v38  ;;  %v1171_v19 = vmin.f32 %v7432_v3, 0.0 }
 0x183   :  { %5361 = vpow2.f32 %v1334_v61  ;;  %v1151_v31 = vmin.f32 %v7425_v59, 0.0  ;;  %v584_v36 = vpop.f32.mrb[78].mxu0  ;;  %4978 = vmatpush1.bf16.msra.mxu1 %v4977_v25  ;;  %v1770_v40 = vsel %vm970_vm10, %v7345_v47, %v4511_v48  ;;  %v7447_v25 = vadd.f32 %v6885_v53, %v6874_v35 }
 0x184   :  { %v5352_v54 = vpop.eup %5351  ;;  %v1342_v55 = vmul.f32 1.442695, %v1150_v9  ;;  %v7437_v11 = vadd.f32 %v584_v36, %v6874_v35  ;;  %v586_v27 = vpop.f32.mrb[79].mxu0  ;;  %v1771_v46 = vsel %vm971_vm9, %v7350_v33, %v4512_v50  ;;  %v7457_v53 = vadd.f32 %v6917_v26, %v6889_v20 }
 0x185   :  { %v5354_v24 = vpop.eup %5353  ;;  %v1344_v4 = vmul.f32 1.442695, %v1151_v31  ;;  %v7442_v0 = vadd.f32 %v586_v27, %v6889_v20  ;;  %2423 = vmatprep.mubr.f32.mxu1 %v1771_v46  ;;  %v4516_v38 = vadd.f32 -1.0, %v5352_v54  ;;  %vm991_vm2 = vcmp.gt.f32.partialorder %v7425_v59, 0.0 }
 0x186   :  { %5363 = vpow2.f32 %v1342_v55  ;;  %v1155_v61 = vmin.f32 %v7437_v11, 0.0  ;;  %2424 = vmatmul.mubr.f32.gmra.mrb[52].mxu1 %v1770_v40  ;;  %v4517_v33 = vadd.f32 -1.0, %v5354_v24  ;;  %v1374_v55 = vmul.f32 1.442695, %v1166_v41 }
 0x187   :  { %5365 = vpow2.f32 %v1344_v4  ;;  %v1156_v9 = vmin.f32 %v7442_v0, 0.0  ;;  %v7453_v50 = vpop.f32.mrb[80].mxu0  ;;  %v1775_v46 = vsel %vm975_vm12, %v7357_v14, %v4516_v38  ;;  %v7466_v4 = vadd.f32 %v6907_v21, %v6874_v35  ;;  %v2055_v14 = vld [vmem:[%s9714_s4 + $0x448] sm:$0xff] }
 0x188   :  { %v5356_v47 = vpop.eup %5355  ;;  %v1352_v48 = vmul.f32 1.442695, %v1155_v61  ;;  %v1776_v31 = vsel %vm976_vm11, %v7362_v23, %v4517_v33  ;;  %v7461_v36 = vpop.f32.mrb[81].mxu0  ;;  %v1372_v23 = vmul.f32 1.442695, %v1165_v32  ;;  %v1170_v40 = vmin.f32 %v7447_v25, 0.0 }
 0x189   :  { %v5358_v54 = vpop.eup %5357  ;;  %v1354_v27 = vmul.f32 1.442695, %v1156_v9  ;;  %2429 = vmatprep.mubr.f32.mxu1 %v1776_v31  ;;  %v4521_v24 = vadd.f32 -1.0, %v5356_v47  ;;  %v1384_v21 = vmul.f32 1.442695, %v1171_v19  ;;  %v1176_v61 = vmin.f32 %v7457_v53, 0.0 }
 0x18a   :  { %5367 = vpow2.f32 %v1352_v48  ;;  %2430 = vmatmul.mubr.f32.gmra.mrb[54].mxu1 %v1775_v46  ;;  %v4522_v26 = vadd.f32 -1.0, %v5358_v54  ;;  %v2057_v32 = vld [vmem:[%s9714_s4 + $0x458] sm:$0xff]  ;;  %v7487_v48 = vadd.f32 %v6934_v44, %v6889_v20  ;;  %v7493_v54 = vadd.f32 %v6930_v18, %v6874_v35  ;;  %v2054_v44 = vld [vmem:[%s9714_s4 + $0x440] sm:$0xff] }
 0x18b   :  { %5369 = vpow2.f32 %v1354_v27  ;;  %v7475_v41 = vpop.f32.mrb[82].mxu0  ;;  %v1780_v19 = vsel %vm980_vm14, %v7383_v7, %v4521_v24  ;;  %v1382_v46 = vmul.f32 1.442695, %v1170_v40  ;;  %v2056_v7 = vld [vmem:[%s9714_s4 + $0x450] sm:$0xff]  ;;  %v1394_v18 = vmul.f32 1.442695, %v1176_v61 }
 0x18c   :  { %v5360_v38 = vpop.eup %5359  ;;  %v1781_v33 = vsel %vm981_vm13, %v7394_v42, %v4522_v26  ;;  %v7483_v9 = vpop.f32.mrb[83].mxu0  ;;  %5371 = vpow2.f32 %v1374_v55  ;;  %v1175_v42 = vmin.f32 %v7466_v4, 0.0  ;;  %v4979_v55 = vpack.c.bf16 %v2057_v32, %v2055_v14 }
 0x18d   :  { %v5362_v47 = vpop.eup %5361  ;;  %2435 = vmatprep.mubr.f32.mxu1 %v1781_v33  ;;  %v4526_v31 = vadd.f32 -1.0, %v5360_v38  ;;  %5373 = vpow2.f32 %v1372_v23  ;;  %v1181_v14 = vmin.f32 %v7487_v48, 0.0  ;;  %v7511_v33 = vadd.f32 %v6956_v63, %v6889_v20 }
 0x18e   :  { %2436 = vmatmul.mubr.f32.gmra.mrb[56].mxu1 %v1780_v19  ;;  %v4527_v27 = vadd.f32 -1.0, %v5362_v47  ;;  %5375 = vpow2.f32 %v1384_v21  ;;  %4980 = vmatprep.subr.bf16.mxu1 %v4979_v55  ;;  %v1392_v21 = vmul.f32 1.442695, %v1175_v42  ;;  %v1180_v61 = vmin.f32 %v7493_v54, 0.0 }
 0x18f   :  { %v7502_v24 = vpop.f32.mrb[84].mxu0  ;;  %v1785_v32 = vsel %vm985_vm1, %v7402_v13, %v4526_v31  ;;  %v4981_v19 = vpack.c.bf16 %v2056_v7, %v2054_v44  ;;  %5377 = vpow2.f32 %v1382_v46  ;;  %v7524_v13 = vadd.f32 %v6974_v30, %v6889_v20 }
 0x190   :  { %v5364_v26 = vpop.eup %5363  ;;  %v1786_v38 = vsel %vm986_vm15, %v7413_v34, %v4527_v27  ;;  %v7506_v23 = vpop.f32.mrb[85].mxu0  ;;  %v7517_v27 = vadd.f32 %v6952_v43, %v6874_v35  ;;  %5379 = vpow2.f32 %v1394_v18  ;;  %vm990_vm3 = vcmp.gt.f32.partialorder %v7420_v28, 0.0 }
 0x191   :  { %v5366_v40 = vpop.eup %5365  ;;  %2441 = vmatprep.mubr.f32.mxu1 %v1786_v38  ;;  %v4531_v47 = vadd.f32 -1.0, %v5364_v26  ;;  %4982 = vmatpush1.bf16.msra.mxu1 %v4981_v19  ;;  %v1404_v43 = vmul.f32 1.442695, %v1181_v14  ;;  %v1186_v55 = vmin.f32 %v7511_v33, 0.0  ;;  %5381 = vpow2.f32 %v1392_v21 }
 0x192   :  { %2442 = vmatmul.mubr.f32.gmra.mrb[58].mxu1 %v1785_v32  ;;  %v4532_v34 = vadd.f32 -1.0, %v5366_v40  ;;  %v1402_v26 = vmul.f32 1.442695, %v1180_v61  ;;  %v4542_v18 = vadd.f32 -1.0, %v7045_v49  ;;  %v1185_v40 = vmin.f32 %v7517_v27, 0.0 }
 0x193   :  { %v7520_v63 = vpop.f32.mrb[86].mxu0  ;;  %v1790_v44 = vsel %vm990_vm3, %v7420_v28, %v4531_v47  ;;  %v7536_v32 = vadd.f32 %v6971_v29, %v6874_v35  ;;  %vm996_vm4 = vcmp.gt.f32.partialorder %v7442_v0, 0.0  ;;  %vm1001_vm5 = vcmp.gt.f32.partialorder %v6940_v39, 0.0 }
 0x194   :  { %v5368_v38 = vpop.eup %5367  ;;  %v1791_v31 = vsel %vm991_vm2, %v7425_v59, %v4532_v34  ;;  %v7528_v42 = vpop.f32.mrb[87].mxu0  ;;  %v1191_v28 = vmin.f32 %v7524_v13, 0.0  ;;  %v7545_v47 = vadd.f32 %v6990_v57, %v6889_v20  ;;  %vm995_vm6 = vcmp.gt.f32.partialorder %v7437_v11, 0.0 }
 0x195   :  { %v5370_v46 = vpop.eup %5369  ;;  %2447 = vmatprep.mubr.f32.mxu1 %v1791_v31  ;;  %v4536_v7 = vadd.f32 -1.0, %v5368_v38  ;;  %5383 = vpow2.f32 %v1404_v43  ;;  %v1414_v61 = vmul.f32 1.442695, %v1186_v55  ;;  %v4541_v19 = vadd.f32 -1.0, %v7005_v16 }
 0x196   :  { %2448 = vmatmul.mubr.f32.gmra.mrb[60].mxu1 %v1790_v44  ;;  %v4537_v30 = vadd.f32 -1.0, %v5370_v46  ;;  %v5372_v59 = vpop.eup %5371  ;;  %v1801_v31 = vsel %vm1001_vm5, %v6940_v39, %v4542_v18  ;;  %vm1000_vm7 = vcmp.gt.f32.partialorder %v6896_v1, 0.0  ;;  %v1190_v46 = vmin.f32 %v7536_v32, 0.0  ;;  %v2059_v39 = vld [vmem:[%s9714_s4 + $0x468] sm:$0xff]  ;;  %v2061_v44 = vld [vmem:[%s9714_s4 + $0x478] sm:$0xff] }
 0x197   :  { %v7540_v14 = vpop.f32.mrb[88].mxu0  ;;  %v5374_v29 = vpop.eup %5373  ;;  %v1795_v34 = vsel %vm995_vm6, %v7437_v11, %v4536_v7  ;;  %v4547_v57 = vadd.f32 -1.0, %v5372_v59  ;;  %vm1006_vm8 = vcmp.gt.f32.partialorder %v7374_v2, 0.0  ;;  %5385 = vpow2.f32 %v1402_v26 }
 0x198   :  { %v1796_v49 = vsel %vm996_vm4, %v7442_v0, %v4537_v30  ;;  %v7549_v21 = vpop.f32.mrb[89].mxu0  ;;  %v5376_v38 = vpop.eup %5375  ;;  %v1412_v0 = vmul.f32 1.442695, %v1185_v40  ;;  %v1424_v55 = vmul.f32 1.442695, %v1191_v28  ;;  %v7561_v16 = vadd.f32 %v6987_v12, %v6874_v35 }
 0x199   :  { %2453 = vmatprep.mubr.f32.mxu1 %v1796_v49  ;;  %v1196_v11 = vmin.f32 %v7545_v47, 0.0  ;;  %v5378_v30 = vpop.eup %5377  ;;  %5387 = vpow2.f32 %v1414_v61  ;;  %v7574_v26 = vadd.f32 %v7014_v8, %v6889_v20  ;;  %v1800_v12 = vsel %vm1000_vm7, %v6896_v1, %v4541_v19  ;;  %v2058_v49 = vld [vmem:[%s9714_s4 + $0x460] sm:$0xff]  ;;  %v2060_v8 = vld [vmem:[%s9714_s4 + $0x470] sm:$0xff] }
 0x19a   :  { %2454 = vmatmul.mubr.f32.gmra.mrb[62].mxu1 %v1795_v34  ;;  %v4546_v18 = vadd.f32 -1.0, %v5374_v29  ;;  %v5380_v59 = vpop.eup %5379  ;;  %v1806_v40 = vsel %vm1006_vm8, %v7374_v2, %v4547_v57  ;;  %vm1005_vm9 = vcmp.gt.f32.partialorder %v7368_v56, 0.0  ;;  %v4552_v28 = vadd.f32 -1.0, %v5376_v38 }
 0x19b   :  { %2459 = vmatprep.mubr.f32.mxu1 %v1801_v31  ;;  %v7557_v43 = vpop.f32.mrb[90].mxu0  ;;  %5389 = vpow2.f32 %v1412_v0  ;;  %v1422_v1 = vmul.f32 1.442695, %v1190_v46  ;;  %vm1011_vm10 = vcmp.gt.f32.partialorder %v7432_v3, 0.0  ;;  %v4983_v29 = vpack.c.bf16 %v2061_v44, %v2059_v39  ;;  %v5382_v2 = vpop.eup %5381 }
 0x19c   :  { %v7570_v7 = vpop.f32.mrb[91].mxu0  ;;  %5391 = vpow2.f32 %v1424_v55  ;;  %v1195_v34 = vmin.f32 %v7561_v16, 0.0  ;;  %v1434_v19 = vmul.f32 1.442695, %v1196_v11  ;;  %v7595_v38 = vadd.f32 %v7003_v6, %v6874_v35 }
 0x19d   :  { %v1201_v57 = vmin.f32 %v7574_v26, 0.0  ;;  %v1805_v0 = vsel %vm1005_vm9, %v7368_v56, %v4546_v18  ;;  %v4551_v46 = vadd.f32 -1.0, %v5378_v30  ;;  %4984 = vmatprep.subr.bf16.mxu1 %v4983_v29  ;;  %v4985_v39 = vpack.c.bf16 %v2060_v8, %v2058_v49 }
 0x19e   :  { %2460 = vmatmul.mubr.f32.gmra.mrb[64].mxu1 %v1800_v12  ;;  %v1811_v55 = vsel %vm1011_vm10, %v7432_v3, %v4552_v28  ;;  %vm1010_vm11 = vcmp.gt.f32.partialorder %v7447_v25, 0.0  ;;  %v4557_v11 = vadd.f32 -1.0, %v5380_v59  ;;  %5393 = vpow2.f32 %v1422_v1 }
 0x19f   :  { %2465 = vmatprep.mubr.f32.mxu1 %v1806_v40  ;;  %v7590_v61 = vpop.f32.mrb[92].mxu0  ;;  %v5384_v44 = vpop.eup %5383  ;;  %vm1016_vm12 = vcmp.gt.f32.partialorder %v7457_v53, 0.0  ;;  %4986 = vmatpush1.bf16.msra.mxu1 %v4985_v39  ;;  %v1432_v12 = vmul.f32 1.442695, %v1195_v34  ;;  %5395 = vpow2.f32 %v1434_v19  ;;  %v1200_v56 = vmin.f32 %v7595_v38, 0.0 }
 0x1a0   :  { %v7597_v31 = vpop.f32.mrb[93].mxu0  ;;  %v1444_v18 = vmul.f32 1.442695, %v1201_v57  ;;  %v7613_v3 = vadd.f32 %v7030_v37, %v6889_v20  ;;  %v1810_v59 = vsel %vm1010_vm11, %v7447_v25, %v4551_v46  ;;  %v4556_v40 = vadd.f32 -1.0, %v5382_v2 }
 0x1a1   :  { %v5386_v28 = vpop.eup %5385  ;;  %v1816_v49 = vsel %vm1016_vm12, %v7457_v53, %v4557_v11  ;;  %vm1015_vm13 = vcmp.gt.f32.partialorder %v7466_v4, 0.0  ;;  %v4562_v8 = vadd.f32 -1.0, %v5384_v44  ;;  %vm1021_vm14 = vcmp.gt.f32.partialorder %v7487_v48, 0.0 }
 0x1a2   :  { %2466 = vmatmul.mubr.f32.gmra.mrb[66].mxu1 %v1805_v0  ;;  %5397 = vpow2.f32 %v1432_v12  ;;  %v1442_v34 = vmul.f32 1.442695, %v1200_v56  ;;  %v7623_v37 = vadd.f32 %v7027_v60, %v6874_v35  ;;  %v1206_v53 = vmin.f32 %v7613_v3, 0.0 }
 0x1a3   :  { %2471 = vmatprep.mubr.f32.mxu1 %v1811_v55  ;;  %v7606_v6 = vpop.f32.mrb[94].mxu0  ;;  %v5388_v1 = vpop.eup %5387  ;;  %5399 = vpow2.f32 %v1444_v18  ;;  %v1815_v19 = vsel %vm1015_vm13, %v7466_v4, %v4556_v40  ;;  %v4561_v57 = vadd.f32 -1.0, %v5386_v28  ;;  %v1821_v46 = vsel %vm1021_vm14, %v7487_v48, %v4562_v8 }
 0x1a4   :  { %v7609_v30 = vpop.f32.mrb[95].mxu0  ;;  %vm1020_vm15 = vcmp.gt.f32.partialorder %v7493_v54, 0.0  ;;  %v4567_v39 = vadd.f32 -1.0, %v5388_v1  ;;  %vm1026_vm1 = vcmp.gt.f32.partialorder %v7511_v33, 0.0  ;;  %5401 = vpow2.f32 %v1442_v34 }
 0x1a5   :  { %v5390_v2 = vpop.eup %5389  ;;  %v1205_v44 = vmin.f32 %v7623_v37, 0.0  ;;  %v1454_v4 = vmul.f32 1.442695, %v1206_v53  ;;  %v1820_v12 = vsel %vm1020_vm15, %v7493_v54, %v4561_v57  ;;  %v7640_v48 = vadd.f32 %v7048_v10, %v6889_v20 }
 0x1a6   :  { %2472 = vmatmul.mubr.f32.gmra.mrb[68].mxu1 %v1810_v59  ;;  %v5392_v0 = vpop.eup %5391  ;;  %v4566_v56 = vadd.f32 -1.0, %v5390_v2  ;;  %v1826_v59 = vsel %vm1026_vm1, %v7511_v33, %v4567_v39  ;;  %vm1025_vm2 = vcmp.gt.f32.partialorder %v7517_v27, 0.0  ;;  %vm1031_vm3 = vcmp.gt.f32.partialorder %v7524_v13, 0.0 }
 0x1a7   :  { %2477 = vmatprep.mubr.f32.mxu1 %v1816_v49  ;;  %v7619_v29 = vpop.f32.mrb[96].mxu0  ;;  %v4572_v40 = vadd.f32 -1.0, %v5392_v0  ;;  %v7649_v54 = vadd.f32 %v7034_v15, %v6874_v35  ;;  %v1452_v8 = vmul.f32 1.442695, %v1205_v44  ;;  %5403 = vpow2.f32 %v1454_v4 }
 0x1a8   :  { %v7625_v25 = vpop.f32.mrb[97].mxu0  ;;  %v5394_v11 = vpop.eup %5393  ;;  %v1825_v10 = vsel %vm1025_vm2, %v7517_v27, %v4566_v56  ;;  %v1211_v34 = vmin.f32 %v7640_v48, 0.0  ;;  %vm1030_vm4 = vcmp.gt.f32.partialorder %v7536_v32, 0.0  ;;  %vm1036_vm5 = vcmp.gt.f32.partialorder %v7545_v47, 0.0 }
 0x1a9   :  { %v5396_v18 = vpop.eup %5395  ;;  %v4571_v1 = vadd.f32 -1.0, %v5394_v11  ;;  %v1831_v2 = vsel %vm1031_vm3, %v7524_v13, %v4572_v40  ;;  %v1210_v57 = vmin.f32 %v7649_v54, 0.0  ;;  %5405 = vpow2.f32 %v1452_v8  ;;  %v2063_v40 = vld [vmem:[%s9714_s4 + $0x488] sm:$0xff]  ;;  %v2065_v8 = vld [vmem:[%s9714_s4 + $0x498] sm:$0xff] }
 0x1aa   :  { %2478 = vmatmul.mubr.f32.gmra.mrb[70].mxu1 %v1815_v19  ;;  %v4577_v53 = vadd.f32 -1.0, %v5396_v18  ;;  %v7665_v27 = vadd.f32 %v7064_v52, %v6889_v20  ;;  %v1464_v11 = vmul.f32 1.442695, %v1211_v34  ;;  %vm1035_vm6 = vcmp.gt.f32.partialorder %v7561_v16, 0.0 }
 0x1ab   :  { %2483 = vmatprep.mubr.f32.mxu1 %v1821_v46  ;;  %v7632_v60 = vpop.f32.mrb[98].mxu0  ;;  %v1830_v13 = vsel %vm1030_vm4, %v7536_v32, %v4571_v1  ;;  %vm1041_vm7 = vcmp.gt.f32.partialorder %v7574_v26, 0.0  ;;  %v1462_v18 = vmul.f32 1.442695, %v1210_v57  ;;  %vm1040_vm8 = vcmp.gt.f32.partialorder %v7595_v38, 0.0  ;;  %v2064_v57 = vld [vmem:[%s9714_s4 + $0x490] sm:$0xff] }
 0x1ac   :  { %v7634_v55 = vpop.f32.mrb[99].mxu0  ;;  %v5398_v33 = vpop.eup %5397  ;;  %v1836_v44 = vsel %vm1036_vm5, %v7545_v47, %v4577_v53  ;;  %v1216_v52 = vmin.f32 %v7665_v27, 0.0  ;;  %5407 = vpow2.f32 %v1464_v11  ;;  %v7696_v34 = vadd.f32 %v7080_v62, %v6889_v20  ;;  %v5847_v62 = vld [vmem:[%s9715_s3] sm:$0x1f] }
 0x1ad   :  { %v5400_v19 = vpop.eup %5399  ;;  %v4576_v46 = vadd.f32 -1.0, %v5398_v33  ;;  %v4987_v53 = vpack.c.bf16 %v2065_v8, %v2063_v40  ;;  %5409 = vpow2.f32 %v1462_v18  ;;  %vm1046_vm9 = vcmp.gt.f32.partialorder %v7613_v3, 0.0 }
 0x1ae   :  { %2484 = vmatmul.mubr.f32.gmra.mrb[72].mxu1 %v1820_v12  ;;  %v5402_v39 = vpop.eup %5401  ;;  %v4582_v4 = vadd.f32 -1.0, %v5400_v19  ;;  %v2062_v19 = vld [vmem:[%s9714_s4 + $0x480] sm:$0xff]  ;;  %vm1045_vm10 = vcmp.gt.f32.partialorder %v7623_v37, 0.0  ;;  %vm1051_vm11 = vcmp.gt.f32.partialorder %v7640_v48, 0.0  ;;  %vm1050_vm12 = vcmp.gt.f32.partialorder %v7649_v54, 0.0 }
 0x1af   :  { %2489 = vmatprep.mubr.f32.mxu1 %v1826_v59  ;;  %v7645_v28 = vpop.f32.mrb[100].mxu0  ;;  %v1835_v32 = vsel %vm1035_vm6, %v7561_v16, %v4576_v46  ;;  %v7679_v59 = vadd.f32 %v7052_v58, %v6874_v35  ;;  %v115_v16 = vsub.s32 4, %v6674_v51  ;;  %v4581_v1 = vadd.f32 -1.0, %v5402_v39  ;;  %4988 = vmatprep.subr.bf16.mxu1 %v4987_v53 }
 0x1b0   :  { %v7651_v49 = vpop.f32.mrb[101].mxu0  ;;  %v1841_v47 = vsel %vm1041_vm7, %v7574_v26, %v4582_v4  ;;  %v1474_v26 = vmul.f32 1.442695, %v1216_v52  ;;  %v4989_v4 = vpack.c.bf16 %v2064_v57, %v2062_v19  ;;  %v7748_v53 = vadd.f32 %v7084_v22, %v6874_v35  ;;  %v9791_v22 = vld [vmem:[#allocation3_spill] sm:$0xff] }
 0x1b1   :  { %v7709_v39 = vrot.slane %v5847_v62, %v115_v16  ;;  %v7765_v62 = vadd.f32 %v9791_v22, %v6889_v20  ;;  %vm1056_vm13 = vcmp.gt.f32.partialorder %v7665_v27, 0.0  ;;  %vm1055_vm14 = vcmp.gt.f32.partialorder %v7679_v59, 0.0 }
 0x1b2   :  { %2490 = vmatmul.mubr.f32.gmra.mrb[74].mxu1 %v1825_v10  ;;  %v5404_v10 = vpop.eup %5403  ;;  %5411 = vpow2.f32 %v1474_v26  ;;  %vm1061_vm15 = vcmp.gt.f32.partialorder %v7696_v34, 0.0  ;;  %vm1065_vm3 = vcmp.gt.f32.partialorder %v7748_v53, 0.0 }
 0x1b3   :  { %2495 = vmatprep.mubr.f32.mxu1 %v1831_v2  ;;  %v7658_v15 = vpop.f32.mrb[102].mxu0  ;;  %v1840_v2 = vsel %vm1040_vm8, %v7595_v38, %v4581_v1  ;;  %v5406_v46 = vpop.eup %5405  ;;  %v4587_v38 = vadd.f32 -1.0, %v5404_v10  ;;  %4990 = vmatpush1.bf16.msra.mxu1 %v4989_v4  ;;  %v7728_v8 = vadd.f32 %v7625_v25, %v7709_v39  ;;  %v7743_v25 = vadd.f32 %v7632_v60, %v7709_v39 }
 0x1b4   :  { %v7661_v0 = vpop.f32.mrb[103].mxu0  ;;  %v7757_v60 = vadd.f32 %v7634_v55, %v7709_v39  ;;  %v1225_v55 = vmin.f32 %v7748_v53, 0.0  ;;  %vm1071_vm4 = vcmp.gt.f32.partialorder %v7765_v62, 0.0 }
 0x1b5   :  { %v1846_v18 = vsel %vm1046_vm9, %v7613_v3, %v4587_v38  ;;  %v7736_v3 = vadd.f32 %v7096_v5, %v6889_v20  ;;  %v7752_v5 = vadd.f32 %v7100_v45, %v6874_v35  ;;  %v7770_v38 = vadd.f32 %v7651_v49, %v7709_v39 }
 0x1b6   :  { %2496 = vmatmul.mubr.f32.gmra.mrb[76].mxu1 %v1830_v13  ;;  %v1215_v13 = vmin.f32 %v7679_v59, 0.0  ;;  %v5408_v16 = vpop.eup %5407 }
 0x1b7   :  { %2501 = vmatprep.mubr.f32.mxu1 %v1836_v44  ;;  %v7671_v12 = vpop.f32.mrb[104].mxu0  ;;  %v7716_v44 = vadd.f32 %v7068_v17, %v6874_v35  ;;  %v4586_v17 = vadd.f32 -1.0, %v5406_v46  ;;  %v4592_v19 = vadd.f32 -1.0, %v5408_v16  ;;  %v5410_v57 = vpop.eup %5409  ;;  %v7761_v46 = vadd.f32 %v7645_v28, %v7709_v39  ;;  %v9793_v16 = vld [vmem:[#allocation5_spill] sm:$0xff] }
 0x1b8   :  { %v7673_v56 = vpop.f32.mrb[105].mxu0  ;;  %v1472_v40 = vmul.f32 1.442695, %v1215_v13  ;;  %v4591_v28 = vadd.f32 -1.0, %v5410_v57  ;;  %v7782_v49 = vadd.f32 %v9793_v16, %v6889_v20  ;;  %vm1066_vm2 = vcmp.gt.f32.partialorder %v7736_v3, 0.0 }
 0x1b9   :  { %v1220_v1 = vmin.f32 %v7716_v44, 0.0  ;;  %v1851_v45 = vsel %vm1051_vm11, %v7640_v48, %v4592_v19  ;;  %v1231_v48 = vmin.f32 %v7765_v62, 0.0  ;;  %vm1060_vm1 = vcmp.gt.f32.partialorder %v7716_v44, 0.0 }
 0x1ba   :  { %2502 = vmatmul.mubr.f32.gmra.mrb[78].mxu1 %v1835_v32  ;;  %v1221_v32 = vmin.f32 %v7696_v34, 0.0  ;;  %5413 = vpow2.f32 %v1472_v40  ;;  %v9792_v40 = vld [vmem:[#allocation4_spill] sm:$0xff]  ;;  %v1236_v16 = vmin.f32 %v7782_v49, 0.0  ;;  %vm1070_vm5 = vcmp.gt.f32.partialorder %v7752_v5, 0.0 }
 0x1bb   :  { %2507 = vmatprep.mubr.f32.mxu1 %v1841_v47  ;;  %v7690_v58 = vpop.f32.mrb[106].mxu0  ;;  %v7724_v47 = vadd.f32 %v7619_v29, %v7709_v39  ;;  %v1482_v13 = vmul.f32 1.442695, %v1220_v1  ;;  %v1850_v1 = vsel %vm1050_vm12, %v7649_v54, %v4591_v28  ;;  %v7802_v28 = vadd.f32 %v7671_v12, %v7709_v39 }
 0x1bc   :  { %v7692_v33 = vpop.f32.mrb[107].mxu0  ;;  %v1484_v26 = vmul.f32 1.442695, %v1221_v32  ;;  %v5412_v4 = vpop.eup %5411  ;;  %v1230_v32 = vmin.f32 %v7752_v5, 0.0  ;;  %vm1076_vm6 = vcmp.gt.f32.partialorder %v7782_v49, 0.0 }
 0x1bd   :  { %v4597_v57 = vadd.f32 -1.0, %v5412_v4  ;;  %9795 = vst [vmem:[#allocation3_spill] sm:$0xff] %v7802_v28 }
 0x1be   :  { %2508 = vmatmul.mubr.f32.gmra.mrb[80].mxu1 %v1840_v2  ;;  %v1845_v2 = vsel %vm1045_vm10, %v7623_v37, %v4586_v17  ;;  %v1226_v37 = vmin.f32 %v7736_v3, 0.0  ;;  %5415 = vpow2.f32 %v1484_v26  ;;  %v7777_v17 = vadd.f32 %v9792_v40, %v6874_v35 }
 0x1bf   :  { %v7712_v11 = vpop.f32.mrb[108].mxu0  ;;  %2513 = vmatprep.mubr.f32.mxu1 %v1846_v18  ;;  %5417 = vpow2.f32 %v1482_v13  ;;  %v7787_v26 = vadd.f32 %v7658_v15, %v7709_v39  ;;  %v7796_v13 = vadd.f32 %v7661_v0, %v7709_v39  ;;  %v1502_v22 = vmul.f32 1.442695, %v1230_v32 }
 0x1c0   :  { %v7718_v52 = vpop.f32.mrb[109].mxu0  ;;  %v1494_v18 = vmul.f32 1.442695, %v1226_v37  ;;  %v1492_v37 = vmul.f32 1.442695, %v1225_v55  ;;  %v1235_v54 = vmin.f32 %v7777_v17, 0.0  ;;  %v1856_v15 = vsel %vm1056_vm13, %v7665_v27, %v4597_v57 }
 0x1c1   :  { %v1504_v40 = vmul.f32 1.442695, %v1231_v48  ;;  %v7807_v0 = vadd.f32 %v7673_v56, %v7709_v39  ;;  %v9798_v55 = vld [vmem:[#allocation6_spill] sm:$0xff]  ;;  %v9800_v48 = vld [vmem:[#allocation9_spill] sm:$0xff]  ;;  %v7825_v57 = vadd.f32 %v7690_v58, %v7709_v39  ;;  %vm1075_vm7 = vcmp.gt.f32.partialorder %v7777_v17, 0.0 }
 0x1c2   :  { %2514 = vmatmul.mubr.f32.gmra.mrb[82].mxu1 %v1845_v2  ;;  %v9794_v2 = vld [vmem:[#allocation7_spill] sm:$0xff]  ;;  %5419 = vpow2.f32 %v1494_v18  ;;  %v7813_v32 = vadd.f32 %v9798_v55, %v6874_v35 }
 0x1c3   :  { %v7731_v10 = vpop.f32.mrb[110].mxu0  ;;  %2519 = vmatprep.mubr.f32.mxu1 %v1851_v45  ;;  %v7791_v19 = vadd.f32 %v9794_v2, %v6889_v20  ;;  %9796 = vst [vmem:[#allocation4_spill] sm:$0xff] %v7807_v0  ;;  %5421 = vpow2.f32 %v1492_v37  ;;  %v1512_v2 = vmul.f32 1.442695, %v1235_v54  ;;  %9801 = vst [vmem:[#allocation6_spill] sm:$0xff] %v7825_v57 }
 0x1c4   :  { %v7738_v29 = vpop.f32.mrb[111].mxu0  ;;  %v5414_v45 = vpop.eup %5413  ;;  %5423 = vpow2.f32 %v1502_v22  ;;  %vm1080_vm9 = vcmp.gt.f32.partialorder %v7813_v32, 0.0 }
 0x1c5   :  { %v1241_v27 = vmin.f32 %v7791_v19, 0.0  ;;  %v4596_v56 = vadd.f32 -1.0, %v5414_v45  ;;  %5425 = vpow2.f32 %v1504_v40  ;;  %v9803_v45 = vld [vmem:[#allocation8_spill] sm:$0xff]  ;;  %vm1081_vm8 = vcmp.gt.f32.partialorder %v7791_v19, 0.0 }
 0x1c6   :  { %2520 = vmatmul.mubr.f32.gmra.mrb[84].mxu1 %v1850_v1  ;;  %v7821_v1 = vadd.f32 %v9800_v48, %v6889_v20  ;;  %v7834_v22 = vadd.f32 %v9803_v45, %v6874_v35  ;;  %5427 = vpow2.f32 %v1512_v2  ;;  %v9808_v45 = vld [vmem:[#allocation11_spill] sm:$0xff] }
 0x1c7   :  { %2525 = vmatprep.mubr.f32.mxu1 %v1856_v15  ;;  %v1514_v15 = vmul.f32 1.442695, %v1236_v16  ;;  %v1855_v55 = vsel %vm1055_vm14, %v7679_v59, %v4596_v56  ;;  %v1524_v48 = vmul.f32 1.442695, %v1241_v27  ;;  %v9805_v59 = vld [vmem:[#allocation10_spill] sm:$0xff]  ;;  %v7845_v56 = vadd.f32 %v7692_v33, %v7709_v39 }
 0x1c8   :  { %v5416_v18 = vpop.eup %5415  ;;  %v1246_v40 = vmin.f32 %v7821_v1, 0.0  ;;  %v7841_v16 = vadd.f32 %v9805_v59, %v6874_v35  ;;  %v7849_v27 = vadd.f32 %v7712_v11, %v7709_v39  ;;  %v7859_v59 = vadd.f32 %v9808_v45, %v6889_v20 }
 0x1c9   :  { %v5418_v37 = vpop.eup %5417  ;;  %v4602_v54 = vadd.f32 -1.0, %v5416_v18  ;;  %9806 = vst [vmem:[#allocation10_spill] sm:$0xff] %v7845_v56  ;;  %v2067_v18 = vld [vmem:[%s9714_s4 + $0x4a8] sm:$0xff]  ;;  %5429 = vpow2.f32 %v1514_v15  ;;  %v7866_v11 = vadd.f32 %v7718_v52, %v7709_v39  ;;  %v1245_v52 = vmin.f32 %v7834_v22, 0.0 }
 0x1ca   :  { %2526 = vmatmul.mubr.f32.gmra.mrb[86].mxu1 %v1855_v55  ;;  %9807 = vst [vmem:[#allocation22_spill] sm:$0xff] %v7849_v27  ;;  %v2069_v55 = vld [vmem:[%s9714_s4 + $0x4b8] sm:$0xff]  ;;  %v4601_v45 = vadd.f32 -1.0, %v5418_v37  ;;  %5431 = vpow2.f32 %v1524_v48  ;;  %v9814_v48 = vld [vmem:[#allocation12_spill] sm:$0xff]  ;;  %vm1086_vm10 = vcmp.gt.f32.partialorder %v7821_v1, 0.0  ;;  %vm1085_vm11 = vcmp.gt.f32.partialorder %v7834_v22, 0.0 }
 0x1cb   :  { %v1861_v33 = vsel %vm1061_vm15, %v7696_v34, %v4602_v54  ;;  %9809 = vst [vmem:[#allocation11_spill] sm:$0xff] %v7866_v11  ;;  %v4991_v27 = vpack.c.bf16 %v2069_v55, %v2067_v18  ;;  %v2068_v34 = vld [vmem:[%s9714_s4 + $0x4b0] sm:$0xff]  ;;  %v1534_v54 = vmul.f32 1.442695, %v1246_v40  ;;  %v7889_v18 = vadd.f32 %v7731_v10, %v7709_v39 }
 0x1cc   :  { %2531 = vmatprep.mubr.f32.mxu1 %v1861_v33  ;;  %v5420_v2 = vpop.eup %5419  ;;  %v1250_v33 = vmin.f32 %v7841_v16, 0.0  ;;  %v1860_v37 = vsel %vm1060_vm1, %v7716_v44, %v4601_v45  ;;  %v9816_v44 = vld [vmem:[#allocation15_spill] sm:$0xff]  ;;  %vm1091_vm12 = vcmp.gt.f32.partialorder %v7859_v59, 0.0  ;;  %vm1090_vm13 = vcmp.gt.f32.partialorder %v7841_v16, 0.0 }
 0x1cd   :  { %4992 = vmatprep.subr.bf16.mxu1 %v4991_v27  ;;  %v5422_v55 = vpop.eup %5421  ;;  %v4607_v40 = vadd.f32 -1.0, %v5420_v2  ;;  %v7900_v27 = vadd.f32 %v9816_v44, %v6889_v20 }
 0x1ce   :  { %2532 = vmatmul.mubr.f32.gmra.mrb[88].mxu1 %v1860_v37  ;;  %v7907_v37 = vadd.f32 %v7738_v29, %v7709_v39 }
 0x1cf   :  { %v1261_v29 = vmin.f32 %v7900_v27, 0.0  ;;  %vm1101_vm1 = vcmp.gt.f32.partialorder %v7900_v27, 0.0 }
 0x1d0   :  { %9818 = vst [vmem:[#allocation25_spill] sm:$0xff] %v7907_v37 }
 0x1d1   :  { %v7809_v4 = vpop.f32.mrb[112].mxu0 }
 0x1d2   :  { %9797 = vst [vmem:[#allocation5_spill] sm:$0xff] %v7809_v4  ;;  %v7817_v12 = vpop.f32.mrb[113].mxu0  ;;  %v1240_v4 = vmin.f32 %v7813_v32, 0.0 }
 0x1d3   :  { %9799 = vst [vmem:[#allocation7_spill] sm:$0xff] %v7817_v12 }
 0x1d4   :  { %v1522_v51 = vmul.f32 1.442695, %v1240_v4  ;;  %v9812_v4 = vld [vmem:[#allocation13_spill] sm:$0xff] }
 0x1d5   :  { %v7829_v12 = vpop.f32.mrb[114].mxu0  ;;  %v7884_v11 = vadd.f32 %v9812_v4, %v6889_v20  ;;  %9813 = vst [vmem:[#allocation13_spill] sm:$0xff] %v7889_v18  ;;  %v5424_v4 = vpop.eup %5423  ;;  %v1532_v18 = vmul.f32 1.442695, %v1245_v52 }
 0x1d6   :  { %9802 = vst [vmem:[#allocation9_spill] sm:$0xff] %v7829_v12  ;;  %v7836_v58 = vpop.f32.mrb[115].mxu0  ;;  %v5426_v10 = vpop.eup %5425  ;;  %5433 = vpow2.f32 %v1522_v51 }
 0x1d7   :  { %9804 = vst [vmem:[#allocation8_spill] sm:$0xff] %v7836_v58  ;;  %v2066_v58 = vld [vmem:[%s9714_s4 + $0x4a0] sm:$0xff]  ;;  %5435 = vpow2.f32 %v1534_v54  ;;  %v1256_v2 = vmin.f32 %v7884_v11, 0.0  ;;  %v9822_v54 = vld [vmem:[#allocation17_spill] sm:$0xff]  ;;  %vm1096_vm14 = vcmp.gt.f32.partialorder %v7884_v11, 0.0 }
 0x1d8   :  { %v4993_v57 = vpack.c.bf16 %v2068_v34, %v2066_v58  ;;  %v1542_v34 = vmul.f32 1.442695, %v1250_v33  ;;  %5437 = vpow2.f32 %v1532_v18  ;;  %v7923_v33 = vadd.f32 %v9822_v54, %v6889_v20  ;;  %v9824_v54 = vld [vmem:[#allocation16_spill] sm:$0xff] }
 0x1d9   :  { %v7871_v12 = vpop.f32.mrb[116].mxu0  ;;  %v7933_v28 = vadd.f32 %v9824_v54, %v6874_v35 }
 0x1da   :  { %9810 = vst [vmem:[#allocation23_spill] sm:$0xff] %v7871_v12  ;;  %v7877_v15 = vpop.f32.mrb[117].mxu0  ;;  %v1251_v12 = vmin.f32 %v7859_v59, 0.0  ;;  %4994 = vmatpush1.bf16.msra.mxu1 %v4993_v57  ;;  %v4606_v57 = vadd.f32 -1.0, %v5422_v55 }
 0x1db   :  { %9811 = vst [vmem:[#allocation24_spill] sm:$0xff] %v7877_v15  ;;  %v7893_v15 = vadd.f32 %v9814_v48, %v6874_v35  ;;  %v1866_v48 = vsel %vm1066_vm2, %v7736_v3, %v4607_v40  ;;  %v5428_v3 = vpop.eup %5427  ;;  %v1554_v40 = vmul.f32 1.442695, %v1256_v2  ;;  %v4611_v2 = vadd.f32 -1.0, %v5424_v4  ;;  %v2073_v4 = vld [vmem:[%s9714_s4 + $0x4d8] sm:$0xff] }
 0x1dc   :  { %v1544_v58 = vmul.f32 1.442695, %v1251_v12  ;;  %2537 = vmatprep.mubr.f32.mxu1 %v1866_v48  ;;  %v5430_v12 = vpop.eup %5429  ;;  %v4612_v48 = vadd.f32 -1.0, %v5426_v10  ;;  %v1266_v10 = vmin.f32 %v7923_v33, 0.0 }
 0x1dd   :  { %v7896_v56 = vpop.f32.mrb[118].mxu0  ;;  %v1255_v44 = vmin.f32 %v7893_v15, 0.0  ;;  %vm1095_vm15 = vcmp.gt.f32.partialorder %v7893_v15, 0.0 }
 0x1de   :  { %9815 = vst [vmem:[#allocation12_spill] sm:$0xff] %v7896_v56  ;;  %v7902_v45 = vpop.f32.mrb[119].mxu0  ;;  %5439 = vpow2.f32 %v1544_v58  ;;  %v1871_v58 = vsel %vm1071_vm4, %v7765_v62, %v4612_v48  ;;  %v2071_v62 = vld [vmem:[%s9714_s4 + $0x4c8] sm:$0xff]  ;;  %vm1105_vm4 = vcmp.gt.f32.partialorder %v7933_v28, 0.0 }
 0x1df   :  { %9817 = vst [vmem:[#allocation15_spill] sm:$0xff] %v7902_v45  ;;  %v9819_v45 = vld [vmem:[#allocation14_spill] sm:$0xff]  ;;  %5441 = vpow2.f32 %v1542_v34  ;;  %v1552_v37 = vmul.f32 1.442695, %v1255_v44  ;;  %v9826_v34 = vld [vmem:[#allocation19_spill] sm:$0xff] }
 0x1e0   :  { %v7913_v56 = vadd.f32 %v9819_v45, %v6874_v35  ;;  %v1865_v45 = vsel %vm1065_vm3, %v7748_v53, %v4606_v57  ;;  %v7941_v44 = vadd.f32 %v9826_v34, %v6889_v20  ;;  %v4617_v57 = vadd.f32 -1.0, %v5430_v12  ;;  %v9829_v34 = vld [vmem:[#allocation18_spill] sm:$0xff] }
 0x1e1   :  { %v7916_v51 = vpop.f32.mrb[120].mxu0  ;;  %2538 = vmatmul.mubr.f32.gmra.mrb[90].mxu1 %v1865_v45  ;;  %5443 = vpow2.f32 %v1554_v40  ;;  %v4616_v45 = vadd.f32 -1.0, %v5428_v3  ;;  %v2072_v3 = vld [vmem:[%s9714_s4 + $0x4d0] sm:$0xff]  ;;  %vm1106_vm3 = vcmp.gt.f32.partialorder %v7923_v33, 0.0 }
 0x1e2   :  { %9820 = vst [vmem:[#allocation14_spill] sm:$0xff] %v7916_v51  ;;  %v7919_v52 = vpop.f32.mrb[121].mxu0  ;;  %v5432_v51 = vpop.eup %5431  ;;  %v1260_v55 = vmin.f32 %v7913_v56, 0.0  ;;  %2543 = vmatprep.mubr.f32.mxu1 %v1871_v58  ;;  %5445 = vpow2.f32 %v1552_v37  ;;  %v1876_v54 = vsel %vm1076_vm6, %v7782_v49, %v4617_v57  ;;  %v1265_v37 = vmin.f32 %v7933_v28, 0.0 }
 0x1e3   :  { %9821 = vst [vmem:[#allocation26_spill] sm:$0xff] %v7919_v52  ;;  %v1564_v52 = vmul.f32 1.442695, %v1261_v29  ;;  %v1870_v29 = vsel %vm1070_vm5, %v7752_v5, %v4611_v2  ;;  %v5434_v48 = vpop.eup %5433  ;;  %v4622_v12 = vadd.f32 -1.0, %v5432_v51  ;;  %v2070_v5 = vld [vmem:[%s9714_s4 + $0x4c0] sm:$0xff]  ;;  %v7967_v57 = vadd.f32 %v9829_v34, %v6874_v35 }
 0x1e4   :  { %v5436_v58 = vpop.eup %5435  ;;  %v1562_v2 = vmul.f32 1.442695, %v1260_v55  ;;  %v1574_v51 = vmul.f32 1.442695, %v1266_v10  ;;  %v4621_v55 = vadd.f32 -1.0, %v5434_v48  ;;  %vm1100_vm2 = vcmp.gt.f32.partialorder %v7913_v56, 0.0 }
 0x1e5   :  { %v7929_v18 = vpop.f32.mrb[122].mxu0  ;;  %2544 = vmatmul.mubr.f32.gmra.mrb[92].mxu1 %v1870_v29  ;;  %5447 = vpow2.f32 %v1564_v52  ;;  %v1271_v29 = vmin.f32 %v7941_v44, 0.0  ;;  %v1875_v52 = vsel %vm1075_vm7, %v7777_v17, %v4616_v45  ;;  %v5438_v0 = vpop.eup %5437  ;;  %v1881_v10 = vsel %vm1081_vm8, %v7791_v19, %v4622_v12  ;;  %v9831_v19 = vld [vmem:[#allocation20_spill] sm:$0xff] }
 0x1e6   :  { %9823 = vst [vmem:[#allocation17_spill] sm:$0xff] %v7929_v18  ;;  %v7936_v53 = vpop.f32.mrb[123].mxu0  ;;  %2549 = vmatprep.mubr.f32.mxu1 %v1876_v54  ;;  %v4997_v54 = vpack.c.bf16 %v2072_v3, %v2070_v5  ;;  %v4627_v34 = vadd.f32 -1.0, %v5436_v58  ;;  %5449 = vpow2.f32 %v1562_v2  ;;  %v1270_v45 = vmin.f32 %v7967_v57, 0.0  ;;  %v2077_v58 = vld [vmem:[%s9714_s4 + $0x4f8] sm:$0xff] }
 0x1e7   :  { %9825 = vst [vmem:[#allocation16_spill] sm:$0xff] %v7936_v53  ;;  %v4995_v53 = vpack.c.bf16 %v2073_v4, %v2071_v62  ;;  %v1572_v4 = vmul.f32 1.442695, %v1265_v37  ;;  %v1584_v48 = vmul.f32 1.442695, %v1271_v29  ;;  %v7987_v12 = vadd.f32 %v9831_v19, %v6874_v35  ;;  %v2074_v37 = vld [vmem:[%s9714_s4 + $0x4e0] sm:$0xff] }
 0x1e8   :  { %v5440_v62 = vpop.eup %5439  ;;  %5451 = vpow2.f32 %v1574_v51  ;;  %v1880_v5 = vsel %vm1080_vm9, %v7813_v32, %v4621_v55  ;;  %v4626_v3 = vadd.f32 -1.0, %v5438_v0  ;;  %v1886_v35 = vsel %vm1086_vm10, %v7821_v1, %v4627_v34  ;;  %v2076_v0 = vld [vmem:[%s9714_s4 + $0x4f0] sm:$0xff] }
 0x1e9   :  { %v7959_v40 = vpop.f32.mrb[124].mxu0  ;;  %2550 = vmatmul.mubr.f32.gmra.mrb[94].mxu1 %v1875_v52  ;;  %4996 = vmatprep.subr.bf16.mxu1 %v4995_v53  ;;  %v5442_v17 = vpop.eup %5441  ;;  %v4632_v2 = vadd.f32 -1.0, %v5440_v62  ;;  %v8011_v29 = vadd.f32 %v7461_v36, %v7709_v39  ;;  %5453 = vpow2.f32 %v1572_v4  ;;  %v1582_v55 = vmul.f32 1.442695, %v1270_v45 }
 0x1ea   :  { %9827 = vst [vmem:[#allocation19_spill] sm:$0xff] %v7959_v40  ;;  %v7963_v49 = vpop.f32.mrb[125].mxu0  ;;  %v9830_v40 = vld [vmem:[#allocation21_spill] sm:$0xff]  ;;  %2555 = vmatprep.mubr.f32.mxu1 %v1881_v10  ;;  %4998 = vmatpush1.bf16.msra.mxu1 %v4997_v54  ;;  %5455 = vpow2.f32 %v1584_v48  ;;  %v1275_v54 = vmin.f32 %v7987_v12, 0.0  ;;  %v1885_v19 = vsel %vm1085_vm11, %v7834_v22, %v4626_v3  ;;  %v4631_v36 = vadd.f32 -1.0, %v5442_v17 }
 0x1eb   :  { %9828 = vst [vmem:[#allocation27_spill] sm:$0xff] %v7963_v49  ;;  %v7972_v18 = vadd.f32 %v9830_v40, %v6889_v20  ;;  %v2075_v40 = vld [vmem:[%s9714_s4 + $0x4e8] sm:$0xff]  ;;  %v5444_v51 = vpop.eup %5443  ;;  %v1891_v4 = vsel %vm1091_vm12, %v7859_v59, %v4632_v2  ;;  %v8029_v22 = vadd.f32 %v7453_v50, %v7709_v39  ;;  %v1122_v17 = vmin.f32 %v8011_v29, 0.0 }
 0x1ec   :  { %v5446_v52 = vpop.eup %5445  ;;  %v4999_v10 = vpack.c.bf16 %v2077_v58, %v2075_v40  ;;  %5457 = vpow2.f32 %v1582_v55  ;;  %v1592_v59 = vmul.f32 1.442695, %v1275_v54  ;;  %vm1111_vm5 = vcmp.gt.f32.partialorder %v7941_v44, 0.0 }
 0x1ed   :  { %v7979_v49 = vpop.f32.mrb[126].mxu0  ;;  %v1276_v53 = vmin.f32 %v7972_v18, 0.0  ;;  %2556 = vmatmul.mubr.f32.gmra.mrb[96].mxu1 %v1880_v5  ;;  %v5001_v5 = vpack.c.bf16 %v2076_v0, %v2074_v37  ;;  %v4636_v3 = vadd.f32 -1.0, %v5446_v52  ;;  %v1286_v55 = vmul.f32 1.442695, %v1122_v17 }
 0x1ee   :  { %v7982_v20 = vpop.f32.mrb[127].mxu0  ;;  %2561 = vmatprep.mubr.f32.mxu1 %v1886_v35  ;;  %v4637_v35 = vadd.f32 -1.0, %v5444_v51  ;;  %5000 = vmatprep.subr.bf16.mxu1 %v4999_v10  ;;  %v1127_v51 = vmin.f32 %v8029_v22, 0.0  ;;  %vm1110_vm6 = vcmp.gt.f32.partialorder %v7967_v57, 0.0  ;;  %vm1116_vm7 = vcmp.gt.f32.partialorder %v7972_v18, 0.0 }
 0x1ef   :  { %v5448_v34 = vpop.eup %5447  ;;  %v1594_v62 = vmul.f32 1.442695, %v1276_v53  ;;  %5002 = vmatpush1.bf16.msra.mxu1 %v5001_v5  ;;  %v1890_v53 = vsel %vm1090_vm13, %v7841_v16, %v4631_v36  ;;  %v8043_v16 = vadd.f32 %v7483_v9, %v7709_v39  ;;  %v1895_v52 = vsel %vm1095_vm15, %v7893_v15, %v4636_v3  ;;  %v3085_v9 = vld [vmem:[%s9716_s1] sm:$0xff] }
 0x1f0   :  { %v5450_v40 = vpop.eup %5449  ;;  %v1896_v58 = vsel %vm1096_vm14, %v7884_v11, %v4637_v35  ;;  %v4642_v2 = vadd.f32 -1.0, %v5448_v34  ;;  %v1296_v15 = vmul.f32 1.442695, %v1127_v51  ;;  %v8058_v5 = vadd.f32 %v7475_v41, %v7709_v39  ;;  %3149 = vrot.lane.b32.xlu0 %v3085_v9, %s5849_s7  ;;  %v3086_v41 = vld [vmem:[%s9716_s1 + $0x8] sm:$0xff] }
 0x1f1   :  { %v8007_v32 = vpop.f32.mrb[128].mxu0  ;;  %2562 = vmatmul.mubr.f32.gmra.mrb[98].mxu1 %v1885_v19  ;;  %5459 = vpow2.f32 %v1594_v62  ;;  %v4641_v54 = vadd.f32 -1.0, %v5450_v40  ;;  %vm1115_vm8 = vcmp.gt.f32.partialorder %v7987_v12, 0.0  ;;  %vm962_vm9 = vcmp.gt.f32.partialorder %v8011_v29, 0.0 }
 0x1f2   :  { %v8014_v1 = vpop.f32.mrb[129].mxu0  ;;  %2567 = vmatprep.mubr.f32.mxu1 %v1891_v4  ;;  %v5452_v0 = vpop.eup %5451  ;;  %5461 = vpow2.f32 %v1592_v59  ;;  %v1901_v34 = vsel %vm1101_vm1, %v7900_v27, %v4642_v2  ;;  %v1132_v27 = vmin.f32 %v8043_v16, 0.0  ;;  %vm967_vm10 = vcmp.gt.f32.partialorder %v8029_v22, 0.0 }
 0x1f3   :  { %v5454_v11 = vpop.eup %5453  ;;  %v4647_v62 = vadd.f32 -1.0, %v5452_v0  ;;  %5463 = vpow2.f32 %v1286_v55  ;;  %v1900_v4 = vsel %vm1100_vm2, %v7913_v56, %v4641_v54  ;;  %v1137_v56 = vmin.f32 %v8058_v5, 0.0 }
 0x1f4   :  { %v5456_v10 = vpop.eup %5455  ;;  %v4646_v35 = vadd.f32 -1.0, %v5454_v11  ;;  %5465 = vpow2.f32 %v1296_v15  ;;  %v1306_v2 = vmul.f32 1.442695, %v1132_v27  ;;  %3151 = vrot.lane.b32.xlu0 %v3086_v41, %s5849_s7  ;;  %vm972_vm11 = vcmp.gt.f32.partialorder %v8043_v16, 0.0 }
 0x1f5   :  { %v8022_v45 = vpop.f32.mrb[130].mxu0  ;;  %2568 = vmatmul.mubr.f32.gmra.mrb[100].mxu1 %v1890_v53  ;;  %v1906_v59 = vsel %vm1106_vm3, %v7923_v33, %v4647_v62  ;;  %v4652_v53 = vadd.f32 -1.0, %v5456_v10  ;;  %v8076_v33 = vadd.f32 %v7506_v23, %v7709_v39  ;;  %v3087_v10 = vld [vmem:[%s9716_s1 + $0x10] sm:$0xff]  ;;  %vm977_vm12 = vcmp.gt.f32.partialorder %v8058_v5, 0.0 }
 0x1f6   :  { %v8025_v48 = vpop.f32.mrb[131].mxu0  ;;  %2573 = vmatprep.mubr.f32.mxu1 %v1896_v58  ;;  %v5458_v17 = vpop.eup %5457  ;;  %v1905_v0 = vsel %vm1105_vm4, %v7933_v28, %v4646_v35  ;;  %3153 = vrot.lane.b32.xlu1 %v3087_v10, %s5849_s7  ;;  %v1316_v28 = vmul.f32 1.442695, %v1137_v56  ;;  %5467 = vpow2.f32 %v1306_v2  ;;  %v3088_v35 = vld [vmem:[%s9716_s1 + $0x18] sm:$0xff]  ;;  %v3089_v56 = vld [vmem:[%s9716_s1 + $0x20] sm:$0xff]  ;;  %v3090_v2 = vld [vmem:[%s9716_s1 + $0x28] sm:$0xff] }
 0x1f7   :  { %v4651_v51 = vadd.f32 -1.0, %v5458_v17  ;;  %v1911_v11 = vsel %vm1111_vm5, %v7941_v44, %v4652_v53  ;;  %v8093_v44 = vadd.f32 %v7502_v24, %v7709_v39  ;;  %vm982_vm13 = vcmp.gt.f32.partialorder %v8076_v33, 0.0 }
 0x1f8   :  { %5469 = vpow2.f32 %v1316_v28  ;;  %3157 = vrot.lane.b32.xlu0 %v3089_v56, %s5849_s7  ;;  %v3092_v28 = vld [vmem:[%s9716_s1 + $0x38] sm:$0xff] }
 0x1f9   :  { %v8035_v37 = vpop.f32.mrb[132].mxu0  ;;  %2574 = vmatmul.mubr.f32.gmra.mrb[102].mxu1 %v1895_v52  ;;  %v1910_v62 = vsel %vm1110_vm6, %v7967_v57, %v4651_v51  ;;  %v1147_v57 = vmin.f32 %v8093_v44, 0.0  ;;  %v8128_v51 = vadd.f32 %v7520_v63, %v7709_v39  ;;  %vm987_vm14 = vcmp.gt.f32.partialorder %v8093_v44, 0.0 }
 0x1fa   :  { %v8038_v50 = vpop.f32.mrb[133].mxu0  ;;  %2579 = vmatprep.mubr.f32.mxu1 %v1901_v34  ;;  %v1142_v34 = vmin.f32 %v8076_v33, 0.0  ;;  %3155 = vrot.lane.b32.xlu1 %v3088_v35, %s5849_s7 }
 0x1fb   :  { %v5460_v40 = vpop.eup %5459  ;;  %vm997_vm1 = vcmp.gt.f32.partialorder %v8128_v51, 0.0 }
 0x1fc   :  { %v5462_v55 = vpop.eup %5461  ;;  %v4657_v52 = vadd.f32 -1.0, %v5460_v40  ;;  %v1326_v17 = vmul.f32 1.442695, %v1142_v34 }
 0x1fd   :  { %v8048_v19 = vpop.f32.mrb[134].mxu0  ;;  %2580 = vmatmul.mubr.f32.gmra.mrb[104].mxu1 %v1900_v4  ;;  %v4656_v9 = vadd.f32 -1.0, %v5462_v55  ;;  %v5464_v15 = vpop.eup %5463 }
 0x1fe   :  { %v8051_v36 = vpop.f32.mrb[135].mxu0  ;;  %2585 = vmatprep.mubr.f32.mxu1 %v1906_v59  ;;  %v1916_v27 = vsel %vm1116_vm7, %v7972_v18, %v4657_v52  ;;  %v8110_v18 = vadd.f32 %v7528_v42, %v7709_v39  ;;  %v4503_v59 = vadd.f32 -1.0, %v5464_v15  ;;  %v5466_v41 = vpop.eup %5465  ;;  %5471 = vpow2.f32 %v1326_v17  ;;  %3159 = vrot.lane.b32.xlu1 %v3090_v2, %s5849_s7  ;;  %v3094_v17 = vld [vmem:[%s9716_s1 + $0x48] sm:$0xff]  ;;  %v3095_v2 = vld [vmem:[%s9716_s1 + $0x50] sm:$0xff] }
 0x1ff   :  { %v1915_v53 = vsel %vm1115_vm8, %v7987_v12, %v4656_v9  ;;  %v1336_v12 = vmul.f32 1.442695, %v1147_v57  ;;  %v4508_v10 = vadd.f32 -1.0, %v5466_v41  ;;  %v8149_v15 = vadd.f32 %v7549_v21, %v7709_v39 }
 0x200   :  { %v1152_v55 = vmin.f32 %v8110_v18, 0.0  ;;  %v1762_v52 = vsel %vm962_vm9, %v8011_v29, %v4503_v59  ;;  %v5468_v34 = vpop.eup %5467  ;;  %v1157_v29 = vmin.f32 %v8128_v51, 0.0  ;;  %vm992_vm15 = vcmp.gt.f32.partialorder %v8110_v18, 0.0 }
 0x201   :  { %v8065_v3 = vpop.f32.mrb[136].mxu0  ;;  %2586 = vmatmul.mubr.f32.gmra.mrb[106].mxu1 %v1905_v0  ;;  %v9832_v0 = vmov 0.0   ;;  %5473 = vpow2.f32 %v1336_v12  ;;  %v1767_v35 = vsel %vm967_vm10, %v8029_v22, %v4508_v10  ;;  %v4513_v57 = vadd.f32 -1.0, %v5468_v34 }
 0x202   :  { %v8071_v58 = vpop.f32.mrb[137].mxu0  ;;  %2591 = vmatprep.mubr.f32.mxu1 %v1911_v11  ;;  %v3091_v11 = vld [vmem:[%s9716_s1 + $0x30] sm:$0xff]  ;;  %v1346_v9 = vmul.f32 1.442695, %v1152_v55  ;;  %3163 = vrot.lane.b32.xlu1 %v3092_v28, %s5849_s7  ;;  %v5470_v59 = vpop.eup %5469  ;;  %v1356_v41 = vmul.f32 1.442695, %v1157_v29  ;;  %v8168_v22 = vadd.f32 %v7540_v14, %v7709_v39  ;;  %v8189_v34 = vadd.f32 %v7570_v7, %v7709_v39 }
 0x203   :  { %3161 = vrot.lane.b32.xlu0 %v3091_v11, %s5849_s7  ;;  %v1162_v56 = vmin.f32 %v8149_v15, 0.0  ;;  %v1772_v12 = vsel %vm972_vm11, %v8043_v16, %v4513_v57  ;;  %v4518_v55 = vadd.f32 -1.0, %v5470_v59  ;;  %v3096_v11 = vld [vmem:[%s9716_s1 + $0x58] sm:$0xff]  ;;  %v3097_v29 = vld [vmem:[%s9716_s1 + $0x60] sm:$0xff]  ;;  %vm1002_vm2 = vcmp.gt.f32.partialorder %v8149_v15, 0.0 }
 0x204   :  { %5475 = vpow2.f32 %v1346_v9  ;;  %v1167_v16 = vmin.f32 %v8168_v22, 0.0  ;;  %vm1007_vm3 = vcmp.gt.f32.partialorder %v8168_v22, 0.0  ;;  %vm1012_vm4 = vcmp.gt.f32.partialorder %v8189_v34, 0.0 }
 0x205   :  { %v8082_v54 = vpop.f32.mrb[138].mxu0  ;;  %2592 = vmatmul.mubr.f32.gmra.mrb[108].mxu1 %v1910_v62  ;;  %5477 = vpow2.f32 %v1356_v41  ;;  %v1366_v28 = vmul.f32 1.442695, %v1162_v56  ;;  %v1777_v9 = vsel %vm977_vm12, %v8058_v5, %v4518_v55  ;;  %v8208_v5 = vadd.f32 %v7557_v43, %v7709_v39  ;;  %v3099_v56 = vld [vmem:[%s9716_s1 + $0x70] sm:$0xff]  ;;  %v3100_v55 = vld [vmem:[%s9716_s1 + $0x78] sm:$0xff] }
 0x206   :  { %v8088_v23 = vpop.f32.mrb[139].mxu0  ;;  %2597 = vmatprep.mubr.f32.mxu1 %v1916_v27  ;;  %v3093_v27 = vld [vmem:[%s9716_s1 + $0x40] sm:$0xff]  ;;  %3167 = vrot.lane.b32.xlu1 %v3094_v17, %s5849_s7  ;;  %v1376_v59 = vmul.f32 1.442695, %v1167_v16  ;;  %v1172_v41 = vmin.f32 %v8189_v34, 0.0  ;;  %vm1042_vm10 = vcmp.gt.f32.partialorder %v7728_v8, 0.0 }
 0x207   :  { %3165 = vrot.lane.b32.xlu0 %v3093_v27, %s5849_s7  ;;  %5479 = vpow2.f32 %v1366_v28  ;;  %v8229_v28 = vadd.f32 %v7597_v31, %v7709_v39  ;;  %vm1017_vm5 = vcmp.gt.f32.partialorder %v8208_v5, 0.0  ;;  %vm1047_vm11 = vcmp.gt.f32.partialorder %v7724_v47, 0.0 }
 0x208   :  { %5481 = vpow2.f32 %v1376_v59  ;;  %v1386_v16 = vmul.f32 1.442695, %v1172_v41  ;;  %vm1052_vm12 = vcmp.gt.f32.partialorder %v7757_v60, 0.0 }
 0x209   :  { %v8099_v4 = vpop.f32.mrb[140].mxu0  ;;  %2598 = vmatmul.mubr.f32.gmra.mrb[110].mxu1 %v1915_v53  ;;  %vm1022_vm6 = vcmp.gt.f32.partialorder %v8229_v28, 0.0 }
 0x20a   :  { %v8104_v24 = vpop.f32.mrb[141].mxu0  ;;  %2668 = vmatprep.mubr.f32.mxu1 %v9832_v0  ;;  %3171 = vrot.lane.b32.xlu1 %v3096_v11, %s5849_s7  ;;  %5483 = vpow2.f32 %v1386_v16 }
 0x20b   :  { %3169 = vrot.lane.b32.xlu0 %v3095_v2, %s5849_s7 }
 0x20d   :  { %v8114_v40 = vpop.f32.mrb[142].mxu0  ;;  %2669 = vmatmul.mubr.f32.vlgmr.msra.gmra.mrb[48].mxu1 %v1762_v52  ;;  %v5472_v52 = vpop.eup %5471 }
 0x20e   :  { %v8123_v42 = vpop.f32.mrb[143].mxu0  ;;  %2674 = vmatprep.mubr.f32.mxu1 %v9832_v0  ;;  %v4523_v27 = vadd.f32 -1.0, %v5472_v52  ;;  %v5474_v57 = vpop.eup %5473 }
 0x20f   :  { %3173 = vrot.lane.b32.xlu0 %v3097_v29, %s5849_s7  ;;  %v5476_v11 = vpop.eup %5475  ;;  %v3101_v29 = vld [vmem:[%s9716_s1 + $0x80] sm:$0xff] }
 0x210   :  { %v1782_v2 = vsel %vm982_vm13, %v8076_v33, %v4523_v27  ;;  %v1177_v33 = vmin.f32 %v8208_v5, 0.0  ;;  %v4533_v27 = vadd.f32 -1.0, %v5476_v11  ;;  %v3104_v11 = vld [vmem:[%s9716_s1 + $0x98] sm:$0xff]  ;;  %vm1057_vm13 = vcmp.gt.f32.partialorder %v7743_v25, 0.0 }
 0x211   :  { %v8140_v63 = vpop.f32.mrb[144].mxu0  ;;  %2675 = vmatmul.mubr.f32.gmra.mrb[50].mxu1 %v1767_v35  ;;  %v3098_v35 = vld [vmem:[%s9716_s1 + $0x68] sm:$0xff] }
 0x212   :  { %v8143_v62 = vpop.f32.mrb[145].mxu0  ;;  %2680 = vmatprep.mubr.f32.mxu1 %v9832_v0  ;;  %3175 = vrot.lane.b32.xlu1 %v3098_v35, %s5849_s7  ;;  %v3102_v35 = vld [vmem:[%s9716_s1 + $0x88] sm:$0xff]  ;;  %v1396_v41 = vmul.f32 1.442695, %v1177_v33 }
 0x213   :  { %3177 = vrot.lane.b32.xlu0 %v3099_v56, %s5849_s7  ;;  %v1182_v56 = vmin.f32 %v8229_v28, 0.0 }
 0x214   :  { %5485 = vpow2.f32 %v1396_v41  ;;  %v3106_v41 = vld [vmem:[%s9716_s1 + $0xa8] sm:$0xff] }
 0x215   :  { %v8160_v53 = vpop.f32.mrb[146].mxu0  ;;  %2681 = vmatmul.mubr.f32.gmra.mrb[52].mxu1 %v1772_v12  ;;  %v4528_v12 = vadd.f32 -1.0, %v5474_v57  ;;  %v5478_v57 = vpop.eup %5477 }
 0x216   :  { %v8163_v21 = vpop.f32.mrb[147].mxu0  ;;  %2686 = vmatprep.mubr.f32.mxu1 %v9832_v0  ;;  %3179 = vrot.lane.b32.xlu1 %v3100_v55, %s5849_s7  ;;  %v4538_v55 = vadd.f32 -1.0, %v5478_v57  ;;  %v5480_v33 = vpop.eup %5479 }
 0x217   :  { %3181 = vrot.lane.b32.xlu0 %v3101_v29, %s5849_s7  ;;  %v1406_v29 = vmul.f32 1.442695, %v1182_v56  ;;  %v4543_v57 = vadd.f32 -1.0, %v5480_v33 }
 0x219   :  { %v8180_v14 = vpop.f32.mrb[148].mxu0  ;;  %2687 = vmatmul.mubr.f32.gmra.mrb[54].mxu1 %v1777_v9  ;;  %v1787_v9 = vsel %vm987_vm14, %v8093_v44, %v4528_v12  ;;  %v8248_v44 = vadd.f32 %v7590_v61, %v7709_v39  ;;  %v1792_v12 = vsel %vm992_vm15, %v8110_v18, %v4533_v27  ;;  %v3105_v27 = vld [vmem:[%s9716_s1 + $0xa0] sm:$0xff]  ;;  %5487 = vpow2.f32 %v1406_v29 }
 0x21a   :  { %v8183_v10 = vpop.f32.mrb[149].mxu0  ;;  %2692 = vmatprep.mubr.f32.mxu1 %v9832_v0  ;;  %3183 = vrot.lane.b32.xlu1 %v3102_v35, %s5849_s7  ;;  %v1797_v35 = vsel %vm997_vm1, %v8128_v51, %v4538_v55  ;;  %v8288_v51 = vadd.f32 %v7606_v6, %v7709_v39  ;;  %v1802_v33 = vsel %vm1002_vm2, %v8149_v15, %v4543_v57  ;;  %v3109_v57 = vld [vmem:[%s9716_s1 + $0xc0] sm:$0xff]  ;;  %vm1062_vm14 = vcmp.gt.f32.partialorder %v7770_v38, 0.0 }
 0x21b   :  { %v1187_v18 = vmin.f32 %v8248_v44, 0.0  ;;  %vm1027_vm7 = vcmp.gt.f32.partialorder %v8248_v44, 0.0  ;;  %vm1067_vm15 = vcmp.gt.f32.partialorder %v7761_v46, 0.0  ;;  %vm1072_vm1 = vcmp.gt.f32.partialorder %v7796_v13, 0.0 }
 0x21c   :  { %v1197_v15 = vmin.f32 %v8288_v51, 0.0  ;;  %vm1037_vm9 = vcmp.gt.f32.partialorder %v8288_v51, 0.0  ;;  %vm1077_vm2 = vcmp.gt.f32.partialorder %v7787_v26, 0.0 }
 0x21d   :  { %v8200_v17 = vpop.f32.mrb[150].mxu0  ;;  %2693 = vmatmul.mubr.f32.gmra.mrb[56].mxu1 %v1782_v2  ;;  %v3103_v2 = vld [vmem:[%s9716_s1 + $0x90] sm:$0xff] }
 0x21e   :  { %v8203_v7 = vpop.f32.mrb[151].mxu0  ;;  %2698 = vmatprep.mubr.f32.mxu1 %v9832_v0  ;;  %3185 = vrot.lane.b32.xlu0 %v3103_v2, %s5849_s7  ;;  %v5482_v2 = vpop.eup %5481 }
 0x21f   :  { %3187 = vrot.lane.b32.xlu1 %v3104_v11, %s5849_s7  ;;  %v3107_v11 = vld [vmem:[%s9716_s1 + $0xb0] sm:$0xff]  ;;  %v5484_v29 = vpop.eup %5483 }
 0x221   :  { %v8220_v43 = vpop.f32.mrb[152].mxu0  ;;  %2699 = vmatmul.mubr.f32.gmra.mrb[58].mxu1 %v1787_v9  ;;  %v8269_v9 = vadd.f32 %v7609_v30, %v7709_v39 }
 0x222   :  { %v8223_v52 = vpop.f32.mrb[153].mxu0  ;;  %2704 = vmatprep.mubr.f32.mxu1 %v9832_v0  ;;  %3189 = vrot.lane.b32.xlu0 %v3105_v27, %s5849_s7 }
 0x223   :  { %v1192_v55 = vmin.f32 %v8269_v9, 0.0  ;;  %3191 = vrot.lane.b32.xlu1 %v3106_v41, %s5849_s7  ;;  %vm1032_vm8 = vcmp.gt.f32.partialorder %v8269_v9, 0.0 }
 0x225   :  { %v8240_v59 = vpop.f32.mrb[154].mxu0  ;;  %2705 = vmatmul.mubr.f32.gmra.mrb[60].mxu1 %v1792_v12  ;;  %v1416_v12 = vmul.f32 1.442695, %v1187_v18  ;;  %v3108_v18 = vld [vmem:[%s9716_s1 + $0xb8] sm:$0xff]  ;;  %v1426_v27 = vmul.f32 1.442695, %v1192_v55 }
 0x226   :  { %v8243_v31 = vpop.f32.mrb[155].mxu0  ;;  %2710 = vmatprep.mubr.f32.mxu1 %v9832_v0  ;;  %3193 = vrot.lane.b32.xlu0 %v3107_v11, %s5849_s7  ;;  %v1436_v11 = vmul.f32 1.442695, %v1197_v15  ;;  %v1207_v15 = vmin.f32 %v7724_v47, 0.0 }
 0x227   :  { %5489 = vpow2.f32 %v1416_v12  ;;  %3195 = vrot.lane.b32.xlu1 %v3108_v18, %s5849_s7 }
 0x228   :  { %5491 = vpow2.f32 %v1426_v27 }
 0x229   :  { %v8260_v61 = vpop.f32.mrb[156].mxu0  ;;  %2711 = vmatmul.mubr.f32.gmra.mrb[62].mxu1 %v1797_v35  ;;  %v4548_v35 = vadd.f32 -1.0, %v5482_v2  ;;  %v4553_v2 = vadd.f32 -1.0, %v5484_v29  ;;  %5493 = vpow2.f32 %v1436_v11  ;;  %v1212_v11 = vmin.f32 %v7757_v60, 0.0 }
 0x22a   :  { %v8263_v16 = vpop.f32.mrb[157].mxu0  ;;  %2716 = vmatprep.mubr.f32.mxu1 %v9832_v0  ;;  %3197 = vrot.lane.b32.xlu0 %v3109_v57, %s5849_s7 }
 0x22b   :  { %v1807_v41 = vsel %vm1007_vm3, %v8168_v22, %v4548_v35  ;;  %v1202_v22 = vmin.f32 %v7728_v8, 0.0  ;;  %v1812_v35 = vsel %vm1012_vm4, %v8189_v34, %v4553_v2  ;;  %v1456_v2 = vmul.f32 1.442695, %v1207_v15 }
 0x22c   :  { %v1466_v15 = vmul.f32 1.442695, %v1212_v11 }
 0x22d   :  { %v8280_v56 = vpop.f32.mrb[158].mxu0  ;;  %2717 = vmatmul.mubr.f32.gmra.mrb[64].mxu1 %v1802_v33  ;;  %v3110_v33 = vld [vmem:[%s9716_s1 + $0xc8] sm:$0xff]  ;;  %v1446_v27 = vmul.f32 1.442695, %v1202_v22 }
 0x22e   :  { %v8283_v30 = vpop.f32.mrb[159].mxu0  ;;  %2722 = vmatprep.mubr.f32.mxu1 %v9832_v0  ;;  %3199 = vrot.lane.b32.xlu1 %v3110_v33, %s5849_s7 }
 0x22f   :  { %5495 = vpow2.f32 %v1446_v27 }
 0x230   :  { %5497 = vpow2.f32 %v1456_v2  ;;  %v1222_v2 = vmin.f32 %v7770_v38, 0.0 }
 0x231   :  { %v8300_v6 = vpop.f32.mrb[160].mxu0  ;;  %2723 = vmatmul.mubr.f32.gmra.mrb[66].mxu1 %v1807_v41  ;;  %5499 = vpow2.f32 %v1466_v15 }
 0x232   :  { %v8303_v39 = vpop.f32.mrb[161].mxu0  ;;  %2728 = vmatprep.mubr.f32.mxu1 %v9832_v0 }
 0x233   :  { %9833 = vst [vmem:[#allocation18_spill] sm:$0xff] %v8303_v39  ;;  %v5486_v39 = vpop.eup %5485 }
 0x234   :  { %v4558_v18 = vadd.f32 -1.0, %v5486_v39  ;;  %v5488_v29 = vpop.eup %5487 }
 0x235   :  { %v8316_v12 = vpop.f32.mrb[162].mxu0  ;;  %2729 = vmatmul.mubr.f32.gmra.mrb[68].mxu1 %v1812_v35  ;;  %v4563_v33 = vadd.f32 -1.0, %v5488_v29  ;;  %v1217_v29 = vmin.f32 %v7743_v25, 0.0 }
 0x236   :  { %9834 = vst [vmem:[#allocation21_spill] sm:$0xff] %v8316_v12  ;;  %v8319_v55 = vpop.f32.mrb[163].mxu0  ;;  %2734 = vmatprep.mubr.f32.mxu1 %v9832_v0  ;;  %v1817_v57 = vsel %vm1017_vm5, %v8208_v5, %v4558_v18  ;;  %v5490_v12 = vpop.eup %5489 }
 0x237   :  { %9835 = vst [vmem:[#allocation20_spill] sm:$0xff] %v8319_v55  ;;  %v1822_v35 = vsel %vm1022_vm6, %v8229_v28, %v4563_v33  ;;  %v4568_v22 = vadd.f32 -1.0, %v5490_v12  ;;  %v1476_v33 = vmul.f32 1.442695, %v1217_v29  ;;  %v1486_v29 = vmul.f32 1.442695, %v1222_v2 }
 0x239   :  { %v8326_v41 = vpop.f32.mrb[164].mxu0  ;;  %2735 = vmatmul.mubr.f32.gmra.mrb[70].mxu1 %v1817_v57  ;;  %v1827_v27 = vsel %vm1027_vm7, %v8248_v44, %v4568_v22  ;;  %5501 = vpow2.f32 %v1476_v33  ;;  %v1227_v22 = vmin.f32 %v7761_v46, 0.0  ;;  %v1232_v33 = vmin.f32 %v7796_v13, 0.0 }
 0x23a   :  { %v8329_v55 = vpop.f32.mrb[165].mxu0  ;;  %2740 = vmatprep.mubr.f32.mxu1 %v9832_v0  ;;  %5503 = vpow2.f32 %v1486_v29 }
 0x23b   :  { %9836 = vst [vmem:[#allocation28_spill] sm:$0xff] %v8329_v55  ;;  %v5492_v55 = vpop.eup %5491 }
 0x23c   :  { %v4573_v57 = vadd.f32 -1.0, %v5492_v55 }
 0x23d   :  { %v8334_v34 = vpop.f32.mrb[166].mxu0  ;;  %2741 = vmatmul.mubr.f32.gmra.mrb[72].mxu1 %v1822_v35 }
 0x23e   :  { %v8337_v39 = vpop.f32.mrb[167].mxu0  ;;  %2746 = vmatprep.mubr.f32.mxu1 %v9832_v0  ;;  %v1832_v35 = vsel %vm1032_vm8, %v8269_v9, %v4573_v57  ;;  %v1496_v57 = vmul.f32 1.442695, %v1227_v22 }
 0x23f   :  { %9837 = vst [vmem:[#allocation29_spill] sm:$0xff] %v8337_v39  ;;  %v5494_v39 = vpop.eup %5493 }
 0x240   :  { %v4578_v11 = vadd.f32 -1.0, %v5494_v39  ;;  %5505 = vpow2.f32 %v1496_v57 }
 0x241   :  { %v8342_v5 = vpop.f32.mrb[168].mxu0  ;;  %2747 = vmatmul.mubr.f32.gmra.mrb[74].mxu1 %v1827_v27 }
 0x242   :  { %v8345_v18 = vpop.f32.mrb[169].mxu0  ;;  %2752 = vmatprep.mubr.f32.mxu1 %v9832_v0  ;;  %v1837_v15 = vsel %vm1037_vm9, %v8288_v51, %v4578_v11  ;;  %v1237_v51 = vmin.f32 %v7787_v26, 0.0 }
 0x243   :  { %9838 = vst [vmem:[#allocation30_spill] sm:$0xff] %v8345_v18  ;;  %v5496_v18 = vpop.eup %5495 }
 0x244   :  { %v4583_v27 = vadd.f32 -1.0, %v5496_v18  ;;  %v1506_v18 = vmul.f32 1.442695, %v1232_v33 }
 0x245   :  { %v8350_v28 = vpop.f32.mrb[170].mxu0  ;;  %2753 = vmatmul.mubr.f32.gmra.mrb[76].mxu1 %v1832_v35 }
 0x246   :  { %v8353_v12 = vpop.f32.mrb[171].mxu0  ;;  %2758 = vmatprep.mubr.f32.mxu1 %v9832_v0  ;;  %v1842_v35 = vsel %vm1042_vm10, %v7728_v8, %v4583_v27  ;;  %v1516_v8 = vmul.f32 1.442695, %v1237_v51  ;;  %5507 = vpow2.f32 %v1506_v18  ;;  %v9843_v18 = vld [vmem:[#allocation10_spill] sm:$0xff] }
 0x247   :  { %9839 = vst [vmem:[#allocation31_spill] sm:$0xff] %v8353_v12  ;;  %v5498_v12 = vpop.eup %5497  ;;  %vm1092_vm5 = vcmp.gt.f32.partialorder %v9843_v18, 0.0 }
 0x248   :  { %v4588_v2 = vadd.f32 -1.0, %v5498_v12  ;;  %v9841_v12 = vld [vmem:[#allocation4_spill] sm:$0xff]  ;;  %5509 = vpow2.f32 %v1516_v8 }
 0x249   :  { %v8358_v44 = vpop.f32.mrb[172].mxu0  ;;  %2759 = vmatmul.mubr.f32.gmra.mrb[78].mxu1 %v1837_v15  ;;  %v1242_v29 = vmin.f32 %v9841_v12, 0.0  ;;  %vm1082_vm3 = vcmp.gt.f32.partialorder %v9841_v12, 0.0 }
 0x24a   :  { %v8361_v55 = vpop.f32.mrb[173].mxu0  ;;  %2764 = vmatprep.mubr.f32.mxu1 %v9832_v0  ;;  %v1847_v11 = vsel %vm1047_vm11, %v7724_v47, %v4588_v2  ;;  %v9842_v47 = vld [vmem:[#allocation3_spill] sm:$0xff]  ;;  %vm4334_vm11 = vcmask 261120  }
 0x24b   :  { %9840 = vst [vmem:[#allocation32_spill] sm:$0xff] %v8361_v55  ;;  %v5500_v55 = vpop.eup %5499  ;;  %v1526_v33 = vmul.f32 1.442695, %v1242_v29  ;;  %vm1087_vm4 = vcmp.gt.f32.partialorder %v9842_v47, 0.0 }
 0x24c   :  { %v4593_v15 = vadd.f32 -1.0, %v5500_v55  ;;  %v5502_v22 = vpop.eup %5501  ;;  %v1247_v55 = vmin.f32 %v9842_v47, 0.0 }
 0x24d   :  { %v8366_v9 = vpop.f32.mrb[174].mxu0  ;;  %2765 = vmatmul.mubr.f32.gmra.mrb[80].mxu1 %v1842_v35  ;;  %v4598_v35 = vadd.f32 -1.0, %v5502_v22  ;;  %v5504_v57 = vpop.eup %5503  ;;  %5511 = vpow2.f32 %v1526_v33  ;;  %v9845_v33 = vld [vmem:[#allocation11_spill] sm:$0xff] }
 0x24e   :  { %v8369_v39 = vpop.f32.mrb[175].mxu0  ;;  %2770 = vmatprep.mubr.f32.mxu1 %v9832_v0  ;;  %v1852_v27 = vsel %vm1052_vm12, %v7757_v60, %v4593_v15  ;;  %v5506_v51 = vpop.eup %5505  ;;  %v1536_v60 = vmul.f32 1.442695, %v1247_v55  ;;  %v1252_v15 = vmin.f32 %v9843_v18, 0.0  ;;  %vm1102_vm7 = vcmp.gt.f32.partialorder %v9845_v33, 0.0 }
 0x24f   :  { %v1857_v2 = vsel %vm1057_vm13, %v7743_v25, %v4598_v35  ;;  %v9844_v25 = vld [vmem:[#allocation6_spill] sm:$0xff] }
 0x250   :  { %v5508_v8 = vpop.eup %5507  ;;  %5513 = vpow2.f32 %v1536_v60  ;;  %v1257_v29 = vmin.f32 %v9844_v25, 0.0  ;;  %v1546_v35 = vmul.f32 1.442695, %v1252_v15  ;;  %vm1097_vm6 = vcmp.gt.f32.partialorder %v9844_v25, 0.0 }
 0x251   :  { %2771 = vmatmul.mubr.f32.gmra.mrb[82].mxu1 %v1847_v11  ;;  %v4603_v11 = vadd.f32 -1.0, %v5504_v57 }
 0x252   :  { %2776 = vmatprep.mubr.f32.mxu1 %v9832_v0  ;;  %v5510_v55 = vpop.eup %5509  ;;  %5515 = vpow2.f32 %v1546_v35  ;;  %v9847_v35 = vld [vmem:[#allocation25_spill] sm:$0xff] }
 0x253   :  { %v1862_v22 = vsel %vm1062_vm14, %v7770_v38, %v4603_v11  ;;  %v1556_v38 = vmul.f32 1.442695, %v1257_v29  ;;  %v1262_v11 = vmin.f32 %v9845_v33, 0.0  ;;  %vm1112_vm9 = vcmp.gt.f32.partialorder %v9847_v35, 0.0 }
 0x255   :  { %2777 = vmatmul.mubr.f32.gmra.mrb[84].mxu1 %v1852_v27  ;;  %v4608_v27 = vadd.f32 -1.0, %v5506_v51  ;;  %5517 = vpow2.f32 %v1556_v38 }
 0x256   :  { %2782 = vmatprep.mubr.f32.mxu1 %v9832_v0 }
 0x257   :  { %v1867_v57 = vsel %vm1067_vm15, %v7761_v46, %v4608_v27  ;;  %v5512_v60 = vpop.eup %5511  ;;  %v9846_v46 = vld [vmem:[#allocation22_spill] sm:$0xff]  ;;  %v1566_v27 = vmul.f32 1.442695, %v1262_v11 }
 0x258   :  { %v1267_v15 = vmin.f32 %v9846_v46, 0.0  ;;  %vm1107_vm8 = vcmp.gt.f32.partialorder %v9846_v46, 0.0 }
 0x259   :  { %2783 = vmatmul.mubr.f32.gmra.mrb[86].mxu1 %v1857_v2  ;;  %v4613_v2 = vadd.f32 -1.0, %v5508_v8  ;;  %5519 = vpow2.f32 %v1566_v27 }
 0x25a   :  { %2788 = vmatprep.mubr.f32.mxu1 %v9832_v0  ;;  %v5514_v29 = vpop.eup %5513 }
 0x25b   :  { %v1872_v51 = vsel %vm1072_vm1, %v7796_v13, %v4613_v2  ;;  %v1576_v13 = vmul.f32 1.442695, %v1267_v15  ;;  %v1272_v2 = vmin.f32 %v9847_v35, 0.0 }
 0x25c   :  { %v5516_v38 = vpop.eup %5515 }
 0x25d   :  { %2789 = vmatmul.mubr.f32.gmra.mrb[88].mxu1 %v1862_v22  ;;  %v4618_v22 = vadd.f32 -1.0, %v5510_v55  ;;  %5521 = vpow2.f32 %v1576_v13 }
 0x25e   :  { %2794 = vmatprep.mubr.f32.mxu1 %v9832_v0 }
 0x25f   :  { %v1877_v8 = vsel %vm1077_vm2, %v7787_v26, %v4618_v22  ;;  %v9848_v26 = vld [vmem:[#allocation13_spill] sm:$0xff]  ;;  %v1586_v22 = vmul.f32 1.442695, %v1272_v2  ;;  %v5518_v15 = vpop.eup %5517 }
 0x260   :  { %v1277_v11 = vmin.f32 %v9848_v26, 0.0  ;;  %vm1117_vm10 = vcmp.gt.f32.partialorder %v9848_v26, 0.0 }
 0x261   :  { %2795 = vmatmul.mubr.f32.gmra.mrb[90].mxu1 %v1867_v57  ;;  %v4623_v57 = vadd.f32 -1.0, %v5512_v60  ;;  %5523 = vpow2.f32 %v1586_v22  ;;  %v3115_v22 = vld [vmem:[%s9716_s1 + $0xf0] sm:$0xff] }
 0x262   :  { %2800 = vmatprep.mubr.f32.mxu1 %v9832_v0 }
 0x263   :  { %v1882_v55 = vsel %vm1082_vm3, %v9841_v12, %v4623_v57  ;;  %v1596_v12 = vmul.f32 1.442695, %v1277_v11  ;;  %v4638_v57 = vadd.f32 -1.0, %v5518_v15  ;;  %v5520_v13 = vpop.eup %5519  ;;  %v3114_v11 = vld [vmem:[%s9716_s1 + $0xe8] sm:$0xff]  ;;  %v3116_v15 = vld [vmem:[%s9716_s1 + $0xf8] sm:$0xff] }
 0x264   :  { %v4643_v2 = vadd.f32 -1.0, %v5520_v13  ;;  %v9849_v13 = vld [vmem:[#allocation2_spill] sm:$0xff] }
 0x265   :  { %2801 = vmatmul.mubr.f32.gmra.mrb[92].mxu1 %v1872_v51  ;;  %v4628_v51 = vadd.f32 -1.0, %v5514_v29  ;;  %v3111_v29 = vld [vmem:[%s9716_s1 + $0xd0] sm:$0xff]  ;;  %5525 = vpow2.f32 %v1596_v12 }
 0x266   :  { %2806 = vmatprep.mubr.f32.mxu1 %v9832_v0  ;;  %3201 = vrot.lane.b32.xlu0 %v3111_v29, %s5849_s7  ;;  %v2078_v29 = vld [vmem:[%s9717_s5] sm:$0x3] }
 0x267   :  { %v1887_v60 = vsel %vm1087_vm4, %v9842_v47, %v4628_v51  ;;  %v1897_v47 = vsel %vm1097_vm6, %v9844_v25, %v4638_v57  ;;  %v5522_v51 = vpop.eup %5521  ;;  %v1902_v25 = vsel %vm1102_vm7, %v9845_v33, %v4643_v2 }
 0x269   :  { %2807 = vmatmul.mubr.f32.gmra.mrb[94].mxu1 %v1877_v8  ;;  %v4633_v8 = vadd.f32 -1.0, %v5516_v38  ;;  %v4648_v38 = vadd.f32 -1.0, %v5522_v51 }
 0x26a   :  { %2812 = vmatprep.mubr.f32.mxu1 %v9832_v0 }
 0x26b   :  { %v1892_v27 = vsel %vm1092_vm5, %v9843_v18, %v4633_v8  ;;  %v3112_v18 = vld [vmem:[%s9716_s1 + $0xd8] sm:$0xff]  ;;  %v1907_v33 = vsel %vm1107_vm8, %v9846_v46, %v4648_v38 }
 0x26c   :  { %3203 = vrot.lane.b32.xlu1 %v3112_v18, %s5849_s7  ;;  %v9851_v18 = vsub.s32 1, %v9849_v13 }
 0x26d   :  { %2813 = vmatmul.mubr.f32.gmra.mrb[96].mxu1 %v1882_v55  ;;  %v3113_v55 = vld [vmem:[%s9716_s1 + $0xe0] sm:$0xff] }
 0x26e   :  { %2818 = vmatprep.mubr.f32.mxu1 %v9832_v0  ;;  %3205 = vrot.lane.b32.xlu0 %v3113_v55, %s5849_s7  ;;  %v9852_v55 = vld [vmem:[#allocation5_spill] sm:$0xff] }
 0x270   :  { %3207 = vrot.lane.b32.xlu1 %v3114_v11, %s5849_s7 }
 0x271   :  { %2819 = vmatmul.mubr.f32.gmra.mrb[98].mxu1 %v1887_v60  ;;  %v5524_v60 = vpop.eup %5523 }
 0x272   :  { %2824 = vmatprep.mubr.f32.mxu1 %v9832_v0  ;;  %3209 = vrot.lane.b32.xlu0 %v3115_v22, %s5849_s7  ;;  %v4653_v8 = vadd.f32 -1.0, %v5524_v60  ;;  %v5526_v12 = vpop.eup %5525  ;;  %v9855_v60 = vld [vmem:[#allocation9_spill] sm:$0xff] }
 0x273   :  { %v4658_v57 = vadd.f32 -1.0, %v5526_v12 }
 0x274   :  { %3211 = vrot.lane.b32.xlu1 %v3116_v15, %s5849_s7 }
 0x275   :  { %2825 = vmatmul.mubr.f32.gmra.mrb[100].mxu1 %v1892_v27  ;;  %v1912_v27 = vsel %vm1112_vm9, %v9847_v35, %v4653_v8  ;;  %v1917_v46 = vsel %vm1117_vm10, %v9848_v26, %v4658_v57  ;;  %v8460_v35 = vrot.slane %v2078_v29, %v9851_v18  ;;  %v9856_v8 = vld [vmem:[#allocation8_spill] sm:$0xff] }
 0x276   :  { %2830 = vmatprep.mubr.f32.mxu1 %v9832_v0 }
 0x277   :  { %v2165_v15 = vadd.f32 %v9856_v8, %v8460_v35  ;;  %v4659_v8 = vld [vmem:[%s9716_s1 + $0x100] sm:$0xff] }
 0x279   :  { %2831 = vmatmul.mubr.f32.gmra.mrb[102].mxu1 %v1897_v47  ;;  %v9850_v47 = vsub.s32 0, %v9849_v13 }
 0x27a   :  { %2836 = vmatprep.mubr.f32.mxu1 %v9832_v0 }
 0x27b   :  { %v8456_v2 = vrot.slane %v2078_v29, %v9850_v47  ;;  %v9858_v29 = vld [vmem:[#allocation23_spill] sm:$0xff]  ;;  %v9859_v47 = vld [vmem:[#allocation24_spill] sm:$0xff] }
 0x27c   :  { %v2171_v18 = vadd.f32 %v9859_v47, %v8460_v35 }
 0x27d   :  { %2837 = vmatmul.mubr.f32.gmra.mrb[104].mxu1 %v1902_v25  ;;  %v2157_v51 = vadd.f32 %v9852_v55, %v8456_v2  ;;  %v2169_v13 = vadd.f32 %v9858_v29, %v8456_v2 }
 0x27e   :  { %2842 = vmatprep.mubr.f32.mxu1 %v9832_v0 }
 0x281   :  { %2843 = vmatmul.mubr.f32.gmra.mrb[106].mxu1 %v1907_v33  ;;  %v2163_v33 = vadd.f32 %v9855_v60, %v8456_v2 }
 0x282   :  { %2848 = vmatprep.mubr.f32.mxu1 %v9832_v0 }
 0x285   :  { %2849 = vmatmul.mubr.f32.gmra.mrb[108].mxu1 %v1912_v27 }
 0x286   :  { %2854 = vmatprep.mubr.f32.mxu1 %v9832_v0  ;;  %v9853_v0 = vld [vmem:[#allocation7_spill] sm:$0xff] }
 0x287   :  { %v2159_v25 = vadd.f32 %v9853_v0, %v8460_v35 }
 0x289   :  { %2855 = vmatmul.mubr.f32.gmra.mrb[110].mxu1 %v1917_v46 }
 0x2e0   :  { %v2670_v26 = vpop.f32.mrb[48].mxu1 }
 0x2e1   :  { %v8466_v38 = vadd.f32 %v2670_v26, %v2157_v51  ;;  %v2672_v11 = vpop.f32.mrb[49].mxu1  ;;  %v9861_v26 = vld [vmem:[#allocation12_spill] sm:$0xff] }
 0x2e2   :  { %v5014_v22 = vadd.f32 %v2672_v11, %v2159_v25  ;;  %v2175_v11 = vadd.f32 %v9861_v26, %v8456_v2 }
 0x2e3   :  { %9854 = vst [vmem:[#allocation4_spill] sm:$0xff] %v8466_v38  ;;  %5527 = vtanh.f32 %v8466_v38 }
 0x2e4   :  { %5529 = vtanh.f32 %v5014_v22  ;;  %v2676_v12 = vpop.f32.mrb[50].mxu1  ;;  %v9862_v22 = vld [vmem:[#allocation15_spill] sm:$0xff] }
 0x2e5   :  { %v8473_v27 = vadd.f32 %v2676_v12, %v2163_v33  ;;  %v2678_v57 = vpop.f32.mrb[51].mxu1  ;;  %v2177_v60 = vadd.f32 %v9862_v22, %v8460_v35  ;;  %v4660_v22 = vld [vmem:[%s9716_s1 + $0x108] sm:$0xff] }
 0x2e6   :  { %v5018_v46 = vadd.f32 %v2678_v57, %v2165_v15 }
 0x2e7   :  { %9857 = vst [vmem:[#allocation3_spill] sm:$0xff] %v8473_v27  ;;  %5531 = vtanh.f32 %v8473_v27 }
 0x2e8   :  { %v2682_v55 = vpop.f32.mrb[52].mxu1  ;;  %5533 = vtanh.f32 %v5018_v46 }
 0x2e9   :  { %v8480_v51 = vadd.f32 %v2682_v55, %v2169_v13  ;;  %v2684_v0 = vpop.f32.mrb[53].mxu1  ;;  %v9864_v13 = vld [vmem:[#allocation14_spill] sm:$0xff] }
 0x2ea   :  { %v5022_v25 = vadd.f32 %v2684_v0, %v2171_v18  ;;  %v2181_v47 = vadd.f32 %v9864_v13, %v8456_v2  ;;  %v9865_v55 = vld [vmem:[#allocation26_spill] sm:$0xff] }
 0x2eb   :  { %9860 = vst [vmem:[#allocation10_spill] sm:$0xff] %v8480_v51  ;;  %5535 = vtanh.f32 %v8480_v51  ;;  %v2183_v0 = vadd.f32 %v9865_v55, %v8460_v35  ;;  %v9870_v51 = vld [vmem:[#allocation19_spill] sm:$0xff] }
 0x2ec   :  { %v2688_v33 = vpop.f32.mrb[54].mxu1  ;;  %5537 = vtanh.f32 %v5022_v25  ;;  %v2193_v27 = vadd.f32 %v9870_v51, %v8456_v2 }
 0x2ed   :  { %v8490_v15 = vpop.eup %5527  ;;  %v8492_v12 = vadd.f32 %v2688_v33, %v2175_v11  ;;  %v2690_v57 = vpop.f32.mrb[55].mxu1 }
 0x2ee   :  { %v5530_v46 = vpop.eup %5529  ;;  %v5026_v29 = vadd.f32 %v2690_v57, %v2177_v60  ;;  %3598 = vrot.lane.b32.xlu0 %v8490_v15, %s5850_s17  ;;  %v9867_v57 = vld [vmem:[#allocation17_spill] sm:$0xff] }
 0x2ef   :  { %9863 = vst [vmem:[#allocation6_spill] sm:$0xff] %v8492_v12  ;;  %v3374_v18 = vmul.f32 %v5530_v46, %v4659_v8  ;;  %5539 = vtanh.f32 %v8492_v12  ;;  %v2187_v46 = vadd.f32 %v9867_v57, %v8456_v2 }
 0x2f0   :  { %v2694_v26 = vpop.f32.mrb[56].mxu1  ;;  %5541 = vtanh.f32 %v5026_v29  ;;  %v9868_v29 = vld [vmem:[#allocation16_spill] sm:$0xff] }
 0x2f1   :  { %v8501_v25 = vadd.f32 %v2694_v26, %v2181_v47  ;;  %v2696_v11 = vpop.f32.mrb[57].mxu1  ;;  %v8506_v60 = vpop.eup %5531  ;;  %v2189_v13 = vadd.f32 %v9868_v29, %v8460_v35 }
 0x2f2   :  { %v5030_v33 = vadd.f32 %v2696_v11, %v2183_v0  ;;  %3438 = vrot.lane.b32.xlu0 %v3374_v18, %s5849_s7  ;;  %v5534_v8 = vpop.eup %5533  ;;  %3600 = vrot.lane.b32.xlu1 %v8506_v60, %s5850_s17  ;;  %v4661_v18 = vld [vmem:[%s9716_s1 + $0x110] sm:$0xff] }
 0x2f3   :  { %9866 = vst [vmem:[#allocation11_spill] sm:$0xff] %v8501_v25  ;;  %v3375_v55 = vmul.f32 %v5534_v8, %v4660_v22  ;;  %5543 = vtanh.f32 %v8501_v25  ;;  %v9871_v22 = vld [vmem:[#allocation27_spill] sm:$0xff]  ;;  %v2199_v25 = vadd.f32 %v7979_v49, %v8456_v2  ;;  %v4663_v49 = vld [vmem:[%s9716_s1 + $0x120] sm:$0xff] }
 0x2f4   :  { %v2700_v47 = vpop.f32.mrb[58].mxu1  ;;  %5545 = vtanh.f32 %v5030_v33  ;;  %v2195_v8 = vadd.f32 %v9871_v22, %v8460_v35 }
 0x2f5   :  { %v8516_v26 = vadd.f32 %v2700_v47, %v2187_v46  ;;  %v2702_v12 = vpop.f32.mrb[59].mxu1  ;;  %v8521_v0 = vpop.eup %5535 }
 0x2f6   :  { %v5034_v11 = vadd.f32 %v2702_v12, %v2189_v13  ;;  %v5538_v57 = vpop.eup %5537  ;;  %3440 = vrot.lane.b32.xlu1 %v3375_v55, %s5849_s7  ;;  %3602 = vrot.lane.b32.xlu0 %v8521_v0, %s5850_s17  ;;  %v4662_v12 = vld [vmem:[%s9716_s1 + $0x118] sm:$0xff] }
 0x2f7   :  { %9869 = vst [vmem:[#allocation22_spill] sm:$0xff] %v8516_v26  ;;  %v3376_v29 = vmul.f32 %v5538_v57, %v4661_v18  ;;  %5547 = vtanh.f32 %v8516_v26 }
 0x2f8   :  { %v2706_v46 = vpop.f32.mrb[60].mxu1  ;;  %5549 = vtanh.f32 %v5034_v11 }
 0x2f9   :  { %v8531_v47 = vadd.f32 %v2706_v46, %v2193_v27  ;;  %v2708_v33 = vpop.f32.mrb[61].mxu1  ;;  %v8536_v51 = vpop.eup %5539  ;;  %v2201_v27 = vadd.f32 %v7982_v20, %v8460_v35 }
 0x2fa   :  { %v5038_v13 = vadd.f32 %v2708_v33, %v2195_v8  ;;  %v5542_v55 = vpop.eup %5541  ;;  %3604 = vrot.lane.b32.xlu1 %v8536_v51, %s5850_s17  ;;  %3442 = vrot.lane.b32.xlu0 %v3376_v29, %s5849_s7  ;;  %v2205_v29 = vadd.f32 %v8007_v32, %v8456_v2  ;;  %v2207_v33 = vadd.f32 %v8014_v1, %v8460_v35  ;;  %v4664_v32 = vld [vmem:[%s9716_s1 + $0x128] sm:$0xff] }
 0x2fb   :  { %9872 = vst [vmem:[#allocation25_spill] sm:$0xff] %v8531_v47  ;;  %v3377_v57 = vmul.f32 %v5542_v55, %v4662_v12  ;;  %5551 = vtanh.f32 %v8531_v47  ;;  %v2211_v1 = vadd.f32 %v8022_v45, %v8456_v2  ;;  %v4665_v45 = vld [vmem:[%s9716_s1 + $0x130] sm:$0xff] }
 0x2fc   :  { %v2712_v18 = vpop.f32.mrb[62].mxu1  ;;  %5553 = vtanh.f32 %v5038_v13 }
 0x2fd   :  { %v8546_v22 = vadd.f32 %v2712_v18, %v2199_v25  ;;  %v2714_v11 = vpop.f32.mrb[63].mxu1  ;;  %v8551_v46 = vpop.eup %5543 }
 0x2fe   :  { %v5042_v8 = vadd.f32 %v2714_v11, %v2201_v27  ;;  %3444 = vrot.lane.b32.xlu1 %v3377_v57, %s5849_s7  ;;  %v5546_v20 = vpop.eup %5545  ;;  %3606 = vrot.lane.b32.xlu0 %v8551_v46, %s5850_s17  ;;  %v2213_v11 = vadd.f32 %v8025_v48, %v8460_v35  ;;  %v2217_v48 = vadd.f32 %v8035_v37, %v8456_v2  ;;  %v4666_v37 = vld [vmem:[%s9716_s1 + $0x138] sm:$0xff] }
 0x2ff   :  { %9873 = vst [vmem:[#allocation13_spill] sm:$0xff] %v8546_v22  ;;  %5555 = vtanh.f32 %v8546_v22  ;;  %v3378_v55 = vmul.f32 %v5546_v20, %v4663_v49 }
 0x300   :  { %v2718_v25 = vpop.f32.mrb[64].mxu1  ;;  %5557 = vtanh.f32 %v5042_v8 }
 0x301   :  { %v8561_v12 = vadd.f32 %v2718_v25, %v2205_v29  ;;  %v2720_v13 = vpop.f32.mrb[65].mxu1  ;;  %v8566_v18 = vpop.eup %5547 }
 0x302   :  { %v5046_v27 = vadd.f32 %v2720_v13, %v2207_v33  ;;  %v5550_v57 = vpop.eup %5549  ;;  %3608 = vrot.lane.b32.xlu1 %v8566_v18, %s5850_s17  ;;  %3446 = vrot.lane.b32.xlu0 %v3378_v55, %s5849_s7  ;;  %v2219_v55 = vadd.f32 %v8038_v50, %v8460_v35  ;;  %v2223_v50 = vadd.f32 %v8048_v19, %v8456_v2  ;;  %v4667_v19 = vld [vmem:[%s9716_s1 + $0x140] sm:$0xff] }
 0x303   :  { %9874 = vst [vmem:[#allocation2_spill] sm:$0xff] %v8561_v12  ;;  %5559 = vtanh.f32 %v8561_v12  ;;  %v3379_v20 = vmul.f32 %v5550_v57, %v4664_v32 }
 0x304   :  { %v2724_v8 = vpop.f32.mrb[66].mxu1  ;;  %5561 = vtanh.f32 %v5046_v27 }
 0x305   :  { %v8576_v49 = vadd.f32 %v2724_v8, %v2211_v1  ;;  %v2726_v29 = vpop.f32.mrb[67].mxu1  ;;  %v8581_v25 = vpop.eup %5551 }
 0x306   :  { %v5050_v33 = vadd.f32 %v2726_v29, %v2213_v11  ;;  %v5554_v13 = vpop.eup %5553  ;;  %3448 = vrot.lane.b32.xlu1 %v3379_v20, %s5849_s7  ;;  %3610 = vrot.lane.b32.xlu0 %v8581_v25, %s5850_s17  ;;  %v2225_v20 = vadd.f32 %v8051_v36, %v8460_v35  ;;  %v2229_v36 = vadd.f32 %v8065_v3, %v8456_v2  ;;  %v4668_v3 = vld [vmem:[%s9716_s1 + $0x148] sm:$0xff] }
 0x307   :  { %9875 = vst [vmem:[#allocation5_spill] sm:$0xff] %v8576_v49  ;;  %5563 = vtanh.f32 %v8576_v49  ;;  %v3380_v57 = vmul.f32 %v5554_v13, %v4665_v45 }
 0x308   :  { %v2730_v27 = vpop.f32.mrb[68].mxu1  ;;  %5565 = vtanh.f32 %v5050_v33 }
 0x309   :  { %v8591_v32 = vadd.f32 %v2730_v27, %v2217_v48  ;;  %v2732_v1 = vpop.f32.mrb[69].mxu1  ;;  %v8596_v8 = vpop.eup %5555 }
 0x30a   :  { %v5054_v11 = vadd.f32 %v2732_v1, %v2219_v55  ;;  %v5558_v29 = vpop.eup %5557  ;;  %3612 = vrot.lane.b32.xlu1 %v8596_v8, %s5850_s17  ;;  %3450 = vrot.lane.b32.xlu0 %v3380_v57, %s5849_s7  ;;  %v2231_v57 = vadd.f32 %v8071_v58, %v8460_v35  ;;  %v2235_v58 = vadd.f32 %v8082_v54, %v8456_v2  ;;  %v4669_v54 = vld [vmem:[%s9716_s1 + $0x150] sm:$0xff] }
 0x30b   :  { %9876 = vst [vmem:[#allocation7_spill] sm:$0xff] %v8591_v32  ;;  %5567 = vtanh.f32 %v8591_v32  ;;  %v3381_v13 = vmul.f32 %v5558_v29, %v4666_v37 }
 0x30c   :  { %v2736_v33 = vpop.f32.mrb[70].mxu1  ;;  %5569 = vtanh.f32 %v5054_v11 }
 0x30d   :  { %v8606_v45 = vadd.f32 %v2736_v33, %v2223_v50  ;;  %v2738_v48 = vpop.f32.mrb[71].mxu1  ;;  %v8611_v27 = vpop.eup %5559 }
 0x30e   :  { %v5058_v55 = vadd.f32 %v2738_v48, %v2225_v20  ;;  %v5562_v1 = vpop.eup %5561  ;;  %3452 = vrot.lane.b32.xlu1 %v3381_v13, %s5849_s7  ;;  %3614 = vrot.lane.b32.xlu0 %v8611_v27, %s5850_s17  ;;  %v2237_v13 = vadd.f32 %v8088_v23, %v8460_v35  ;;  %v2241_v23 = vadd.f32 %v8099_v4, %v8456_v2 }
 0x30f   :  { %9877 = vst [vmem:[#allocation9_spill] sm:$0xff] %v8606_v45  ;;  %5571 = vtanh.f32 %v8606_v45  ;;  %v3382_v29 = vmul.f32 %v5562_v1, %v4667_v19 }
 0x310   :  { %v2742_v11 = vpop.f32.mrb[72].mxu1  ;;  %5573 = vtanh.f32 %v5058_v55 }
 0x311   :  { %v8621_v37 = vadd.f32 %v2742_v11, %v2229_v36  ;;  %v2744_v50 = vpop.f32.mrb[73].mxu1  ;;  %v8626_v33 = vpop.eup %5563 }
 0x312   :  { %v5062_v20 = vadd.f32 %v2744_v50, %v2231_v57  ;;  %v5566_v48 = vpop.eup %5565  ;;  %3616 = vrot.lane.b32.xlu1 %v8626_v33, %s5850_s17  ;;  %3454 = vrot.lane.b32.xlu0 %v3382_v29, %s5849_s7  ;;  %v2243_v29 = vadd.f32 %v8104_v24, %v8460_v35  ;;  %v4670_v24 = vld [vmem:[%s9716_s1 + $0x158] sm:$0xff] }
 0x313   :  { %9878 = vst [vmem:[#allocation8_spill] sm:$0xff] %v8621_v37  ;;  %5575 = vtanh.f32 %v8621_v37  ;;  %v3383_v1 = vmul.f32 %v5566_v48, %v4668_v3  ;;  %v8647_v37 = vpop.permute.xlu0 %3149 }
 0x314   :  { %v2748_v55 = vpop.f32.mrb[74].mxu1  ;;  %5577 = vtanh.f32 %v5062_v20 }
 0x315   :  { %v8636_v19 = vadd.f32 %v2748_v55, %v2235_v58  ;;  %v2750_v36 = vpop.f32.mrb[75].mxu1  ;;  %v8641_v11 = vpop.eup %5567  ;;  %v2247_v55 = vadd.f32 %v8114_v40, %v8456_v2 }
 0x316   :  { %v5066_v57 = vadd.f32 %v2750_v36, %v2237_v13  ;;  %v5570_v50 = vpop.eup %5569  ;;  %3456 = vrot.lane.b32.xlu1 %v3383_v1, %s5849_s7  ;;  %3618 = vrot.lane.b32.xlu0 %v8641_v11, %s5850_s17  ;;  %v2249_v1 = vadd.f32 %v8123_v42, %v8460_v35  ;;  %v4671_v42 = vld [vmem:[%s9716_s1 + $0x160] sm:$0xff] }
 0x317   :  { %9879 = vst [vmem:[#allocation23_spill] sm:$0xff] %v8636_v19  ;;  %5579 = vtanh.f32 %v8636_v19  ;;  %v3384_v48 = vmul.f32 %v5570_v50, %v4669_v54  ;;  %v8667_v54 = vpop.permute.xlu1 %3153 }
 0x318   :  { %v2754_v20 = vpop.f32.mrb[76].mxu1  ;;  %5581 = vtanh.f32 %v5066_v57 }
 0x319   :  { %v8653_v3 = vadd.f32 %v2754_v20, %v2241_v23  ;;  %v2756_v58 = vpop.f32.mrb[77].mxu1  ;;  %v8658_v13 = vpop.eup %5571 }
 0x31a   :  { %v5070_v4 = vadd.f32 %v2756_v58, %v2243_v29  ;;  %v5574_v36 = vpop.eup %5573  ;;  %3620 = vrot.lane.b32.xlu1 %v8658_v13, %s5850_s17  ;;  %3458 = vrot.lane.b32.xlu0 %v3384_v48, %s5849_s7  ;;  %v8672_v20 = vpop.permute.xlu0 %3151  ;;  %v2253_v48 = vadd.f32 %v8140_v63, %v8456_v2 }
 0x31b   :  { %9880 = vst [vmem:[#allocation24_spill] sm:$0xff] %v8653_v3  ;;  %5583 = vtanh.f32 %v8653_v3  ;;  %v3385_v29 = vmul.f32 %v5574_v36, %v4670_v24  ;;  %v8698_v3 = vpop.permute.xlu1 %3155 }
 0x31c   :  { %v2760_v57 = vpop.f32.mrb[78].mxu1  ;;  %5585 = vtanh.f32 %v5070_v4 }
 0x31d   :  { %v8670_v23 = vadd.f32 %v2760_v57, %v2247_v55  ;;  %v2762_v50 = vpop.f32.mrb[79].mxu1  ;;  %v8677_v58 = vpop.eup %5575  ;;  %v2255_v55 = vadd.f32 %v8143_v62, %v8460_v35  ;;  %v4672_v62 = vld [vmem:[%s9716_s1 + $0x168] sm:$0xff] }
 0x31e   :  { %v5074_v40 = vadd.f32 %v2762_v50, %v2249_v1  ;;  %v5578_v19 = vpop.eup %5577  ;;  %3460 = vrot.lane.b32.xlu1 %v3385_v29, %s5849_s7  ;;  %3622 = vrot.lane.b32.xlu0 %v8677_v58, %s5850_s17  ;;  %v8689_v57 = vpop.permute.xlu0 %3157  ;;  %v2259_v29 = vadd.f32 %v8160_v53, %v8456_v2 }
 0x31f   :  { %9881 = vst [vmem:[#allocation12_spill] sm:$0xff] %v8670_v23  ;;  %5587 = vtanh.f32 %v8670_v23  ;;  %v3386_v1 = vmul.f32 %v5578_v19, %v4671_v42  ;;  %v8717_v45 = vpop.permute.xlu1 %3159 }
 0x320   :  { %v2766_v4 = vpop.f32.mrb[80].mxu1  ;;  %5589 = vtanh.f32 %v5074_v40 }
 0x321   :  { %v8687_v24 = vadd.f32 %v2766_v4, %v2253_v48  ;;  %v2768_v36 = vpop.f32.mrb[81].mxu1  ;;  %v8694_v50 = vpop.eup %5579  ;;  %v2261_v48 = vadd.f32 %v8163_v21, %v8460_v35  ;;  %v4673_v21 = vld [vmem:[%s9716_s1 + $0x170] sm:$0xff] }
 0x322   :  { %v5078_v63 = vadd.f32 %v2768_v36, %v2255_v55  ;;  %v5582_v23 = vpop.eup %5581  ;;  %3624 = vrot.lane.b32.xlu1 %v8694_v50, %s5850_s17  ;;  %3462 = vrot.lane.b32.xlu0 %v3386_v1, %s5849_s7  ;;  %v8708_v4 = vpop.permute.xlu0 %3161  ;;  %v2265_v1 = vadd.f32 %v8180_v14, %v8456_v2 }
 0x323   :  { %9882 = vst [vmem:[#allocation15_spill] sm:$0xff] %v8687_v24  ;;  %5591 = vtanh.f32 %v8687_v24  ;;  %v3387_v55 = vmul.f32 %v5582_v23, %v4672_v62  ;;  %v8736_v32 = vpop.permute.xlu1 %3163 }
 0x324   :  { %v2772_v19 = vpop.f32.mrb[82].mxu1  ;;  %5593 = vtanh.f32 %v5078_v63 }
 0x325   :  { %v8706_v40 = vadd.f32 %v2772_v19, %v2259_v29  ;;  %v2774_v42 = vpop.f32.mrb[83].mxu1  ;;  %v8713_v36 = vpop.eup %5583  ;;  %v2267_v29 = vadd.f32 %v8183_v10, %v8460_v35  ;;  %v4674_v10 = vld [vmem:[%s9716_s1 + $0x178] sm:$0xff] }
 0x326   :  { %v5082_v53 = vadd.f32 %v2774_v42, %v2261_v48  ;;  %v5586_v24 = vpop.eup %5585  ;;  %3464 = vrot.lane.b32.xlu1 %v3387_v55, %s5849_s7  ;;  %3626 = vrot.lane.b32.xlu0 %v8713_v36, %s5850_s17  ;;  %v8727_v19 = vpop.permute.xlu0 %3165  ;;  %v2271_v55 = vadd.f32 %v8200_v17, %v8456_v2 }
 0x327   :  { %9883 = vst [vmem:[#allocation14_spill] sm:$0xff] %v8706_v40  ;;  %5595 = vtanh.f32 %v8706_v40  ;;  %v3388_v48 = vmul.f32 %v5586_v24, %v4673_v21  ;;  %v8755_v49 = vpop.permute.xlu1 %3167 }
 0x328   :  { %v2778_v23 = vpop.f32.mrb[84].mxu1  ;;  %5597 = vtanh.f32 %v5082_v53 }
 0x329   :  { %v8725_v63 = vadd.f32 %v2778_v23, %v2265_v1  ;;  %v2780_v62 = vpop.f32.mrb[85].mxu1  ;;  %v8732_v42 = vpop.eup %5587  ;;  %v2273_v1 = vadd.f32 %v8203_v7, %v8460_v35  ;;  %v4675_v7 = vld [vmem:[%s9716_s1 + $0x180] sm:$0xff] }
 0x32a   :  { %v5086_v14 = vadd.f32 %v2780_v62, %v2267_v29  ;;  %v5590_v40 = vpop.eup %5589  ;;  %3628 = vrot.lane.b32.xlu1 %v8732_v42, %s5850_s17  ;;  %3466 = vrot.lane.b32.xlu0 %v3388_v48, %s5849_s7  ;;  %v8746_v23 = vpop.permute.xlu0 %3169  ;;  %v2277_v48 = vadd.f32 %v8220_v43, %v8456_v2 }
 0x32b   :  { %9884 = vst [vmem:[#allocation26_spill] sm:$0xff] %v8725_v63  ;;  %5599 = vtanh.f32 %v8725_v63  ;;  %v3389_v29 = vmul.f32 %v5590_v40, %v4674_v10  ;;  %v8774_v12 = vpop.permute.xlu1 %3171 }
 0x32c   :  { %v2784_v24 = vpop.f32.mrb[86].mxu1  ;;  %5601 = vtanh.f32 %v5086_v14 }
 0x32d   :  { %v8744_v53 = vadd.f32 %v2784_v24, %v2271_v55  ;;  %v2786_v21 = vpop.f32.mrb[87].mxu1  ;;  %v8751_v62 = vpop.eup %5591  ;;  %v2279_v55 = vadd.f32 %v8223_v52, %v8460_v35  ;;  %v4676_v52 = vld [vmem:[%s9716_s1 + $0x188] sm:$0xff] }
 0x32e   :  { %v5090_v17 = vadd.f32 %v2786_v21, %v2273_v1  ;;  %v5594_v63 = vpop.eup %5593  ;;  %3468 = vrot.lane.b32.xlu1 %v3389_v29, %s5849_s7  ;;  %3630 = vrot.lane.b32.xlu0 %v8751_v62, %s5850_s17  ;;  %v8765_v24 = vpop.permute.xlu0 %3173  ;;  %v2283_v29 = vadd.f32 %v8240_v59, %v8456_v2 }
 0x32f   :  { %9885 = vst [vmem:[#allocation17_spill] sm:$0xff] %v8744_v53  ;;  %5603 = vtanh.f32 %v8744_v53  ;;  %v3390_v1 = vmul.f32 %v5594_v63, %v4675_v7  ;;  %v8793_v22 = vpop.permute.xlu1 %3175 }
 0x330   :  { %v2790_v40 = vpop.f32.mrb[88].mxu1  ;;  %5605 = vtanh.f32 %v5090_v17 }
 0x331   :  { %v8763_v14 = vadd.f32 %v2790_v40, %v2277_v48  ;;  %v2792_v10 = vpop.f32.mrb[89].mxu1  ;;  %v8770_v21 = vpop.eup %5595  ;;  %v2285_v48 = vadd.f32 %v8243_v31, %v8460_v35  ;;  %v4677_v31 = vld [vmem:[%s9716_s1 + $0x190] sm:$0xff] }
 0x332   :  { %v5094_v43 = vadd.f32 %v2792_v10, %v2279_v55  ;;  %v5598_v53 = vpop.eup %5597  ;;  %3632 = vrot.lane.b32.xlu1 %v8770_v21, %s5850_s17  ;;  %3470 = vrot.lane.b32.xlu0 %v3390_v1, %s5849_s7  ;;  %v8784_v40 = vpop.permute.xlu0 %3177  ;;  %v2289_v1 = vadd.f32 %v8260_v61, %v8456_v2 }
 0x333   :  { %9886 = vst [vmem:[#allocation16_spill] sm:$0xff] %v8763_v14  ;;  %5607 = vtanh.f32 %v8763_v14  ;;  %v3391_v55 = vmul.f32 %v5598_v53, %v4676_v52  ;;  %v8812_v47 = vpop.permute.xlu1 %3179 }
 0x334   :  { %v2796_v63 = vpop.f32.mrb[90].mxu1  ;;  %5609 = vtanh.f32 %v5094_v43 }
 0x335   :  { %v8782_v17 = vadd.f32 %v2796_v63, %v2283_v29  ;;  %v2798_v7 = vpop.f32.mrb[91].mxu1  ;;  %v8789_v10 = vpop.eup %5599  ;;  %v2291_v29 = vadd.f32 %v8263_v16, %v8460_v35  ;;  %v4678_v16 = vld [vmem:[%s9716_s1 + $0x198] sm:$0xff] }
 0x336   :  { %v5098_v59 = vadd.f32 %v2798_v7, %v2285_v48  ;;  %v5602_v14 = vpop.eup %5601  ;;  %3472 = vrot.lane.b32.xlu1 %v3391_v55, %s5849_s7  ;;  %3634 = vrot.lane.b32.xlu0 %v8789_v10, %s5850_s17  ;;  %v8803_v63 = vpop.permute.xlu0 %3181  ;;  %v2295_v55 = vadd.f32 %v8280_v56, %v8456_v2 }
 0x337   :  { %9887 = vst [vmem:[#allocation19_spill] sm:$0xff] %v8782_v17  ;;  %5611 = vtanh.f32 %v8782_v17  ;;  %v3392_v48 = vmul.f32 %v5602_v14, %v4677_v31  ;;  %v8831_v26 = vpop.permute.xlu1 %3183 }
 0x338   :  { %v2802_v53 = vpop.f32.mrb[92].mxu1  ;;  %5613 = vtanh.f32 %v5098_v59 }
 0x339   :  { %v8801_v43 = vadd.f32 %v2802_v53, %v2289_v1  ;;  %v2804_v52 = vpop.f32.mrb[93].mxu1  ;;  %v8808_v7 = vpop.eup %5603  ;;  %v2297_v1 = vadd.f32 %v8283_v30, %v8460_v35  ;;  %v4679_v30 = vld [vmem:[%s9716_s1 + $0x1a0] sm:$0xff] }
 0x33a   :  { %v5102_v61 = vadd.f32 %v2804_v52, %v2291_v29  ;;  %9889 = vst [vmem:[#allocation33_spill] sm:$0xff] %v8808_v7  ;;  %v5606_v17 = vpop.eup %5605  ;;  %3636 = vrot.lane.b32.xlu1 %v8808_v7, %s5850_s17  ;;  %3474 = vrot.lane.b32.xlu0 %v3392_v48, %s5849_s7  ;;  %v8822_v53 = vpop.permute.xlu0 %3185  ;;  %v2301_v48 = vadd.f32 %v8300_v6, %v8456_v2 }
 0x33b   :  { %9888 = vst [vmem:[#allocation27_spill] sm:$0xff] %v8801_v43  ;;  %5615 = vtanh.f32 %v8801_v43  ;;  %v3393_v29 = vmul.f32 %v5606_v17, %v4678_v16  ;;  %v8850_v7 = vpop.permute.xlu1 %3187 }
 0x33c   :  { %v2808_v14 = vpop.f32.mrb[94].mxu1  ;;  %5617 = vtanh.f32 %v5102_v61 }
 0x33d   :  { %v8820_v59 = vadd.f32 %v2808_v14, %v2295_v55  ;;  %v2810_v31 = vpop.f32.mrb[95].mxu1  ;;  %v8827_v52 = vpop.eup %5607  ;;  %v9892_v55 = vld [vmem:[#allocation18_spill] sm:$0xff] }
 0x33e   :  { %v5106_v56 = vadd.f32 %v2810_v31, %v2297_v1  ;;  %9891 = vst [vmem:[#allocation35_spill] sm:$0xff] %v8827_v52  ;;  %v5610_v43 = vpop.eup %5609  ;;  %v2303_v14 = vadd.f32 %v9892_v55, %v8460_v35  ;;  %3476 = vrot.lane.b32.xlu1 %v3393_v29, %s5849_s7  ;;  %3638 = vrot.lane.b32.xlu0 %v8827_v52, %s5850_s17  ;;  %v8841_v31 = vpop.permute.xlu0 %3189  ;;  %v4680_v55 = vld [vmem:[%s9716_s1 + $0x1a8] sm:$0xff]  ;;  %v9896_v29 = vld [vmem:[#allocation21_spill] sm:$0xff] }
 0x33f   :  { %9890 = vst [vmem:[#allocation34_spill] sm:$0xff] %v8820_v59  ;;  %5619 = vtanh.f32 %v8820_v59  ;;  %v3394_v1 = vmul.f32 %v5610_v43, %v4679_v30  ;;  %9894 = vst [vmem:[#allocation36_spill] sm:$0xff] %v8841_v31  ;;  %v2307_v52 = vadd.f32 %v9896_v29, %v8456_v2 }
 0x340   :  { %v2814_v17 = vpop.f32.mrb[96].mxu1  ;;  %5621 = vtanh.f32 %v5106_v56 }
 0x341   :  { %v8839_v61 = vadd.f32 %v2814_v17, %v2301_v48  ;;  %v2816_v16 = vpop.f32.mrb[97].mxu1  ;;  %v8846_v38 = vpop.eup %5611  ;;  %v9897_v48 = vld [vmem:[#allocation20_spill] sm:$0xff] }
 0x342   :  { %v5110_v6 = vadd.f32 %v2816_v16, %v2303_v14  ;;  %9895 = vst [vmem:[#allocation37_spill] sm:$0xff] %v8846_v38  ;;  %v5614_v59 = vpop.eup %5613  ;;  %v2309_v17 = vadd.f32 %v9897_v48, %v8460_v35  ;;  %3640 = vrot.lane.b32.xlu1 %v8846_v38, %s5850_s17  ;;  %3478 = vrot.lane.b32.xlu0 %v3394_v1, %s5849_s7  ;;  %v8860_v16 = vpop.permute.xlu0 %3193  ;;  %v4681_v48 = vld [vmem:[%s9716_s1 + $0x1b0] sm:$0xff] }
 0x343   :  { %9893 = vst [vmem:[#allocation18_spill] sm:$0xff] %v8839_v61  ;;  %5623 = vtanh.f32 %v8839_v61  ;;  %v3395_v14 = vmul.f32 %v5614_v59, %v4680_v55  ;;  %9899 = vst [vmem:[#allocation20_spill] sm:$0xff] %v8860_v16  ;;  %v2313_v1 = vadd.f32 %v8326_v41, %v8456_v2  ;;  %v8869_v38 = vpop.permute.xlu1 %3191 }
 0x344   :  { %v2820_v43 = vpop.f32.mrb[98].mxu1  ;;  %5625 = vtanh.f32 %v5110_v6 }
 0x345   :  { %v8858_v56 = vadd.f32 %v2820_v43, %v2307_v52  ;;  %v2822_v30 = vpop.f32.mrb[99].mxu1  ;;  %v8865_v31 = vpop.eup %5615  ;;  %v9901_v52 = vld [vmem:[#allocation28_spill] sm:$0xff] }
 0x346   :  { %v5114_v29 = vadd.f32 %v2822_v30, %v2309_v17  ;;  %9900 = vst [vmem:[#allocation38_spill] sm:$0xff] %v8865_v31  ;;  %v5618_v61 = vpop.eup %5617  ;;  %v2315_v43 = vadd.f32 %v9901_v52, %v8460_v35  ;;  %3480 = vrot.lane.b32.xlu1 %v3395_v14, %s5849_s7  ;;  %3642 = vrot.lane.b32.xlu0 %v8865_v31, %s5850_s17  ;;  %v8879_v30 = vpop.permute.xlu0 %3197  ;;  %v4682_v52 = vld [vmem:[%s9716_s1 + $0x1b8] sm:$0xff] }
 0x347   :  { %9898 = vst [vmem:[#allocation21_spill] sm:$0xff] %v8858_v56  ;;  %5627 = vtanh.f32 %v8858_v56  ;;  %v3396_v17 = vmul.f32 %v5618_v61, %v4681_v48  ;;  %9903 = vst [vmem:[#allocation39_spill] sm:$0xff] %v8879_v30  ;;  %v2319_v14 = vadd.f32 %v8334_v34, %v8456_v2  ;;  %v8888_v31 = vpop.permute.xlu1 %3195 }
 0x348   :  { %v2826_v59 = vpop.f32.mrb[100].mxu1  ;;  %5629 = vtanh.f32 %v5114_v29 }
 0x349   :  { %v8877_v6 = vadd.f32 %v2826_v59, %v2313_v1  ;;  %v2828_v55 = vpop.f32.mrb[101].mxu1  ;;  %v8884_v16 = vpop.eup %5619  ;;  %v9905_v1 = vld [vmem:[#allocation29_spill] sm:$0xff] }
 0x34a   :  { %v5118_v41 = vadd.f32 %v2828_v55, %v2315_v43  ;;  %9904 = vst [vmem:[#allocation40_spill] sm:$0xff] %v8884_v16  ;;  %v5622_v56 = vpop.eup %5621  ;;  %v2321_v59 = vadd.f32 %v9905_v1, %v8460_v35  ;;  %3644 = vrot.lane.b32.xlu1 %v8884_v16, %s5850_s17  ;;  %3482 = vrot.lane.b32.xlu0 %v3396_v17, %s5849_s7  ;;  %v4683_v55 = vld [vmem:[%s9716_s1 + $0x1c0] sm:$0xff]  ;;  %v8901_v30 = vpop.permute.xlu0 %3201 }
 0x34b   :  { %9902 = vst [vmem:[#allocation28_spill] sm:$0xff] %v8877_v6  ;;  %5631 = vtanh.f32 %v8877_v6  ;;  %v3397_v43 = vmul.f32 %v5622_v56, %v4682_v52  ;;  %9907 = vst [vmem:[#allocation41_spill] sm:$0xff] %v8901_v30  ;;  %v2325_v17 = vadd.f32 %v8342_v5, %v8456_v2  ;;  %v8907_v16 = vpop.permute.xlu1 %3199 }
 0x34c   :  { %v2832_v61 = vpop.f32.mrb[102].mxu1  ;;  %5633 = vtanh.f32 %v5118_v41  ;;  %9908 = vst [vmem:[#allocation42_spill] sm:$0xff] %v8907_v16 }
 0x34d   :  { %v8896_v29 = vadd.f32 %v2832_v61, %v2319_v14  ;;  %v2834_v48 = vpop.f32.mrb[103].mxu1  ;;  %v8903_v1 = vpop.eup %5623  ;;  %v9909_v14 = vld [vmem:[#allocation30_spill] sm:$0xff] }
 0x34e   :  { %v5122_v34 = vadd.f32 %v2834_v48, %v2321_v59  ;;  %v5626_v6 = vpop.eup %5625  ;;  %v2327_v61 = vadd.f32 %v9909_v14, %v8460_v35  ;;  %3484 = vrot.lane.b32.xlu1 %v3397_v43, %s5849_s7  ;;  %3646 = vrot.lane.b32.xlu0 %v8903_v1, %s5850_s17  ;;  %v4684_v48 = vld [vmem:[%s9716_s1 + $0x1c8] sm:$0xff]  ;;  %v2331_v43 = vadd.f32 %v8350_v28, %v8456_v2 }
 0x34f   :  { %9906 = vst [vmem:[#allocation29_spill] sm:$0xff] %v8896_v29  ;;  %5635 = vtanh.f32 %v8896_v29  ;;  %v3398_v59 = vmul.f32 %v5626_v6, %v4683_v55  ;;  %v8924_v14 = vpop.permute.xlu1 %3203  ;;  %v9913_v29 = vld [vmem:[#allocation31_spill] sm:$0xff] }
 0x350   :  { %v2838_v56 = vpop.f32.mrb[104].mxu1  ;;  %5637 = vtanh.f32 %v5122_v34  ;;  %9912 = vst [vmem:[#allocation44_spill] sm:$0xff] %v8924_v14  ;;  %v8931_v34 = vpop.permute.xlu0 %3205 }
 0x351   :  { %v8915_v41 = vadd.f32 %v2838_v56, %v2325_v17  ;;  %v2840_v52 = vpop.f32.mrb[105].mxu1  ;;  %v8920_v30 = vpop.eup %5627  ;;  %v2333_v17 = vadd.f32 %v9913_v29, %v8460_v35  ;;  %9914 = vst [vmem:[#allocation31_spill] sm:$0xff] %v8931_v34  ;;  %v4685_v29 = vld [vmem:[%s9716_s1 + $0x1d0] sm:$0xff] }
 0x352   :  { %v5126_v5 = vadd.f32 %v2840_v52, %v2327_v61  ;;  %9911 = vst [vmem:[#allocation43_spill] sm:$0xff] %v8920_v30  ;;  %v5630_v16 = vpop.eup %5629  ;;  %3648 = vrot.lane.b32.xlu1 %v8920_v30, %s5850_s17  ;;  %3486 = vrot.lane.b32.xlu0 %v3398_v59, %s5849_s7  ;;  %v2337_v59 = vadd.f32 %v8358_v44, %v8456_v2  ;;  %v9916_v34 = vld [vmem:[#allocation32_spill] sm:$0xff] }
 0x353   :  { %9910 = vst [vmem:[#allocation30_spill] sm:$0xff] %v8915_v41  ;;  %5639 = vtanh.f32 %v8915_v41  ;;  %v3399_v28 = vmul.f32 %v5630_v16, %v4684_v48  ;;  %v2339_v30 = vadd.f32 %v9916_v34, %v8460_v35  ;;  %v4686_v34 = vld [vmem:[%s9716_s1 + $0x1d8] sm:$0xff]  ;;  %v3247_v41 = vmul.f32 %v8521_v0, %v8667_v54 }
 0x354   :  { %v2844_v6 = vpop.f32.mrb[106].mxu1  ;;  %5641 = vtanh.f32 %v5126_v5 }
 0x355   :  { %v8934_v55 = vadd.f32 %v2844_v6, %v2331_v43  ;;  %v2846_v61 = vpop.f32.mrb[107].mxu1  ;;  %v8939_v52 = vpop.eup %5631 }
 0x356   :  { %v5130_v56 = vadd.f32 %v2846_v61, %v2333_v17  ;;  %v5634_v14 = vpop.eup %5633  ;;  %3488 = vrot.lane.b32.xlu1 %v3399_v28, %s5849_s7  ;;  %3650 = vrot.lane.b32.xlu0 %v8939_v52, %s5850_s17  ;;  %v8951_v17 = vpop.permute.xlu1 %3207  ;;  %v2343_v28 = vadd.f32 %v8366_v9, %v8456_v2  ;;  %v4687_v9 = vld [vmem:[%s9716_s1 + $0x1e0] sm:$0xff] }
 0x357   :  { %9915 = vst [vmem:[#allocation45_spill] sm:$0xff] %v8934_v55  ;;  %5643 = vtanh.f32 %v8934_v55  ;;  %v3400_v43 = vmul.f32 %v5634_v14, %v4685_v29  ;;  %v8953_v6 = vpop.permute.xlu0 %3209 }
 0x358   :  { %v2850_v16 = vpop.f32.mrb[108].mxu1  ;;  %5645 = vtanh.f32 %v5130_v56 }
 0x359   :  { %v8949_v5 = vadd.f32 %v2850_v16, %v2337_v59  ;;  %v2852_v48 = vpop.f32.mrb[109].mxu1  ;;  %v8958_v61 = vpop.eup %5635  ;;  %v2345_v59 = vadd.f32 %v8369_v39, %v8460_v35 }
 0x35a   :  { %v5134_v44 = vadd.f32 %v2852_v48, %v2339_v30  ;;  %v5638_v55 = vpop.eup %5637  ;;  %3652 = vrot.lane.b32.xlu1 %v8958_v61, %s5850_s17  ;;  %3490 = vrot.lane.b32.xlu0 %v3400_v43, %s5849_s7  ;;  %v8975_v39 = vpop.permute.xlu1 %3211  ;;  %v4688_v43 = vld [vmem:[%s9716_s1 + $0x1e8] sm:$0xff] }
 0x35b   :  { %9917 = vst [vmem:[#allocation32_spill] sm:$0xff] %v8949_v5  ;;  %5647 = vtanh.f32 %v8949_v5  ;;  %v3401_v29 = vmul.f32 %v5638_v55, %v4686_v34 }
 0x35c   :  { %v2856_v30 = vpop.f32.mrb[110].mxu1  ;;  %5649 = vtanh.f32 %v5134_v44 }
 0x35d   :  { %v8968_v14 = vadd.f32 %v2856_v30, %v2343_v28  ;;  %v2858_v56 = vpop.f32.mrb[111].mxu1  ;;  %v8973_v2 = vpop.eup %5639 }
 0x35e   :  { %v5138_v16 = vadd.f32 %v2858_v56, %v2345_v59  ;;  %v5642_v35 = vpop.eup %5641  ;;  %3492 = vrot.lane.b32.xlu1 %v3401_v29, %s5849_s7  ;;  %3654 = vrot.lane.b32.xlu0 %v8973_v2, %s5850_s17  ;;  %v3245_v29 = vmul.f32 %v8490_v15, %v8647_v37 }
 0x35f   :  { %9918 = vst [vmem:[#allocation46_spill] sm:$0xff] %v8968_v14  ;;  %5651 = vtanh.f32 %v8968_v14  ;;  %v3402_v55 = vmul.f32 %v5642_v35, %v4687_v9 }
 0x360   :  { %v8980_v48 = vpop.permute.xlu0 %3598  ;;  %5653 = vtanh.f32 %v5138_v16  ;;  %v4689_v16 = vld [vmem:[%s9716_s1 + $0x1f0] sm:$0xff] }
 0x361   :  { %v8986_v34 = vpop.eup %5643 }
 0x362   :  { %v5646_v28 = vpop.eup %5645  ;;  %3656 = vrot.lane.b32.xlu1 %v8986_v34, %s5850_s17  ;;  %3494 = vrot.lane.b32.xlu0 %v3402_v55, %s5849_s7 }
 0x363   :  { %v3403_v30 = vmul.f32 %v5646_v28, %v4688_v43  ;;  %v3246_v43 = vmul.f32 %v8506_v60, %v8672_v20 }
 0x364   :  { %v3439_v44 = vpop.permute.xlu0 %3438  ;;  %v8991_v59 = vpop.permute.xlu1 %3600 }
 0x365   :  { %v8993_v56 = vpop.eup %5647  ;;  %v3534_v55 = vadd.f32 %v3439_v44, %v3245_v29  ;;  %v4690_v29 = vld [vmem:[%s9716_s1 + $0x1f8] sm:$0xff] }
 0x366   :  { %3496 = vrot.lane.b32.xlu1 %v3403_v30, %s5849_s7  ;;  %3658 = vrot.lane.b32.xlu0 %v8993_v56, %s5850_s17  ;;  %v5650_v14 = vpop.eup %5649 }
 0x367   :  { %v3404_v44 = vmul.f32 %v5650_v14, %v4689_v16  ;;  %v3248_v14 = vmul.f32 %v8536_v51, %v8698_v3 }
 0x368   :  { %v3441_v9 = vpop.permute.xlu1 %3440  ;;  %v9000_v35 = vpop.permute.xlu0 %3602 }
 0x369   :  { %v9002_v5 = vpop.eup %5651  ;;  %v3535_v28 = vadd.f32 %v3441_v9, %v3246_v43  ;;  %v3249_v9 = vmul.f32 %v8551_v46, %v8689_v57 }
 0x36a   :  { %3660 = vrot.lane.b32.xlu1 %v9002_v5, %s5850_s17  ;;  %3758 = vrot.lane.b32.xlu0 %v3534_v55, %s5851_s2  ;;  %v5654_v30 = vpop.eup %5653 }
 0x36c   :  { %v9012_v15 = vpop.permute.xlu1 %3604  ;;  %v3443_v37 = vpop.permute.xlu0 %3442 }
 0x36d   :  { %9919 = vst [vmem:[#allocation47_spill] sm:$0xff] %v9012_v15  ;;  %v3536_v20 = vadd.f32 %v3443_v37, %v3247_v41  ;;  %v3405_v15 = vmul.f32 %v5654_v30, %v4690_v29  ;;  %v3250_v41 = vmul.f32 %v8566_v18, %v8717_v45  ;;  %v3251_v37 = vmul.f32 %v8581_v25, %v8708_v4 }
 0x36e   :  { %3760 = vrot.lane.b32.xlu1 %v3535_v28, %s5851_s2  ;;  %3498 = vrot.lane.b32.xlu0 %v3404_v44, %s5849_s7  ;;  %v3252_v44 = vmul.f32 %v8596_v8, %v8736_v32  ;;  %v3253_v29 = vmul.f32 %v8611_v27, %v8727_v19 }
 0x370   :  { %v3445_v60 = vpop.permute.xlu1 %3444  ;;  %v9021_v55 = vpop.permute.xlu0 %3606 }
 0x371   :  { %v3537_v0 = vadd.f32 %v3445_v60, %v3248_v14 }
 0x372   :  { %3500 = vrot.lane.b32.xlu1 %v3405_v15, %s5849_s7  ;;  %3762 = vrot.lane.b32.xlu0 %v3536_v20, %s5851_s2  ;;  %v3254_v20 = vmul.f32 %v8626_v33, %v8755_v49 }
 0x374   :  { %v9029_v54 = vpop.permute.xlu1 %3608  ;;  %v3447_v16 = vpop.permute.xlu0 %3446 }
 0x375   :  { %v3538_v43 = vadd.f32 %v3447_v16, %v3249_v9  ;;  %v3255_v9 = vmul.f32 %v8641_v11, %v8746_v23  ;;  %v3256_v16 = vmul.f32 %v8658_v13, %v8774_v12 }
 0x376   :  { %3764 = vrot.lane.b32.xlu1 %v3537_v0, %s5851_s2 }
 0x377   :  { %3766 = vrot.lane.b32.xlu0 %v3538_v43, %s5851_s2 }
 0x378   :  { %v3449_v51 = vpop.permute.xlu1 %3448  ;;  %v9035_v3 = vpop.permute.xlu0 %3610 }
 0x379   :  { %v3539_v15 = vadd.f32 %v3449_v51, %v3250_v41  ;;  %v3257_v41 = vmul.f32 %v8677_v58, %v8765_v24 }
 0x37b   :  { %3768 = vrot.lane.b32.xlu1 %v3539_v15, %s5851_s2  ;;  %v3258_v15 = vmul.f32 %v8694_v50, %v8793_v22 }
 0x37c   :  { %v9040_v46 = vpop.permute.xlu1 %3612  ;;  %v3451_v57 = vpop.permute.xlu0 %3450 }
 0x37d   :  { %v3540_v28 = vadd.f32 %v3451_v57, %v3251_v37  ;;  %v3259_v57 = vmul.f32 %v8713_v36, %v8784_v40 }
 0x37f   :  { %3770 = vrot.lane.b32.xlu0 %v3540_v28, %s5851_s2 }
 0x380   :  { %v3453_v18 = vpop.permute.xlu1 %3452  ;;  %v9045_v45 = vpop.permute.xlu0 %3614 }
 0x381   :  { %v3541_v30 = vadd.f32 %v3453_v18, %v3252_v44  ;;  %v3260_v44 = vmul.f32 %v8732_v42, %v8812_v47 }
 0x383   :  { %3772 = vrot.lane.b32.xlu1 %v3541_v30, %s5851_s2  ;;  %v3261_v30 = vmul.f32 %v8751_v62, %v8803_v63 }
 0x384   :  { %v9050_v25 = vpop.permute.xlu1 %3616  ;;  %v3455_v4 = vpop.permute.xlu0 %3454 }
 0x385   :  { %v3542_v60 = vadd.f32 %v3455_v4, %v3253_v29  ;;  %v3262_v4 = vmul.f32 %v8770_v21, %v8831_v26 }
 0x387   :  { %3774 = vrot.lane.b32.xlu0 %v3542_v60, %s5851_s2 }
 0x388   :  { %v3457_v32 = vpop.permute.xlu1 %3456  ;;  %v9055_v8 = vpop.permute.xlu0 %3618 }
 0x389   :  { %v3543_v14 = vadd.f32 %v3457_v32, %v3254_v20  ;;  %v3263_v20 = vmul.f32 %v8789_v10, %v8822_v53 }
 0x38b   :  { %3776 = vrot.lane.b32.xlu1 %v3543_v14, %s5851_s2  ;;  %v9920_v14 = vld [vmem:[#allocation33_spill] sm:$0xff] }
 0x38c   :  { %v9060_v27 = vpop.permute.xlu1 %3620  ;;  %v3459_v19 = vpop.permute.xlu0 %3458 }
 0x38d   :  { %v3544_v0 = vadd.f32 %v3459_v19, %v3255_v9  ;;  %v3264_v9 = vmul.f32 %v9920_v14, %v8850_v7 }
 0x38f   :  { %3778 = vrot.lane.b32.xlu0 %v3544_v0, %s5851_s2  ;;  %v9921_v0 = vld [vmem:[#allocation36_spill] sm:$0xff] }
 0x390   :  { %v3461_v49 = vpop.permute.xlu1 %3460  ;;  %v9065_v33 = vpop.permute.xlu0 %3622 }
 0x391   :  { %v3545_v43 = vadd.f32 %v3461_v49, %v3256_v16  ;;  %v9922_v16 = vld [vmem:[#allocation35_spill] sm:$0xff] }
 0x392   :  { %v3265_v49 = vmul.f32 %v9922_v16, %v9921_v0  ;;  %v9931_v0 = vld [vmem:[#allocation39_spill] sm:$0xff] }
 0x393   :  { %3780 = vrot.lane.b32.xlu1 %v3545_v43, %s5851_s2  ;;  %v3269_v16 = vmul.f32 %v8903_v1, %v9931_v0 }
 0x394   :  { %v9070_v11 = vpop.permute.xlu1 %3624  ;;  %v3463_v23 = vpop.permute.xlu0 %3462 }
 0x395   :  { %v3546_v51 = vadd.f32 %v3463_v23, %v3257_v41  ;;  %v9923_v41 = vld [vmem:[#allocation4_spill] sm:$0xff] }
 0x396   :  { %v2861_v23 = vsub.f32 0.0, %v9923_v41 }
 0x397   :  { %3782 = vrot.lane.b32.xlu0 %v3546_v51, %s5851_s2  ;;  %v9924_v51 = vld [vmem:[#allocation37_spill] sm:$0xff] }
 0x398   :  { %v3465_v12 = vpop.permute.xlu1 %3464  ;;  %v9075_v13 = vpop.permute.xlu0 %3626  ;;  %v3266_v7 = vmul.f32 %v9924_v51, %v8869_v38  ;;  %v9933_v51 = vld [vmem:[#allocation42_spill] sm:$0xff] }
 0x399   :  { %v3547_v37 = vadd.f32 %v3465_v12, %v3258_v15 }
 0x39b   :  { %3784 = vrot.lane.b32.xlu1 %v3547_v37, %s5851_s2 }
 0x39c   :  { %v9080_v58 = vpop.permute.xlu1 %3628  ;;  %v3467_v24 = vpop.permute.xlu0 %3466 }
 0x39d   :  { %v3548_v28 = vadd.f32 %v3467_v24, %v3259_v57  ;;  %v2893_v57 = vmul.f32 1.442695, %v2861_v23  ;;  %v9925_v24 = vld [vmem:[#allocation3_spill] sm:$0xff] }
 0x39f   :  { %3786 = vrot.lane.b32.xlu0 %v3548_v28, %s5851_s2  ;;  %v2862_v28 = vsub.f32 0.0, %v9925_v24  ;;  %5655 = vpow2.f32 %v2893_v57  ;;  %v9935_v24 = vld [vmem:[#allocation22_spill] sm:$0xff] }
 0x3a0   :  { %v3469_v22 = vpop.permute.xlu1 %3468  ;;  %v9085_v50 = vpop.permute.xlu0 %3630 }
 0x3a1   :  { %v3549_v18 = vadd.f32 %v3469_v22, %v3260_v44  ;;  %v9926_v44 = vld [vmem:[#allocation20_spill] sm:$0xff]  ;;  %v9927_v22 = vld [vmem:[#allocation38_spill] sm:$0xff]  ;;  %v2895_v38 = vmul.f32 1.442695, %v2862_v28  ;;  %v2866_v28 = vsub.f32 0.0, %v9935_v24 }
 0x3a3   :  { %3788 = vrot.lane.b32.xlu1 %v3549_v18, %s5851_s2  ;;  %v3267_v18 = vmul.f32 %v9927_v22, %v9926_v44  ;;  %5657 = vpow2.f32 %v2895_v38 }
 0x3a4   :  { %v9090_v36 = vpop.permute.xlu1 %3632  ;;  %v3471_v40 = vpop.permute.xlu0 %3470 }
 0x3a5   :  { %v3550_v29 = vadd.f32 %v3471_v40, %v3261_v30 }
 0x3a7   :  { %3790 = vrot.lane.b32.xlu0 %v3550_v29, %s5851_s2 }
 0x3a8   :  { %v3473_v47 = vpop.permute.xlu1 %3472  ;;  %v9095_v42 = vpop.permute.xlu0 %3634 }
 0x3a9   :  { %v3551_v60 = vadd.f32 %v3473_v47, %v3262_v4  ;;  %v9928_v4 = vld [vmem:[#allocation10_spill] sm:$0xff] }
 0x3aa   :  { %v2863_v47 = vsub.f32 0.0, %v9928_v4  ;;  %v2903_v4 = vmul.f32 1.442695, %v2866_v28 }
 0x3ab   :  { %3792 = vrot.lane.b32.xlu1 %v3551_v60, %s5851_s2  ;;  %v9929_v60 = vld [vmem:[#allocation40_spill] sm:$0xff] }
 0x3ac   :  { %v9100_v62 = vpop.permute.xlu1 %3636  ;;  %v3475_v63 = vpop.permute.xlu0 %3474 }
 0x3ad   :  { %v3552_v32 = vadd.f32 %v3475_v63, %v3263_v20  ;;  %v3268_v20 = vmul.f32 %v9929_v60, %v8888_v31 }
 0x3af   :  { %3794 = vrot.lane.b32.xlu0 %v3552_v32, %s5851_s2 }
 0x3b0   :  { %v3477_v26 = vpop.permute.xlu1 %3476  ;;  %v9105_v21 = vpop.permute.xlu0 %3638 }
 0x3b1   :  { %v3553_v19 = vadd.f32 %v3477_v26, %v3264_v9  ;;  %v2897_v9 = vmul.f32 1.442695, %v2863_v47  ;;  %v9930_v26 = vld [vmem:[#allocation6_spill] sm:$0xff]  ;;  %v9937_v47 = vld [vmem:[#allocation25_spill] sm:$0xff] }
 0x3b2   :  { %v2867_v60 = vsub.f32 0.0, %v9937_v47 }
 0x3b3   :  { %3796 = vrot.lane.b32.xlu1 %v3553_v19, %s5851_s2  ;;  %v2864_v19 = vsub.f32 0.0, %v9930_v26  ;;  %5659 = vpow2.f32 %v2897_v9  ;;  %v9938_v26 = vld [vmem:[#allocation44_spill] sm:$0xff] }
 0x3b4   :  { %v9110_v10 = vpop.permute.xlu1 %3640  ;;  %v3479_v53 = vpop.permute.xlu0 %3478 }
 0x3b5   :  { %v3554_v43 = vadd.f32 %v3479_v53, %v3265_v49  ;;  %v9932_v49 = vld [vmem:[#allocation11_spill] sm:$0xff]  ;;  %v2899_v23 = vmul.f32 1.442695, %v2864_v19  ;;  %v3272_v19 = vmul.f32 %v8958_v61, %v9938_v26 }
 0x3b6   :  { %v2865_v53 = vsub.f32 0.0, %v9932_v49 }
 0x3b7   :  { %3798 = vrot.lane.b32.xlu0 %v3554_v43, %s5851_s2  ;;  %5661 = vpow2.f32 %v2899_v23 }
 0x3b8   :  { %v3481_v15 = vpop.permute.xlu1 %3480  ;;  %v9116_v12 = vpop.permute.xlu0 %3642  ;;  %v2901_v57 = vmul.f32 1.442695, %v2865_v53 }
 0x3b9   :  { %v3555_v37 = vadd.f32 %v3481_v15, %v3266_v7  ;;  %v9934_v7 = vld [vmem:[#allocation43_spill] sm:$0xff] }
 0x3ba   :  { %v3270_v15 = vmul.f32 %v9934_v7, %v9933_v51  ;;  %5663 = vpow2.f32 %v2901_v57  ;;  %v9940_v51 = vld [vmem:[#allocation31_spill] sm:$0xff] }
 0x3bb   :  { %3800 = vrot.lane.b32.xlu1 %v3555_v37, %s5851_s2  ;;  %v5656_v37 = vpop.eup %5655  ;;  %v3273_v7 = vmul.f32 %v8973_v2, %v9940_v51 }
 0x3bc   :  { %v9122_v30 = vpop.permute.xlu1 %3644  ;;  %v3483_v40 = vpop.permute.xlu0 %3482 }
 0x3bd   :  { %v3556_v29 = vadd.f32 %v3483_v40, %v3267_v18  ;;  %v2957_v18 = vadd.f32 1.0, %v5656_v37  ;;  %v9936_v40 = vld [vmem:[#allocation41_spill] sm:$0xff]  ;;  %v5658_v38 = vpop.eup %5657 }
 0x3be   :  { %v2958_v9 = vadd.f32 1.0, %v5658_v38  ;;  %v5660_v0 = vpop.eup %5659 }
 0x3bf   :  { %3802 = vrot.lane.b32.xlu0 %v3556_v29, %s5851_s2  ;;  %v3271_v29 = vmul.f32 %v8939_v52, %v9936_v40  ;;  %5665 = vrcp.f32 %v2957_v18  ;;  %v2905_v52 = vmul.f32 1.442695, %v2867_v60  ;;  %v2959_v23 = vadd.f32 1.0, %v5660_v0 }
 0x3c0   :  { %v3485_v63 = vpop.permute.xlu1 %3484  ;;  %v9128_v32 = vpop.permute.xlu0 %3646  ;;  %5667 = vpow2.f32 %v2903_v4  ;;  %v3274_v18 = vmul.f32 %v8986_v34, %v8951_v17 }
 0x3c1   :  { %v3557_v14 = vadd.f32 %v3485_v63, %v3268_v20  ;;  %5669 = vrcp.f32 %v2958_v9  ;;  %v5662_v57 = vpop.eup %5661 }
 0x3c2   :  { %5671 = vpow2.f32 %v2905_v52  ;;  %v2960_v40 = vadd.f32 1.0, %v5662_v57 }
 0x3c3   :  { %3804 = vrot.lane.b32.xlu1 %v3557_v14, %s5851_s2  ;;  %5673 = vrcp.f32 %v2959_v23  ;;  %v3275_v23 = vmul.f32 %v8993_v56, %v8953_v6  ;;  %v3276_v6 = vmul.f32 %v9002_v5, %v8975_v39 }
 0x3c4   :  { %v9135_v43 = vpop.permute.xlu1 %3648  ;;  %v3487_v31 = vpop.permute.xlu0 %3486 }
 0x3c5   :  { %v3558_v41 = vadd.f32 %v3487_v31, %v3269_v16  ;;  %v9939_v16 = vld [vmem:[#allocation13_spill] sm:$0xff]  ;;  %v5664_v28 = vpop.eup %5663 }
 0x3c6   :  { %v2868_v49 = vsub.f32 0.0, %v9939_v16  ;;  %v2961_v4 = vadd.f32 1.0, %v5664_v28 }
 0x3c7   :  { %3806 = vrot.lane.b32.xlu0 %v3558_v41, %s5851_s2 }
 0x3c8   :  { %v3489_v1 = vpop.permute.xlu1 %3488  ;;  %v9141_v44 = vpop.permute.xlu0 %3650  ;;  %v2907_v61 = vmul.f32 1.442695, %v2868_v49 }
 0x3c9   :  { %v3559_v22 = vadd.f32 %v3489_v1, %v3270_v15  ;;  %v9941_v1 = vld [vmem:[#allocation2_spill] sm:$0xff]  ;;  %v9166_v38 = vpop.eup %5665 }
 0x3ca   :  { %5675 = vpow2.f32 %v2907_v61  ;;  %v5668_v60 = vpop.eup %5667  ;;  %v3694_v26 = vmul.f32 %v9166_v38, %v8980_v48 }
 0x3cb   :  { %3808 = vrot.lane.b32.xlu1 %v3559_v22, %s5851_s2  ;;  %v2869_v22 = vsub.f32 0.0, %v9941_v1  ;;  %5677 = vrcp.f32 %v2960_v40  ;;  %v2962_v0 = vadd.f32 1.0, %v5668_v60 }
 0x3cc   :  { %v9147_v20 = vpop.permute.xlu1 %3652  ;;  %v3491_v63 = vpop.permute.xlu0 %3490  ;;  %5679 = vrcp.f32 %v2961_v4 }
 0x3cd   :  { %v3560_v14 = vadd.f32 %v3491_v63, %v3271_v29  ;;  %v2909_v63 = vmul.f32 1.442695, %v2869_v22  ;;  %v9944_v22 = vld [vmem:[#allocation9_spill] sm:$0xff] }
 0x3cf   :  { %3810 = vrot.lane.b32.xlu0 %v3560_v14, %s5851_s2  ;;  %v9942_v14 = vld [vmem:[#allocation5_spill] sm:$0xff]  ;;  %5681 = vpow2.f32 %v2909_v63 }
 0x3d0   :  { %v3493_v53 = vpop.permute.xlu1 %3492  ;;  %v9153_v31 = vpop.permute.xlu0 %3654  ;;  %v2870_v9 = vsub.f32 0.0, %v9942_v14  ;;  %v9945_v14 = vld [vmem:[#allocation8_spill] sm:$0xff] }
 0x3d1   :  { %v3561_v41 = vadd.f32 %v3493_v53, %v3272_v19  ;;  %v9174_v19 = vpop.eup %5669  ;;  %v9943_v53 = vld [vmem:[#allocation7_spill] sm:$0xff]  ;;  %v2873_v5 = vsub.f32 0.0, %v9945_v14 }
 0x3d2   :  { %v5672_v16 = vpop.eup %5671  ;;  %v2911_v49 = vmul.f32 1.442695, %v2870_v9  ;;  %v3695_v48 = vmul.f32 %v9174_v19, %v8991_v59 }
 0x3d3   :  { %3812 = vrot.lane.b32.xlu1 %v3561_v41, %s5851_s2  ;;  %v2871_v41 = vsub.f32 0.0, %v9943_v53  ;;  %v9182_v61 = vpop.eup %5673  ;;  %v9947_v53 = vld [vmem:[#allocation23_spill] sm:$0xff] }
 0x3d4   :  { %v9158_v15 = vpop.permute.xlu1 %3656  ;;  %v3495_v37 = vpop.permute.xlu0 %3494  ;;  %v3696_v59 = vmul.f32 %v9182_v61, %v9000_v35  ;;  %v9946_v35 = vld [vmem:[#allocation47_spill] sm:$0xff] }
 0x3d5   :  { %v3562_v24 = vadd.f32 %v3495_v37, %v3273_v7  ;;  %v2963_v37 = vadd.f32 1.0, %v5672_v16  ;;  %v5676_v28 = vpop.eup %5675  ;;  %v2913_v1 = vmul.f32 1.442695, %v2871_v41  ;;  %v2874_v41 = vsub.f32 0.0, %v9947_v53 }
 0x3d6   :  { %v9191_v60 = vpop.eup %5677 }
 0x3d7   :  { %3814 = vrot.lane.b32.xlu0 %v3562_v24, %s5851_s2  ;;  %v9194_v39 = vpop.eup %5679  ;;  %v3697_v9 = vmul.f32 %v9191_v60, %v9946_v35 }
 0x3d8   :  { %v3497_v2 = vpop.permute.xlu1 %3496  ;;  %v9164_v29 = vpop.permute.xlu0 %3658 }
 0x3d9   :  { %v3563_v47 = vadd.f32 %v3497_v2, %v3274_v18  ;;  %v2872_v18 = vsub.f32 0.0, %v9944_v22  ;;  %v2964_v2 = vadd.f32 1.0, %v5676_v28  ;;  %v2919_v28 = vmul.f32 1.442695, %v2874_v41 }
 0x3db   :  { %3816 = vrot.lane.b32.xlu1 %v3563_v47, %s5851_s2  ;;  %v2915_v63 = vmul.f32 1.442695, %v2872_v18 }
 0x3dc   :  { %v9172_v17 = vpop.permute.xlu1 %3660  ;;  %v3759_v34 = vpop.permute.xlu0 %3758 }
 0x3dd   :  { %v3854_v52 = vadd.f32 %v3759_v34, %v3694_v26  ;;  %v5682_v26 = vpop.eup %5681 }
 0x3df   :  { %5683 = vtanh.f32 %v3854_v52  ;;  %4238 = vrot.lane.b32.xlu0 %v3854_v52, %s5851_s2 }
 0x3e0   :  { %v3761_v51 = vpop.permute.xlu1 %3760  ;;  %v3499_v7 = vpop.permute.xlu0 %3498  ;;  %5685 = vrcp.f32 %v2962_v0 }
 0x3e1   :  { %v3855_v57 = vadd.f32 %v3761_v51, %v3695_v48  ;;  %v3564_v24 = vadd.f32 %v3499_v7, %v3275_v23  ;;  %5687 = vpow2.f32 %v2911_v49  ;;  %v2917_v49 = vmul.f32 1.442695, %v2873_v5 }
 0x3e2   :  { %v3698_v23 = vmul.f32 %v9194_v39, %v9021_v55  ;;  %v2965_v51 = vadd.f32 1.0, %v5682_v26 }
 0x3e3   :  { %5689 = vtanh.f32 %v3855_v57  ;;  %4240 = vrot.lane.b32.xlu1 %v3855_v57, %s5851_s2  ;;  %3818 = vrot.lane.b32.xlu0 %v3564_v24, %s5851_s2 }
 0x3e4   :  { %v3501_v56 = vpop.permute.xlu1 %3500  ;;  %v3763_v40 = vpop.permute.xlu0 %3762  ;;  %5691 = vrcp.f32 %v2963_v37 }
 0x3e5   :  { %v3565_v4 = vadd.f32 %v3501_v56, %v3276_v6  ;;  %v3856_v47 = vadd.f32 %v3763_v40, %v3696_v59  ;;  %5693 = vpow2.f32 %v2913_v1  ;;  %v9948_v1 = vld [vmem:[#allocation24_spill] sm:$0xff] }
 0x3e6   :  { %v2875_v22 = vsub.f32 0.0, %v9948_v1 }
 0x3e7   :  { %5695 = vtanh.f32 %v3856_v47  ;;  %3820 = vrot.lane.b32.xlu1 %v3565_v4, %s5851_s2  ;;  %4242 = vrot.lane.b32.xlu0 %v3856_v47, %s5851_s2  ;;  %v9949_v47 = vld [vmem:[#allocation12_spill] sm:$0xff] }
 0x3e8   :  { %v3765_v34 = vpop.permute.xlu1 %3764  ;;  %5697 = vrcp.f32 %v2964_v2  ;;  %v2921_v4 = vmul.f32 1.442695, %v2875_v22 }
 0x3e9   :  { %v5684_v0 = vpop.eup %5683  ;;  %v3857_v52 = vadd.f32 %v3765_v34, %v3697_v9  ;;  %v3767_v16 = vpop.permute.xlu0 %3766  ;;  %5699 = vpow2.f32 %v2915_v63  ;;  %v2876_v63 = vsub.f32 0.0, %v9949_v47 }
 0x3ea   :  { %v9203_v48 = vpop.eup %5685  ;;  %v3858_v37 = vadd.f32 %v3767_v16, %v3698_v23 }
 0x3eb   :  { %5701 = vtanh.f32 %v3857_v52  ;;  %4244 = vrot.lane.b32.xlu1 %v3857_v52, %s5851_s2  ;;  %3950 = vrot.lane.b32.xlu0 %v5684_v0, %s5851_s2  ;;  %v5688_v7 = vpop.eup %5687  ;;  %v3699_v18 = vmul.f32 %v9203_v48, %v9029_v54  ;;  %v2923_v0 = vmul.f32 1.442695, %v2876_v63  ;;  %v9950_v52 = vld [vmem:[#allocation15_spill] sm:$0xff] }
 0x3ec   :  { %5703 = vpow2.f32 %v2917_v49  ;;  %v2966_v6 = vadd.f32 1.0, %v5688_v7  ;;  %v2877_v16 = vsub.f32 0.0, %v9950_v52 }
 0x3ed   :  { %v5690_v57 = vpop.eup %5689  ;;  %v3769_v24 = vpop.permute.xlu1 %3768  ;;  %5705 = vrcp.f32 %v2965_v51 }
 0x3ee   :  { %v9210_v55 = vpop.eup %5691  ;;  %5707 = vtanh.f32 %v3858_v37  ;;  %v3859_v56 = vadd.f32 %v3769_v24, %v3699_v18 }
 0x3ef   :  { %3952 = vrot.lane.b32.xlu1 %v5690_v57, %s5851_s2  ;;  %4246 = vrot.lane.b32.xlu0 %v3858_v37, %s5851_s2  ;;  %v5694_v59 = vpop.eup %5693  ;;  %5709 = vpow2.f32 %v2919_v28  ;;  %v3700_v54 = vmul.f32 %v9210_v55, %v9035_v3  ;;  %v2925_v37 = vmul.f32 1.442695, %v2877_v16  ;;  %v9951_v57 = vld [vmem:[#allocation14_spill] sm:$0xff] }
 0x3f0   :  { %5711 = vrcp.f32 %v2966_v6  ;;  %v2967_v5 = vadd.f32 1.0, %v5694_v59  ;;  %v2878_v24 = vsub.f32 0.0, %v9951_v57 }
 0x3f1   :  { %v5696_v40 = vpop.eup %5695  ;;  %v3771_v2 = vpop.permute.xlu0 %3770  ;;  %5713 = vtanh.f32 %v3859_v56 }
 0x3f2   :  { %v9217_v14 = vpop.eup %5697  ;;  %v3860_v9 = vadd.f32 %v3771_v2, %v3700_v54  ;;  %5715 = vpow2.f32 %v2921_v4 }
 0x3f3   :  { %4248 = vrot.lane.b32.xlu1 %v3859_v56, %s5851_s2  ;;  %3954 = vrot.lane.b32.xlu0 %v5696_v40, %s5851_s2  ;;  %v5700_v35 = vpop.eup %5699  ;;  %v3701_v3 = vmul.f32 %v9217_v14, %v9040_v46  ;;  %5717 = vrcp.f32 %v2967_v5  ;;  %v2927_v56 = vmul.f32 1.442695, %v2878_v24  ;;  %v9952_v40 = vld [vmem:[#allocation26_spill] sm:$0xff] }
 0x3f4   :  { %v2968_v49 = vadd.f32 1.0, %v5700_v35  ;;  %5719 = vtanh.f32 %v3860_v9  ;;  %v2879_v2 = vsub.f32 0.0, %v9952_v40 }
 0x3f5   :  { %v5702_v26 = vpop.eup %5701  ;;  %v3773_v34 = vpop.permute.xlu1 %3772  ;;  %5721 = vpow2.f32 %v2923_v0 }
 0x3f6   :  { %v5704_v53 = vpop.eup %5703  ;;  %v3861_v41 = vadd.f32 %v3773_v34, %v3701_v3  ;;  %5723 = vrcp.f32 %v2968_v49 }
 0x3f7   :  { %3956 = vrot.lane.b32.xlu1 %v5702_v26, %s5851_s2  ;;  %4250 = vrot.lane.b32.xlu0 %v3860_v9, %s5851_s2  ;;  %v9226_v23 = vpop.eup %5705  ;;  %v2969_v28 = vadd.f32 1.0, %v5704_v53  ;;  %v2929_v9 = vmul.f32 1.442695, %v2879_v2  ;;  %v9953_v26 = vld [vmem:[#allocation17_spill] sm:$0xff] }
 0x3f8   :  { %v5708_v7 = vpop.eup %5707  ;;  %v3702_v46 = vmul.f32 %v9226_v23, %v9045_v45  ;;  %5725 = vtanh.f32 %v3861_v41  ;;  %v2880_v34 = vsub.f32 0.0, %v9953_v26 }
 0x3f9   :  { %v3775_v51 = vpop.permute.xlu0 %3774  ;;  %v5710_v1 = vpop.eup %5709  ;;  %5727 = vpow2.f32 %v2925_v37 }
 0x3fa   :  { %v3862_v22 = vadd.f32 %v3775_v51, %v3702_v46  ;;  %v9233_v18 = vpop.eup %5711  ;;  %5729 = vrcp.f32 %v2969_v28  ;;  %v2970_v4 = vadd.f32 1.0, %v5710_v1  ;;  %v9954_v51 = vld [vmem:[#allocation16_spill] sm:$0xff] }
 0x3fb   :  { %4252 = vrot.lane.b32.xlu1 %v3861_v41, %s5851_s2  ;;  %3958 = vrot.lane.b32.xlu0 %v5708_v7, %s5851_s2  ;;  %v5714_v59 = vpop.eup %5713  ;;  %v3703_v45 = vmul.f32 %v9233_v18, %v9050_v25  ;;  %v2931_v41 = vmul.f32 1.442695, %v2880_v34  ;;  %v2881_v7 = vsub.f32 0.0, %v9954_v51 }
 0x3fc   :  { %v5716_v47 = vpop.eup %5715  ;;  %5731 = vtanh.f32 %v3862_v22 }
 0x3fd   :  { %v3777_v6 = vpop.permute.xlu1 %3776  ;;  %v9240_v54 = vpop.eup %5717  ;;  %5733 = vpow2.f32 %v2927_v56  ;;  %v2971_v0 = vadd.f32 1.0, %v5716_v47 }
 0x3fe   :  { %v3863_v63 = vadd.f32 %v3777_v6, %v3703_v45  ;;  %v5720_v35 = vpop.eup %5719  ;;  %v3704_v25 = vmul.f32 %v9240_v54, %v9055_v8  ;;  %5735 = vrcp.f32 %v2970_v4  ;;  %v9955_v6 = vld [vmem:[#allocation19_spill] sm:$0xff] }
 0x3ff   :  { %3960 = vrot.lane.b32.xlu1 %v5714_v59, %s5851_s2  ;;  %4254 = vrot.lane.b32.xlu0 %v3862_v22, %s5851_s2  ;;  %v5722_v52 = vpop.eup %5721  ;;  %v2933_v22 = vmul.f32 1.442695, %v2881_v7  ;;  %v2882_v59 = vsub.f32 0.0, %v9955_v6 }
 0x400   :  { %5737 = vtanh.f32 %v3863_v63  ;;  %v9247_v3 = vpop.eup %5723  ;;  %v2972_v37 = vadd.f32 1.0, %v5722_v52 }
 0x401   :  { %v3779_v5 = vpop.permute.xlu0 %3778  ;;  %5739 = vpow2.f32 %v2929_v9  ;;  %v3705_v8 = vmul.f32 %v9247_v3, %v9060_v27 }
 0x402   :  { %v3864_v16 = vadd.f32 %v3779_v5, %v3704_v25  ;;  %v5726_v53 = vpop.eup %5725  ;;  %5741 = vrcp.f32 %v2971_v0  ;;  %v9956_v5 = vld [vmem:[#allocation27_spill] sm:$0xff]  ;;  %v9957_v0 = vld [vmem:[#allocation34_spill] sm:$0xff] }
 0x403   :  { %4256 = vrot.lane.b32.xlu1 %v3863_v63, %s5851_s2  ;;  %3962 = vrot.lane.b32.xlu0 %v5720_v35, %s5851_s2  ;;  %v5728_v57 = vpop.eup %5727  ;;  %v2935_v63 = vmul.f32 1.442695, %v2882_v59  ;;  %v2883_v35 = vsub.f32 0.0, %v9956_v5  ;;  %v2884_v52 = vsub.f32 0.0, %v9957_v0 }
 0x404   :  { %5743 = vtanh.f32 %v3864_v16  ;;  %v9254_v46 = vpop.eup %5729  ;;  %v2973_v56 = vadd.f32 1.0, %v5728_v57  ;;  %v9958_v57 = vld [vmem:[#allocation18_spill] sm:$0xff] }
 0x405   :  { %v3781_v49 = vpop.permute.xlu1 %3780  ;;  %5745 = vpow2.f32 %v2931_v41  ;;  %v3706_v27 = vmul.f32 %v9254_v46, %v9065_v33 }
 0x406   :  { %v3865_v24 = vadd.f32 %v3781_v49, %v3705_v8  ;;  %v5732_v1 = vpop.eup %5731  ;;  %5747 = vrcp.f32 %v2972_v37  ;;  %v2939_v37 = vmul.f32 1.442695, %v2884_v52 }
 0x407   :  { %3964 = vrot.lane.b32.xlu1 %v5726_v53, %s5851_s2  ;;  %4258 = vrot.lane.b32.xlu0 %v3864_v16, %s5851_s2  ;;  %v5734_v40 = vpop.eup %5733  ;;  %v2937_v53 = vmul.f32 1.442695, %v2883_v35 }
 0x408   :  { %5749 = vtanh.f32 %v3865_v24  ;;  %v9261_v45 = vpop.eup %5735  ;;  %v2974_v9 = vadd.f32 1.0, %v5734_v40 }
 0x409   :  { %v3783_v28 = vpop.permute.xlu0 %3782  ;;  %5751 = vpow2.f32 %v2933_v22  ;;  %v3707_v33 = vmul.f32 %v9261_v45, %v9070_v11 }
 0x40a   :  { %v3866_v2 = vadd.f32 %v3783_v28, %v3706_v27  ;;  %v5738_v47 = vpop.eup %5737  ;;  %5753 = vrcp.f32 %v2973_v56 }
 0x40b   :  { %4260 = vrot.lane.b32.xlu1 %v3865_v24, %s5851_s2  ;;  %3966 = vrot.lane.b32.xlu0 %v5732_v1, %s5851_s2  ;;  %v5740_v26 = vpop.eup %5739  ;;  %v2885_v24 = vsub.f32 0.0, %v9958_v57 }
 0x40c   :  { %5755 = vtanh.f32 %v3866_v2  ;;  %v9268_v25 = vpop.eup %5741  ;;  %v2975_v41 = vadd.f32 1.0, %v5740_v26 }
 0x40d   :  { %v3785_v4 = vpop.permute.xlu1 %3784  ;;  %5757 = vpow2.f32 %v2935_v63  ;;  %v3708_v11 = vmul.f32 %v9268_v25, %v9075_v13  ;;  %v2941_v56 = vmul.f32 1.442695, %v2885_v24 }
 0x40e   :  { %v3867_v34 = vadd.f32 %v3785_v4, %v3707_v33  ;;  %v5744_v49 = vpop.eup %5743  ;;  %5759 = vrcp.f32 %v2974_v9  ;;  %v9959_v4 = vld [vmem:[#allocation21_spill] sm:$0xff]  ;;  %v9960_v9 = vld [vmem:[#allocation28_spill] sm:$0xff] }
 0x40f   :  { %3968 = vrot.lane.b32.xlu1 %v5738_v47, %s5851_s2  ;;  %4262 = vrot.lane.b32.xlu0 %v3866_v2, %s5851_s2  ;;  %v5746_v51 = vpop.eup %5745  ;;  %v2886_v47 = vsub.f32 0.0, %v9959_v4  ;;  %v2887_v26 = vsub.f32 0.0, %v9960_v9 }
 0x410   :  { %5761 = vtanh.f32 %v3867_v34  ;;  %v9275_v8 = vpop.eup %5747  ;;  %v2976_v22 = vadd.f32 1.0, %v5746_v51  ;;  %v9961_v51 = vld [vmem:[#allocation29_spill] sm:$0xff] }
 0x411   :  { %v3787_v16 = vpop.permute.xlu0 %3786  ;;  %5763 = vpow2.f32 %v2937_v53  ;;  %v3709_v13 = vmul.f32 %v9275_v8, %v9080_v58  ;;  %v2943_v52 = vmul.f32 1.442695, %v2886_v47 }
 0x412   :  { %v3868_v7 = vadd.f32 %v3787_v16, %v3708_v11  ;;  %v5750_v1 = vpop.eup %5749  ;;  %5765 = vrcp.f32 %v2975_v41  ;;  %v2945_v41 = vmul.f32 1.442695, %v2887_v26 }
 0x413   :  { %4264 = vrot.lane.b32.xlu1 %v3867_v34, %s5851_s2  ;;  %3970 = vrot.lane.b32.xlu0 %v5744_v49, %s5851_s2  ;;  %v5752_v6 = vpop.eup %5751 }
 0x414   :  { %5767 = vtanh.f32 %v3868_v7  ;;  %v9282_v27 = vpop.eup %5753  ;;  %v2977_v63 = vadd.f32 1.0, %v5752_v6 }
 0x415   :  { %v3789_v28 = vpop.permute.xlu1 %3788  ;;  %5769 = vpow2.f32 %v2939_v37  ;;  %v3710_v58 = vmul.f32 %v9282_v27, %v9085_v50 }
 0x416   :  { %v3869_v59 = vadd.f32 %v3789_v28, %v3709_v13  ;;  %v5756_v2 = vpop.eup %5755  ;;  %5771 = vrcp.f32 %v2976_v22 }
 0x417   :  { %3972 = vrot.lane.b32.xlu1 %v5750_v1, %s5851_s2  ;;  %4266 = vrot.lane.b32.xlu0 %v3868_v7, %s5851_s2  ;;  %v5758_v5 = vpop.eup %5757  ;;  %v2888_v7 = vsub.f32 0.0, %v9961_v51  ;;  %v9962_v1 = vld [vmem:[#allocation30_spill] sm:$0xff] }
 0x418   :  { %5773 = vtanh.f32 %v3869_v59  ;;  %v9289_v33 = vpop.eup %5759  ;;  %v2978_v16 = vadd.f32 1.0, %v5758_v5  ;;  %v2889_v13 = vsub.f32 0.0, %v9962_v1 }
 0x419   :  { %v3791_v40 = vpop.permute.xlu0 %3790  ;;  %5775 = vpow2.f32 %v2941_v56  ;;  %v3711_v50 = vmul.f32 %v9289_v33, %v9090_v36 }
 0x41a   :  { %v3870_v35 = vadd.f32 %v3791_v40, %v3710_v58  ;;  %v5762_v0 = vpop.eup %5761  ;;  %5777 = vrcp.f32 %v2977_v63  ;;  %v2949_v47 = vmul.f32 1.442695, %v2889_v13  ;;  %v9963_v58 = vld [vmem:[#allocation45_spill] sm:$0xff] }
 0x41b   :  { %4268 = vrot.lane.b32.xlu1 %v3869_v59, %s5851_s2  ;;  %3974 = vrot.lane.b32.xlu0 %v5756_v2, %s5851_s2  ;;  %v5764_v49 = vpop.eup %5763  ;;  %v2947_v59 = vmul.f32 1.442695, %v2888_v7  ;;  %v2890_v63 = vsub.f32 0.0, %v9963_v58 }
 0x41c   :  { %5779 = vtanh.f32 %v3870_v35  ;;  %v9296_v11 = vpop.eup %5765  ;;  %v2979_v28 = vadd.f32 1.0, %v5764_v49 }
 0x41d   :  { %v3793_v34 = vpop.permute.xlu1 %3792  ;;  %5781 = vpow2.f32 %v2943_v52  ;;  %v3712_v36 = vmul.f32 %v9296_v11, %v9095_v42 }
 0x41e   :  { %v3871_v53 = vadd.f32 %v3793_v34, %v3711_v50  ;;  %v5768_v57 = vpop.eup %5767  ;;  %5783 = vrcp.f32 %v2978_v16 }
 0x41f   :  { %3976 = vrot.lane.b32.xlu1 %v5762_v0, %s5851_s2  ;;  %4270 = vrot.lane.b32.xlu0 %v3870_v35, %s5851_s2  ;;  %v5770_v24 = vpop.eup %5769  ;;  %v2951_v0 = vmul.f32 1.442695, %v2890_v63 }
 0x420   :  { %5785 = vtanh.f32 %v3871_v53  ;;  %v9304_v6 = vpop.eup %5771  ;;  %v2980_v2 = vadd.f32 1.0, %v5770_v24 }
 0x421   :  { %v3795_v37 = vpop.permute.xlu0 %3794  ;;  %5787 = vpow2.f32 %v2945_v41  ;;  %v3713_v42 = vmul.f32 %v9304_v6, %v9100_v62 }
 0x422   :  { %v3872_v22 = vadd.f32 %v3795_v37, %v3712_v36  ;;  %v5774_v40 = vpop.eup %5773  ;;  %5789 = vrcp.f32 %v2979_v28 }
 0x423   :  { %4272 = vrot.lane.b32.xlu1 %v3871_v53, %s5851_s2  ;;  %3978 = vrot.lane.b32.xlu0 %v5768_v57, %s5851_s2  ;;  %v5776_v4 = vpop.eup %5775 }
 0x424   :  { %5791 = vtanh.f32 %v3872_v22  ;;  %v9311_v35 = vpop.eup %5777  ;;  %v2981_v34 = vadd.f32 1.0, %v5776_v4 }
 0x425   :  { %v3797_v56 = vpop.permute.xlu1 %3796  ;;  %5793 = vpow2.f32 %v2947_v59  ;;  %v3714_v62 = vmul.f32 %v9311_v35, %v9105_v21  ;;  %v9964_v21 = vld [vmem:[#allocation32_spill] sm:$0xff]  ;;  %v9965_v59 = vld [vmem:[#allocation46_spill] sm:$0xff] }
 0x426   :  { %v3873_v5 = vadd.f32 %v3797_v56, %v3713_v42  ;;  %v5780_v26 = vpop.eup %5779  ;;  %5795 = vrcp.f32 %v2980_v2  ;;  %v2891_v37 = vsub.f32 0.0, %v9964_v21  ;;  %v2892_v56 = vsub.f32 0.0, %v9965_v59 }
 0x427   :  { %3980 = vrot.lane.b32.xlu1 %v5774_v40, %s5851_s2  ;;  %4274 = vrot.lane.b32.xlu0 %v3872_v22, %s5851_s2  ;;  %5797 = vpow2.f32 %v2949_v47  ;;  %v5782_v52 = vpop.eup %5781 }
 0x428   :  { %5799 = vtanh.f32 %v3873_v5  ;;  %v9317_v16 = vpop.eup %5783  ;;  %v2982_v7 = vadd.f32 1.0, %v5782_v52  ;;  %v2953_v22 = vmul.f32 1.442695, %v2891_v37  ;;  %v2955_v63 = vmul.f32 1.442695, %v2892_v56 }
 0x429   :  { %v3799_v9 = vpop.permute.xlu0 %3798  ;;  %5801 = vrcp.f32 %v2981_v34  ;;  %v3715_v41 = vmul.f32 %v9317_v16, %v9110_v10 }
 0x42a   :  { %v3874_v50 = vadd.f32 %v3799_v9, %v3714_v62  ;;  %v5786_v53 = vpop.eup %5785  ;;  %5803 = vpow2.f32 %v2951_v0 }
 0x42b   :  { %4276 = vrot.lane.b32.xlu1 %v3873_v5, %s5851_s2  ;;  %3982 = vrot.lane.b32.xlu0 %v5780_v26, %s5851_s2  ;;  %v5788_v51 = vpop.eup %5787 }
 0x42c   :  { %5805 = vtanh.f32 %v3874_v50  ;;  %v9324_v36 = vpop.eup %5789  ;;  %v2983_v1 = vadd.f32 1.0, %v5788_v51 }
 0x42d   :  { %v3801_v49 = vpop.permute.xlu1 %3800  ;;  %v3716_v13 = vmul.f32 %v9324_v36, %v9116_v12  ;;  %5807 = vrcp.f32 %v2982_v7 }
 0x42e   :  { %v3875_v57 = vadd.f32 %v3801_v49, %v3715_v41  ;;  %v5792_v28 = vpop.eup %5791 }
 0x42f   :  { %3984 = vrot.lane.b32.xlu1 %v5786_v53, %s5851_s2  ;;  %4278 = vrot.lane.b32.xlu0 %v3874_v50, %s5851_s2  ;;  %v5794_v10 = vpop.eup %5793 }
 0x430   :  { %v9331_v40 = vpop.eup %5795  ;;  %5809 = vtanh.f32 %v3875_v57  ;;  %v2984_v58 = vadd.f32 1.0, %v5794_v10 }
 0x431   :  { %v3803_v24 = vpop.permute.xlu0 %3802  ;;  %v5798_v42 = vpop.eup %5797  ;;  %5811 = vrcp.f32 %v2983_v1  ;;  %v3717_v12 = vmul.f32 %v9331_v40, %v9122_v30 }
 0x432   :  { %v3876_v2 = vadd.f32 %v3803_v24, %v3716_v13  ;;  %v5800_v47 = vpop.eup %5799  ;;  %5813 = vpow2.f32 %v2953_v22  ;;  %v2985_v34 = vadd.f32 1.0, %v5798_v42 }
 0x433   :  { %4280 = vrot.lane.b32.xlu1 %v3875_v57, %s5851_s2  ;;  %3986 = vrot.lane.b32.xlu0 %v5792_v28, %s5851_s2  ;;  %v9337_v5 = vpop.eup %5801 }
 0x434   :  { %5815 = vtanh.f32 %v3876_v2  ;;  %v5804_v26 = vpop.eup %5803  ;;  %v3718_v52 = vmul.f32 %v9337_v5, %v9128_v32 }
 0x435   :  { %v3805_v4 = vpop.permute.xlu1 %3804  ;;  %5817 = vrcp.f32 %v2984_v58  ;;  %v2986_v49 = vadd.f32 1.0, %v5804_v26 }
 0x436   :  { %v3877_v9 = vadd.f32 %v3805_v4, %v3717_v12  ;;  %v5806_v0 = vpop.eup %5805  ;;  %5819 = vpow2.f32 %v2955_v63 }
 0x437   :  { %3988 = vrot.lane.b32.xlu1 %v5800_v47, %s5851_s2  ;;  %4282 = vrot.lane.b32.xlu0 %v3876_v2, %s5851_s2  ;;  %v9343_v50 = vpop.eup %5807 }
 0x438   :  { %5821 = vtanh.f32 %v3877_v9  ;;  %v3719_v51 = vmul.f32 %v9343_v50, %v9135_v43 }
 0x439   :  { %v3807_v62 = vpop.permute.xlu0 %3806  ;;  %5823 = vrcp.f32 %v2985_v34 }
 0x43a   :  { %v3878_v30 = vadd.f32 %v3807_v62, %v3718_v52  ;;  %v5810_v41 = vpop.eup %5809 }
 0x43b   :  { %4284 = vrot.lane.b32.xlu1 %v3877_v9, %s5851_s2  ;;  %3990 = vrot.lane.b32.xlu0 %v5806_v0, %s5851_s2  ;;  %v9349_v32 = vpop.eup %5811 }
 0x43c   :  { %5825 = vtanh.f32 %v3878_v30  ;;  %v5814_v21 = vpop.eup %5813  ;;  %v3720_v24 = vmul.f32 %v9349_v32, %v9141_v44 }
 0x43d   :  { %v3809_v53 = vpop.permute.xlu1 %3808  ;;  %5827 = vrcp.f32 %v2986_v49  ;;  %v2987_v13 = vadd.f32 1.0, %v5814_v21 }
 0x43e   :  { %v3879_v7 = vadd.f32 %v3809_v53, %v3719_v51  ;;  %v5816_v57 = vpop.eup %5815 }
 0x43f   :  { %3992 = vrot.lane.b32.xlu1 %v5810_v41, %s5851_s2  ;;  %4286 = vrot.lane.b32.xlu0 %v3878_v30, %s5851_s2  ;;  %v9355_v43 = vpop.eup %5817 }
 0x440   :  { %5829 = vtanh.f32 %v3879_v7  ;;  %v5820_v1 = vpop.eup %5819  ;;  %v3721_v10 = vmul.f32 %v9355_v43, %v9147_v20 }
 0x441   :  { %v3811_v37 = vpop.permute.xlu0 %3810  ;;  %v2988_v42 = vadd.f32 1.0, %v5820_v1 }
 0x442   :  { %v3880_v28 = vadd.f32 %v3811_v37, %v3720_v24  ;;  %v5822_v59 = vpop.eup %5821 }
 0x443   :  { %4288 = vrot.lane.b32.xlu1 %v3879_v7, %s5851_s2  ;;  %3994 = vrot.lane.b32.xlu0 %v5816_v57, %s5851_s2  ;;  %v9359_v56 = vpop.eup %5823 }
 0x444   :  { %v3722_v44 = vmul.f32 %v9359_v56, %v9153_v31  ;;  %5831 = vtanh.f32 %v3880_v28 }
 0x445   :  { %v3813_v22 = vpop.permute.xlu1 %3812  ;;  %5833 = vrcp.f32 %v2987_v13 }
 0x446   :  { %v3881_v2 = vadd.f32 %v3813_v22, %v3721_v10  ;;  %v5826_v47 = vpop.eup %5825 }
 0x447   :  { %3996 = vrot.lane.b32.xlu1 %v5822_v59, %s5851_s2  ;;  %4290 = vrot.lane.b32.xlu0 %v3880_v28, %s5851_s2  ;;  %v9365_v12 = vpop.eup %5827 }
 0x448   :  { %5835 = vtanh.f32 %v3881_v2  ;;  %v3723_v20 = vmul.f32 %v9365_v12, %v9158_v15 }
 0x449   :  { %v3815_v4 = vpop.permute.xlu0 %3814 }
 0x44a   :  { %v3882_v58 = vadd.f32 %v3815_v4, %v3722_v44  ;;  %v5830_v31 = vpop.eup %5829 }
 0x44b   :  { %4292 = vrot.lane.b32.xlu1 %v3881_v2, %s5851_s2  ;;  %3998 = vrot.lane.b32.xlu0 %v5826_v47, %s5851_s2 }
 0x44c   :  { %5837 = vtanh.f32 %v3882_v58 }
 0x44d   :  { %5839 = vrcp.f32 %v2988_v42  ;;  %v3817_v63 = vpop.permute.xlu1 %3816 }
 0x44e   :  { %v3883_v9 = vadd.f32 %v3817_v63, %v3723_v20  ;;  %v5832_v34 = vpop.eup %5831 }
 0x44f   :  { %4000 = vrot.lane.b32.xlu1 %v5830_v31, %s5851_s2  ;;  %4294 = vrot.lane.b32.xlu0 %v3882_v58, %s5851_s2  ;;  %v9375_v62 = vpop.eup %5833 }
 0x450   :  { %5841 = vtanh.f32 %v3883_v9  ;;  %v3724_v15 = vmul.f32 %v9375_v62, %v9164_v29 }
 0x451   :  { %v9373_v26 = vpop.permute.xlu0 %4238 }
 0x452   :  { %v5836_v0 = vpop.eup %5835 }
 0x453   :  { %4296 = vrot.lane.b32.xlu1 %v3883_v9, %s5851_s2  ;;  %4002 = vrot.lane.b32.xlu0 %v5832_v34, %s5851_s2 }
 0x455   :  { %v9381_v52 = vpop.permute.xlu1 %4240  ;;  %v3819_v30 = vpop.permute.xlu0 %3818 }
 0x456   :  { %v5838_v49 = vpop.eup %5837  ;;  %v9383_v53 = vadd.f32 %v3819_v30, %v3724_v15 }
 0x457   :  { %v9385_v41 = vpop.eup %5839  ;;  %4004 = vrot.lane.b32.xlu1 %v5836_v0, %s5851_s2  ;;  %4006 = vrot.lane.b32.xlu0 %v5838_v49, %s5851_s2 }
 0x458   :  { %v3725_v51 = vmul.f32 %v9385_v41, %v9172_v17  ;;  %5843 = vtanh.f32 %v9383_v53 }
 0x459   :  { %v3821_v7 = vpop.permute.xlu1 %3820  ;;  %v9392_v29 = vpop.permute.xlu0 %4242 }
 0x45a   :  { %v5842_v21 = vpop.eup %5841  ;;  %v9394_v37 = vadd.f32 %v3821_v7, %v3725_v51 }
 0x45b   :  { %4008 = vrot.lane.b32.xlu1 %v5842_v21, %s5851_s2 }
 0x45c   :  { %5845 = vtanh.f32 %v9394_v37 }
 0x45d   :  { %v9398_v57 = vpop.permute.xlu1 %4244  ;;  %v3951_v24 = vpop.permute.xlu0 %3950 }
 0x45e   :  { %v4046_v28 = vmul.f32 %v9166_v38, %v3951_v24 }
 0x460   :  { %4110 = vrot.lane.b32.xlu0 %v4046_v28, %s5849_s7 }
 0x461   :  { %v3953_v17 = vpop.permute.xlu1 %3952  ;;  %v9402_v1 = vpop.permute.xlu0 %4246 }
 0x462   :  { %v5844_v13 = vpop.eup %5843  ;;  %v4047_v10 = vmul.f32 %v9174_v19, %v3953_v17 }
 0x464   :  { %4112 = vrot.lane.b32.xlu1 %v4047_v10, %s5849_s7  ;;  %4010 = vrot.lane.b32.xlu0 %v5844_v13, %s5851_s2 }
 0x465   :  { %v9407_v22 = vpop.permute.xlu1 %4248  ;;  %v3955_v59 = vpop.permute.xlu0 %3954 }
 0x466   :  { %v5846_v2 = vpop.eup %5845  ;;  %v4048_v44 = vmul.f32 %v9182_v61, %v3955_v59 }
 0x468   :  { %4012 = vrot.lane.b32.xlu1 %v5846_v2, %s5851_s2  ;;  %4114 = vrot.lane.b32.xlu0 %v4048_v44, %s5849_s7 }
 0x469   :  { %v3957_v38 = vpop.permute.xlu1 %3956  ;;  %v9412_v42 = vpop.permute.xlu0 %4250 }
 0x46a   :  { %v4049_v4 = vmul.f32 %v9191_v60, %v3957_v38 }
 0x46c   :  { %4116 = vrot.lane.b32.xlu1 %v4049_v4, %s5849_s7 }
 0x46d   :  { %v9416_v19 = vpop.permute.xlu1 %4252  ;;  %v3959_v47 = vpop.permute.xlu0 %3958 }
 0x46e   :  { %v4050_v58 = vmul.f32 %v9194_v39, %v3959_v47 }
 0x470   :  { %4118 = vrot.lane.b32.xlu0 %v4050_v58, %s5849_s7 }
 0x471   :  { %v3961_v20 = vpop.permute.xlu1 %3960  ;;  %v9420_v61 = vpop.permute.xlu0 %4254 }
 0x472   :  { %v4051_v63 = vmul.f32 %v9203_v48, %v3961_v20 }
 0x474   :  { %4120 = vrot.lane.b32.xlu1 %v4051_v63, %s5849_s7 }
 0x475   :  { %v9424_v31 = vpop.permute.xlu1 %4256  ;;  %v3963_v9 = vpop.permute.xlu0 %3962 }
 0x476   :  { %v4052_v60 = vmul.f32 %v9210_v55, %v3963_v9 }
 0x478   :  { %4122 = vrot.lane.b32.xlu0 %v4052_v60, %s5849_s7 }
 0x479   :  { %v3965_v34 = vpop.permute.xlu1 %3964  ;;  %v9428_v15 = vpop.permute.xlu0 %4258 }
 0x47a   :  { %v4053_v39 = vmul.f32 %v9217_v14, %v3965_v34 }
 0x47c   :  { %4124 = vrot.lane.b32.xlu1 %v4053_v39, %s5849_s7 }
 0x47d   :  { %v9432_v0 = vpop.permute.xlu1 %4260  ;;  %v3967_v30 = vpop.permute.xlu0 %3966 }
 0x47e   :  { %v4054_v48 = vmul.f32 %v9226_v23, %v3967_v30 }
 0x480   :  { %4126 = vrot.lane.b32.xlu0 %v4054_v48, %s5849_s7 }
 0x481   :  { %v3969_v49 = vpop.permute.xlu1 %3968  ;;  %v9436_v51 = vpop.permute.xlu0 %4262 }
 0x482   :  { %v4055_v55 = vmul.f32 %v9233_v18, %v3969_v49 }
 0x484   :  { %4128 = vrot.lane.b32.xlu1 %v4055_v55, %s5849_s7 }
 0x485   :  { %v9440_v7 = vpop.permute.xlu1 %4264  ;;  %v3971_v21 = vpop.permute.xlu0 %3970 }
 0x486   :  { %v4056_v14 = vmul.f32 %v9240_v54, %v3971_v21 }
 0x488   :  { %4130 = vrot.lane.b32.xlu0 %v4056_v14, %s5849_s7 }
 0x489   :  { %v3973_v24 = vpop.permute.xlu1 %3972  ;;  %v9444_v28 = vpop.permute.xlu0 %4266 }
 0x48a   :  { %v4057_v23 = vmul.f32 %v9247_v3, %v3973_v24 }
 0x48c   :  { %4132 = vrot.lane.b32.xlu1 %v4057_v23, %s5849_s7 }
 0x48d   :  { %v9448_v17 = vpop.permute.xlu1 %4268  ;;  %v3975_v13 = vpop.permute.xlu0 %3974 }
 0x48e   :  { %v4058_v18 = vmul.f32 %v9254_v46, %v3975_v13 }
 0x490   :  { %4134 = vrot.lane.b32.xlu0 %v4058_v18, %s5849_s7 }
 0x491   :  { %v3977_v10 = vpop.permute.xlu1 %3976  ;;  %v9452_v59 = vpop.permute.xlu0 %4270 }
 0x492   :  { %v4059_v54 = vmul.f32 %v9261_v45, %v3977_v10 }
 0x494   :  { %4136 = vrot.lane.b32.xlu1 %v4059_v54, %s5849_s7 }
 0x495   :  { %v9456_v2 = vpop.permute.xlu1 %4272  ;;  %v3979_v44 = vpop.permute.xlu0 %3978 }
 0x496   :  { %v4060_v3 = vmul.f32 %v9268_v25, %v3979_v44 }
 0x498   :  { %4138 = vrot.lane.b32.xlu0 %v4060_v3, %s5849_s7 }
 0x499   :  { %v3981_v38 = vpop.permute.xlu1 %3980  ;;  %v9460_v4 = vpop.permute.xlu0 %4274 }
 0x49a   :  { %v4061_v46 = vmul.f32 %v9275_v8, %v3981_v38 }
 0x49c   :  { %4140 = vrot.lane.b32.xlu1 %v4061_v46, %s5849_s7 }
 0x49d   :  { %v9464_v47 = vpop.permute.xlu1 %4276  ;;  %v3983_v58 = vpop.permute.xlu0 %3982 }
 0x49e   :  { %v4062_v45 = vmul.f32 %v9282_v27, %v3983_v58 }
 0x4a0   :  { %4142 = vrot.lane.b32.xlu0 %v4062_v45, %s5849_s7 }
 0x4a1   :  { %v3985_v20 = vpop.permute.xlu1 %3984  ;;  %v9468_v63 = vpop.permute.xlu0 %4278 }
 0x4a2   :  { %v4063_v25 = vmul.f32 %v9289_v33, %v3985_v20 }
 0x4a4   :  { %4144 = vrot.lane.b32.xlu1 %v4063_v25, %s5849_s7 }
 0x4a5   :  { %v9472_v9 = vpop.permute.xlu1 %4280  ;;  %v3987_v60 = vpop.permute.xlu0 %3986 }
 0x4a6   :  { %v4064_v8 = vmul.f32 %v9296_v11, %v3987_v60 }
 0x4a8   :  { %4146 = vrot.lane.b32.xlu0 %v4064_v8, %s5849_s7 }
 0x4a9   :  { %v3989_v34 = vpop.permute.xlu1 %3988  ;;  %v9476_v39 = vpop.permute.xlu0 %4282 }
 0x4aa   :  { %v4065_v27 = vmul.f32 %v9304_v6, %v3989_v34 }
 0x4ac   :  { %4148 = vrot.lane.b32.xlu1 %v4065_v27, %s5849_s7 }
 0x4ad   :  { %v9480_v30 = vpop.permute.xlu1 %4284  ;;  %v3991_v48 = vpop.permute.xlu0 %3990 }
 0x4ae   :  { %v4066_v33 = vmul.f32 %v9311_v35, %v3991_v48 }
 0x4b0   :  { %4150 = vrot.lane.b32.xlu0 %v4066_v33, %s5849_s7 }
 0x4b1   :  { %v3993_v49 = vpop.permute.xlu1 %3992  ;;  %v9484_v55 = vpop.permute.xlu0 %4286 }
 0x4b2   :  { %v4067_v11 = vmul.f32 %v9317_v16, %v3993_v49 }
 0x4b4   :  { %4152 = vrot.lane.b32.xlu1 %v4067_v11, %s5849_s7 }
 0x4b5   :  { %v9488_v21 = vpop.permute.xlu1 %4288  ;;  %v3995_v14 = vpop.permute.xlu0 %3994 }
 0x4b6   :  { %v4068_v6 = vmul.f32 %v9324_v36, %v3995_v14 }
 0x4b8   :  { %4154 = vrot.lane.b32.xlu0 %v4068_v6, %s5849_s7 }
 0x4b9   :  { %v3997_v24 = vpop.permute.xlu1 %3996  ;;  %v9492_v23 = vpop.permute.xlu0 %4290 }
 0x4ba   :  { %v4069_v35 = vmul.f32 %v9331_v40, %v3997_v24 }
 0x4bc   :  { %4156 = vrot.lane.b32.xlu1 %v4069_v35, %s5849_s7 }
 0x4bd   :  { %v9496_v13 = vpop.permute.xlu1 %4292  ;;  %v3999_v18 = vpop.permute.xlu0 %3998 }
 0x4be   :  { %v4070_v16 = vmul.f32 %v9337_v5, %v3999_v18 }
 0x4c0   :  { %4158 = vrot.lane.b32.xlu0 %v4070_v16, %s5849_s7 }
 0x4c1   :  { %v4001_v10 = vpop.permute.xlu1 %4000  ;;  %v9500_v54 = vpop.permute.xlu0 %4294 }
 0x4c2   :  { %v4071_v36 = vmul.f32 %v9343_v50, %v4001_v10 }
 0x4c4   :  { %4160 = vrot.lane.b32.xlu1 %v4071_v36, %s5849_s7 }
 0x4c5   :  { %v9504_v44 = vpop.permute.xlu1 %4296  ;;  %v4003_v3 = vpop.permute.xlu0 %4002 }
 0x4c6   :  { %v4072_v40 = vmul.f32 %v9349_v32, %v4003_v3 }
 0x4c8   :  { %4162 = vrot.lane.b32.xlu0 %v4072_v40, %s5849_s7 }
 0x4c9   :  { %v4005_v38 = vpop.permute.xlu1 %4004  ;;  %v4007_v46 = vpop.permute.xlu0 %4006 }
 0x4ca   :  { %v4073_v5 = vmul.f32 %v9355_v43, %v4005_v38  ;;  %v4074_v58 = vmul.f32 %v9359_v56, %v4007_v46 }
 0x4cc   :  { %4164 = vrot.lane.b32.xlu1 %v4073_v5, %s5849_s7  ;;  %4166 = vrot.lane.b32.xlu0 %v4074_v58, %s5849_s7 }
 0x4cd   :  { %v4009_v50 = vpop.permute.xlu1 %4008 }
 0x4ce   :  { %v4075_v45 = vmul.f32 %v9365_v12, %v4009_v50 }
 0x4d0   :  { %4168 = vrot.lane.b32.xlu1 %v4075_v45, %s5849_s7 }
 0x4d2   :  { %v4111_v20 = vpop.permute.xlu0 %4110 }
 0x4d3   :  { %v4335_v32 = vsel %vm4334_vm11, %v4111_v20, %v9373_v26 }
 0x4d4   :  { %4367 = vst.msk [vmem:[%s9718_s6] sm:$0xff] %vm122_vm0, %v4335_v32 }
 0x4d6   :  { %v4113_v43 = vpop.permute.xlu1 %4112  ;;  %v4011_v56 = vpop.permute.xlu0 %4010 }
 0x4d7   :  { %v4336_v25 = vsel %vm4334_vm11, %v4113_v43, %v9381_v52  ;;  %v4076_v60 = vmul.f32 %v9375_v62, %v4011_v56 }
 0x4d8   :  { %4368 = vst.msk [vmem:[%s9718_s6 + $0x8] sm:$0xff] %vm122_vm0, %v4336_v25 }
 0x4d9   :  { %4170 = vrot.lane.b32.xlu0 %v4076_v60, %s5849_s7 }
 0x4da   :  { %v4013_v12 = vpop.permute.xlu1 %4012  ;;  %v4115_v26 = vpop.permute.xlu0 %4114 }
 0x4db   :  { %v4077_v8 = vmul.f32 %v9385_v41, %v4013_v12  ;;  %v4337_v34 = vsel %vm4334_vm11, %v4115_v26, %v9392_v29 }
 0x4dc   :  { %4369 = vst.msk [vmem:[%s9718_s6 + $0x10] sm:$0xff] %vm122_vm0, %v4337_v34 }
 0x4dd   :  { %4172 = vrot.lane.b32.xlu1 %v4077_v8, %s5849_s7  ;;  %4298 = vrot.lane.b32.xlu0 %v9383_v53, %s5851_s2 }
 0x4de   :  { %v4117_v62 = vpop.permute.xlu1 %4116 }
 0x4df   :  { %v4338_v52 = vsel %vm4334_vm11, %v4117_v62, %v9398_v57 }
 0x4e0   :  { %4370 = vst.msk [vmem:[%s9718_s6 + $0x18] sm:$0xff] %vm122_vm0, %v4338_v52 }
 0x4e1   :  { %4300 = vrot.lane.b32.xlu1 %v9394_v37, %s5851_s2 }
 0x4e2   :  { %v4119_v41 = vpop.permute.xlu0 %4118 }
 0x4e3   :  { %v4339_v29 = vsel %vm4334_vm11, %v4119_v41, %v9402_v1 }
 0x4e4   :  { %4371 = vst.msk [vmem:[%s9718_s6 + $0x20] sm:$0xff] %vm122_vm0, %v4339_v29 }
 0x4e6   :  { %v4121_v53 = vpop.permute.xlu1 %4120 }
 0x4e7   :  { %v4340_v57 = vsel %vm4334_vm11, %v4121_v53, %v9407_v22 }
 0x4e8   :  { %4372 = vst.msk [vmem:[%s9718_s6 + $0x28] sm:$0xff] %vm122_vm0, %v4340_v57 }
 0x4ea   :  { %v4123_v27 = vpop.permute.xlu0 %4122 }
 0x4eb   :  { %v4341_v37 = vsel %vm4334_vm11, %v4123_v27, %v9412_v42 }
 0x4ec   :  { %4373 = vst.msk [vmem:[%s9718_s6 + $0x30] sm:$0xff] %vm122_vm0, %v4341_v37 }
 0x4ee   :  { %v4125_v1 = vpop.permute.xlu1 %4124 }
 0x4ef   :  { %v4342_v48 = vsel %vm4334_vm11, %v4125_v1, %v9416_v19 }
 0x4f0   :  { %4374 = vst.msk [vmem:[%s9718_s6 + $0x38] sm:$0xff] %vm122_vm0, %v4342_v48 }
 0x4f2   :  { %v4127_v22 = vpop.permute.xlu0 %4126 }
 0x4f3   :  { %v4343_v33 = vsel %vm4334_vm11, %v4127_v22, %v9420_v61 }
 0x4f4   :  { %4375 = vst.msk [vmem:[%s9718_s6 + $0x40] sm:$0xff] %vm122_vm0, %v4343_v33 }
 0x4f6   :  { %v4129_v42 = vpop.permute.xlu1 %4128 }
 0x4f7   :  { %v4344_v49 = vsel %vm4334_vm11, %v4129_v42, %v9424_v31 }
 0x4f8   :  { %4376 = vst.msk [vmem:[%s9718_s6 + $0x48] sm:$0xff] %vm122_vm0, %v4344_v49 }
 0x4fa   :  { %v4131_v19 = vpop.permute.xlu0 %4130 }
 0x4fb   :  { %v4345_v11 = vsel %vm4334_vm11, %v4131_v19, %v9428_v15 }
 0x4fc   :  { %4377 = vst.msk [vmem:[%s9718_s6 + $0x50] sm:$0xff] %vm122_vm0, %v4345_v11 }
 0x4fe   :  { %v4133_v61 = vpop.permute.xlu1 %4132 }
 0x4ff   :  { %v4346_v14 = vsel %vm4334_vm11, %v4133_v61, %v9432_v0 }
 0x500   :  { %4378 = vst.msk [vmem:[%s9718_s6 + $0x58] sm:$0xff] %vm122_vm0, %v4346_v14 }
 0x502   :  { %v4135_v31 = vpop.permute.xlu0 %4134 }
 0x503   :  { %v4347_v6 = vsel %vm4334_vm11, %v4135_v31, %v9436_v51 }
 0x504   :  { %4379 = vst.msk [vmem:[%s9718_s6 + $0x60] sm:$0xff] %vm122_vm0, %v4347_v6 }
 0x506   :  { %v4137_v15 = vpop.permute.xlu1 %4136 }
 0x507   :  { %v4348_v24 = vsel %vm4334_vm11, %v4137_v15, %v9440_v7 }
 0x508   :  { %4380 = vst.msk [vmem:[%s9718_s6 + $0x68] sm:$0xff] %vm122_vm0, %v4348_v24 }
 0x50a   :  { %v4139_v0 = vpop.permute.xlu0 %4138 }
 0x50b   :  { %v4349_v35 = vsel %vm4334_vm11, %v4139_v0, %v9444_v28 }
 0x50c   :  { %4381 = vst.msk [vmem:[%s9718_s6 + $0x70] sm:$0xff] %vm122_vm0, %v4349_v35 }
 0x50e   :  { %v4141_v51 = vpop.permute.xlu1 %4140 }
 0x50f   :  { %v4350_v18 = vsel %vm4334_vm11, %v4141_v51, %v9448_v17 }
 0x510   :  { %4382 = vst.msk [vmem:[%s9718_s6 + $0x78] sm:$0xff] %vm122_vm0, %v4350_v18 }
 0x512   :  { %v4143_v7 = vpop.permute.xlu0 %4142 }
 0x513   :  { %v4351_v16 = vsel %vm4334_vm11, %v4143_v7, %v9452_v59 }
 0x514   :  { %4383 = vst.msk [vmem:[%s9718_s6 + $0x80] sm:$0xff] %vm122_vm0, %v4351_v16 }
 0x516   :  { %v4145_v28 = vpop.permute.xlu1 %4144 }
 0x517   :  { %v4352_v10 = vsel %vm4334_vm11, %v4145_v28, %v9456_v2 }
 0x518   :  { %4384 = vst.msk [vmem:[%s9718_s6 + $0x88] sm:$0xff] %vm122_vm0, %v4352_v10 }
 0x51a   :  { %v4147_v17 = vpop.permute.xlu0 %4146 }
 0x51b   :  { %v4353_v36 = vsel %vm4334_vm11, %v4147_v17, %v9460_v4 }
 0x51c   :  { %4385 = vst.msk [vmem:[%s9718_s6 + $0x90] sm:$0xff] %vm122_vm0, %v4353_v36 }
 0x51e   :  { %v4149_v59 = vpop.permute.xlu1 %4148 }
 0x51f   :  { %v4354_v3 = vsel %vm4334_vm11, %v4149_v59, %v9464_v47 }
 0x520   :  { %4386 = vst.msk [vmem:[%s9718_s6 + $0x98] sm:$0xff] %vm122_vm0, %v4354_v3 }
 0x522   :  { %v4151_v2 = vpop.permute.xlu0 %4150 }
 0x523   :  { %v4355_v40 = vsel %vm4334_vm11, %v4151_v2, %v9468_v63 }
 0x524   :  { %4387 = vst.msk [vmem:[%s9718_s6 + $0xa0] sm:$0xff] %vm122_vm0, %v4355_v40 }
 0x526   :  { %v4153_v4 = vpop.permute.xlu1 %4152 }
 0x527   :  { %v4356_v38 = vsel %vm4334_vm11, %v4153_v4, %v9472_v9 }
 0x528   :  { %4388 = vst.msk [vmem:[%s9718_s6 + $0xa8] sm:$0xff] %vm122_vm0, %v4356_v38 }
 0x52a   :  { %v4155_v47 = vpop.permute.xlu0 %4154 }
 0x52b   :  { %v4357_v46 = vsel %vm4334_vm11, %v4155_v47, %v9476_v39 }
 0x52c   :  { %4389 = vst.msk [vmem:[%s9718_s6 + $0xb0] sm:$0xff] %vm122_vm0, %v4357_v46 }
 0x52e   :  { %v4157_v63 = vpop.permute.xlu1 %4156 }
 0x52f   :  { %v4358_v5 = vsel %vm4334_vm11, %v4157_v63, %v9480_v30 }
 0x530   :  { %4390 = vst.msk [vmem:[%s9718_s6 + $0xb8] sm:$0xff] %vm122_vm0, %v4358_v5 }
 0x532   :  { %v4159_v9 = vpop.permute.xlu0 %4158 }
 0x533   :  { %v4359_v58 = vsel %vm4334_vm11, %v4159_v9, %v9484_v55 }
 0x534   :  { %4391 = vst.msk [vmem:[%s9718_s6 + $0xc0] sm:$0xff] %vm122_vm0, %v4359_v58 }
 0x536   :  { %v4161_v39 = vpop.permute.xlu1 %4160 }
 0x537   :  { %v4360_v50 = vsel %vm4334_vm11, %v4161_v39, %v9488_v21 }
 0x538   :  { %4392 = vst.msk [vmem:[%s9718_s6 + $0xc8] sm:$0xff] %vm122_vm0, %v4360_v50 }
 0x53a   :  { %v4163_v30 = vpop.permute.xlu0 %4162 }
 0x53b   :  { %v4361_v45 = vsel %vm4334_vm11, %v4163_v30, %v9492_v23 }
 0x53c   :  { %4393 = vst.msk [vmem:[%s9718_s6 + $0xd0] sm:$0xff] %vm122_vm0, %v4361_v45 }
 0x53e   :  { %v4165_v55 = vpop.permute.xlu1 %4164  ;;  %v4167_v20 = vpop.permute.xlu0 %4166 }
 0x53f   :  { %v4362_v32 = vsel %vm4334_vm11, %v4165_v55, %v9496_v13  ;;  %v4363_v21 = vsel %vm4334_vm11, %v4167_v20, %v9500_v54 }
 0x540   :  { %4394 = vst.msk [vmem:[%s9718_s6 + $0xd8] sm:$0xff] %vm122_vm0, %v4362_v32  ;;  %4395 = vst.msk [vmem:[%s9718_s6 + $0xe0] sm:$0xff] %vm122_vm0, %v4363_v21 }
 0x542   :  { %v4169_v23 = vpop.permute.xlu1 %4168 }
 0x543   :  { %v4364_v43 = vsel %vm4334_vm11, %v4169_v23, %v9504_v44 }
 0x544   :  { %4396 = vst.msk [vmem:[%s9718_s6 + $0xe8] sm:$0xff] %vm122_vm0, %v4364_v43 }
 0x54b   :  { %v4171_v13 = vpop.permute.xlu0 %4170 }
 0x54f   :  { %v4173_v54 = vpop.permute.xlu1 %4172  ;;  %v4299_v56 = vpop.permute.xlu0 %4298 }
 0x550   :  { %v4365_v25 = vsel %vm4334_vm11, %v4171_v13, %v4299_v56 }
 0x551   :  { %4397 = vst.msk [vmem:[%s9718_s6 + $0xf0] sm:$0xff] %vm122_vm0, %v4365_v25 }
 0x553   :  { %v4301_v60 = vpop.permute.xlu1 %4300 }
 0x554   :  { %v4366_v12 = vsel %vm4334_vm11, %v4173_v54, %v4301_v60 }
 0x555   :  { %4398 = vst.msk [vmem:[%s9718_s6 + $0xf8] sm:$0xff] %vm122_vm0, %v4366_v12 }

</bundles_post_ra>
